<compile_context>
chip_gen: v7x
topology: tpu7x:2x2x1
jax: 0.10.0
libtpu: 0.0.40
codegen_flags: <defaults>
</compile_context>

<pallas_src>
import functools

import jax
import jax.numpy as jnp
from jax import lax
from jax.experimental import pallas as pl
from jax.experimental.pallas import tpu as pltpu

LANE = 128
SUBLANE = 8


def _round_up(x: int, m: int) -> int:
    return (x + m - 1) // m * m


def vqvae_kernel(x_ref, w1_ref, b1_ref, w2_ref, b2_ref, embw3_ref, b3_ref,
                 w4_ref, b4_ref, recon_ref, ze_ref, *, latent_dim: int):
    f32, bf16 = jnp.float32, jnp.bfloat16

    x = x_ref[...]                                              # (TB, Dp) bf16

    # ---------------- encoder ----------------
    h = jnp.dot(x, w1_ref[...], preferred_element_type=f32) + b1_ref[...]
    h = jnp.maximum(h, 0.0)
    z_e = jnp.dot(h.astype(bf16), w2_ref[...],
                  preferred_element_type=f32) + b2_ref[...]     # (TB, Lp) f32
    ze_ref[...] = z_e

    # -------- quantizer: first-occurrence argmax over the valid latent cols --------
    TB, Lp = z_e.shape
    iota_l = lax.broadcasted_iota(jnp.int32, (TB, Lp), 1)
    z_valid = jnp.where(iota_l < latent_dim, z_e, -jnp.inf)     # mask lane padding
    max_v = jnp.max(z_valid, axis=-1, keepdims=True)
    idx = jnp.min(jnp.where(z_valid == max_v, iota_l, Lp),
                  axis=-1, keepdims=True)                       # (TB, 1)

    Np = embw3_ref.shape[0]
    iota_n = iota_l if Np == Lp else lax.broadcasted_iota(jnp.int32, (TB, Np), 1)
    onehot = (iota_n == idx).astype(bf16)                       # 0/1 exact in bf16

    # ---- fused gather + decoder first layer: onehot @ bf16(emb @ w3) ----
    # Single-nonzero one-hot * bf16 row with f32 accumulation is an exact gather
    # of the precomputed bf16(emb @ w3) row.
    h2 = jnp.dot(onehot, embw3_ref[...],
                 preferred_element_type=f32) + b3_ref[...]      # (TB, H)
    h2 = jnp.maximum(h2, 0.0)

    recon_ref[...] = jnp.dot(h2.astype(bf16), w4_ref[...],
                             preferred_element_type=f32) + b4_ref[...]


def prepare_params(params):
    """One-time weight prep: pad feature dims to 128 lanes, cast matmul
    operands to bf16, and pre-fuse emb @ w3 (decoder first layer)."""
    f32, bf16 = jnp.float32, jnp.bfloat16
    D_in, H = params["w1"].shape
    L = params["w2"].shape[1]
    N = params["emb"].shape[0]
    if L > N:
        raise ValueError(
            "latent_dim > num_embeddings: argmax index could exceed the codebook "
            "(torch.nn.Embedding would raise).")

    Dp = _round_up(D_in, LANE)
    Lp = _round_up(L, LANE)
    Np = _round_up(N, LANE)

    emb_w3 = params["emb"].astype(f32) @ params["w3"].astype(f32)   # (N, H) f32

    arrays = {
        "w1": jnp.pad(params["w1"], ((0, Dp - D_in), (0, 0))).astype(bf16),
        "b1": params["b1"].reshape(1, H).astype(f32),
        "w2": jnp.pad(params["w2"], ((0, 0), (0, Lp - L))).astype(bf16),
        "b2": jnp.pad(params["b2"].reshape(1, L), ((0, 0), (0, Lp - L))).astype(f32),
        "emb_w3": jnp.pad(emb_w3, ((0, Np - N), (0, 0))).astype(bf16),
        "b3": params["b3"].reshape(1, H).astype(f32),
        "w4": jnp.pad(params["w4"], ((0, 0), (0, Dp - D_in))).astype(bf16),
        "b4": jnp.pad(params["b4"].reshape(1, D_in), ((0, 0), (0, Dp - D_in))).astype(f32),
    }
    meta = {"D_in": D_in, "H": H, "L": L, "N": N, "Dp": Dp, "Lp": Lp, "Np": Np}
    return arrays, meta


def vqvae_forward(x, arrays, meta, *, block_b=1024):
    """x: (B, input_dim) float32. arrays/meta: from prepare_params.
    Call under jax.jit so the x padding/cast fuses and params stay resident."""
    f32, bf16 = jnp.float32, jnp.bfloat16
    B, D_in = x.shape
    assert D_in == meta["D_in"]
    H, L = meta["H"], meta["L"]
    Dp, Lp, Np = meta["Dp"], meta["Lp"], meta["Np"]

    # Batch tile: amortize per-grid-step overhead with big tiles, but keep
    # >= 2 equal tiles when possible so v7x's two TensorCores both get work.
    if B <= SUBLANE:
        TB = SUBLANE
    else:
        TB = min(block_b, _round_up(pl.cdiv(B, 2), SUBLANE))
    Bp = _round_up(B, TB)

    # Stream activations in bf16 (matmul operands are bf16 anyway).
    xp = jnp.pad(x.astype(f32), ((0, Bp - B), (0, Dp - D_in))).astype(bf16)

    const = lambda i: (0, 0)   # weights: same block every step -> VMEM-resident
    batch = lambda i: (i, 0)   # activations: tiled along the batch grid axis

    recon_p, ze_p = pl.pallas_call(
        functools.partial(vqvae_kernel, latent_dim=L),
        out_shape=(
            jax.ShapeDtypeStruct((Bp, Dp), f32),
            jax.ShapeDtypeStruct((Bp, Lp), f32),
        ),
        grid_spec=pltpu.PrefetchScalarGridSpec(
            num_scalar_prefetch=0,
            grid=(Bp // TB,),
            in_specs=[
                pl.BlockSpec((TB, Dp), batch),   # x (bf16)
                pl.BlockSpec((Dp, H), const),    # w1
                pl.BlockSpec((1, H), const),     # b1
                pl.BlockSpec((H, Lp), const),    # w2
                pl.BlockSpec((1, Lp), const),    # b2
                pl.BlockSpec((Np, H), const),    # emb @ w3 (pre-fused, bf16)
                pl.BlockSpec((1, H), const),     # b3
                pl.BlockSpec((H, Dp), const),    # w4
                pl.BlockSpec((1, Dp), const),    # b4
            ],
            out_specs=[
                pl.BlockSpec((TB, Dp), batch),   # recon (lane-dense)
                pl.BlockSpec((TB, Lp), batch),   # z_e   (lane-dense)
            ],
        ),
        compiler_params=pltpu.CompilerParams(
            dimension_semantics=("parallel",)),  # megacore sharding on v7x
    )(xp, arrays["w1"], arrays["b1"], arrays["w2"], arrays["b2"],
      arrays["emb_w3"], arrays["b3"], arrays["w4"], arrays["b4"])

    return recon_p[:B, :D_in], ze_p[:B, :L]


# ----------------------------- references -----------------------------------

def _mxu_dot(a, b):
    # Same precision policy as the kernel: bf16 operands, f32 accumulation.
    return jnp.dot(a.astype(jnp.bfloat16), b.astype(jnp.bfloat16),
                   preferred_element_type=jnp.float32)


def encoder_ref(x, p):
    h = jnp.maximum(_mxu_dot(x, p["w1"]) + p["b1"], 0.0)
    return _mxu_dot(h, p["w2"]) + p["b2"]


def decoder_fused_ref(idx, p):
    # Matches the kernel's fused path: gather row of bf16(emb @ w3).
    embw3 = (p["emb"] @ p["w3"]).astype(jnp.bfloat16).astype(jnp.float32)
    h2 = jnp.maximum(jnp.take(embw3, idx, axis=0) + p["b3"], 0.0)
    return _mxu_dot(h2, p["w4"]) + p["b4"]


def vqvae_forward_ref_f32(x, p):
    h = jnp.maximum(x @ p["w1"] + p["b1"], 0.0)
    z_e = h @ p["w2"] + p["b2"]
    idx = jnp.argmax(z_e, axis=-1)
    z_q = jnp.take(p["emb"], idx, axis=0)
    h2 = jnp.maximum(z_q @ p["w3"] + p["b3"], 0.0)
    return h2 @ p["w4"] + p["b4"], z_e


def init_params(key, input_dim, latent_dim, num_embeddings, hidden=512):
    ks = jax.random.split(key, 9)
    s = 0.05
    return {
        "w1": s * jax.random.normal(ks[0], (input_dim, hidden), jnp.float32),
        "b1": s * jax.random.normal(ks[1], (1, hidden), jnp.float32),
        "w2": s * jax.random.normal(ks[2], (hidden, latent_dim), jnp.float32),
        "b2": s * jax.random.normal(ks[3], (1, latent_dim), jnp.float32),
        "emb": jax.random.normal(ks[4], (num_embeddings, latent_dim), jnp.float32),
        "w3": s * jax.random.normal(ks[5], (latent_dim, hidden), jnp.float32),
        "b3": s * jax.random.normal(ks[6], (1, hidden), jnp.float32),
        "w4": s * jax.random.normal(ks[7], (hidden, input_dim), jnp.float32),
        "b4": s * jax.random.normal(ks[8], (1, input_dim), jnp.float32),
    }


if __name__ == "__main__":
    # Small but module-consistent shapes; batch large enough to exercise the
    # batch grid (two tiles -> both v7x TensorCores) and fill MXU rows.
    batch = 512
    input_dim = 64
    latent_dim = 32
    num_embeddings = 64

    key = jax.random.PRNGKey(0)
    kx, kp = jax.random.split(key)
    x = jax.random.normal(kx, (batch, input_dim), jnp.float32)
    params = init_params(kp, input_dim, latent_dim, num_embeddings)

    # One-time weight prep; forward jitted so padding/cast of x fuses.
    arrays, meta = prepare_params(params)
    fwd = jax.jit(functools.partial(vqvae_forward, meta=meta))

    recon, z_e = fwd(x, arrays)
    recon = jax.block_until_ready(recon)
    z_e = jax.block_until_ready(z_e)

    assert recon.shape == (batch, input_dim) and z_e.shape == (batch, latent_dim)

    # 1) encoder output vs precision-matched reference (bf16 MXU, f32 accumulate)
    z_e_ref = encoder_ref(x, params)
    assert jnp.allclose(z_e, z_e_ref, atol=2e-3, rtol=2e-3)

    # 2) fused quantizer+decoder path, driven by codes selected from the kernel's
    #    own z_e (tie-robust: both argmaxes see bit-identical values).
    idx_k = jnp.argmax(z_e, axis=-1)
    recon_ref = decoder_fused_ref(idx_k, params)
    assert jnp.allclose(recon, recon_ref, atol=2e-3, rtol=2e-3)

    # 3) loose sanity check of z_e against the full-f32 reference (bf16 rounding only)
    _, z_e_f32 = vqvae_forward_ref_f32(x, params)
    assert jnp.allclose(z_e, z_e_f32, atol=5e-2, rtol=5e-2)

    print("KERNEL_OK")
</pallas_src>

<mosaic_0001>
module attributes {stable_mosaic.version = 11 : i64} {
  func.func @vqvae_kernel(%arg0: i32, %arg1: memref<256x128xbf16, #tpu.memory_space<vmem>>, %arg2: memref<128x512xbf16, #tpu.memory_space<vmem>>, %arg3: memref<1x512xf32, #tpu.memory_space<vmem>>, %arg4: memref<512x128xbf16, #tpu.memory_space<vmem>>, %arg5: memref<1x128xf32, #tpu.memory_space<vmem>>, %arg6: memref<128x512xbf16, #tpu.memory_space<vmem>>, %arg7: memref<1x512xf32, #tpu.memory_space<vmem>>, %arg8: memref<512x128xbf16, #tpu.memory_space<vmem>>, %arg9: memref<1x128xf32, #tpu.memory_space<vmem>>, %arg10: memref<256x128xf32, #tpu.memory_space<vmem>>, %arg11: memref<256x128xf32, #tpu.memory_space<vmem>>) attributes {dimension_semantics = [#tpu.dimension_semantics<parallel>], iteration_bounds = array<i64: 2>, scalar_prefetch = 0 : i64, scratch_operands = 0 : i64, tpu.core_type = #tpu.core_type<tc>, window_params = [{transform_indices = @transform_0, window_bounds = array<i64: 256, 128>}, {pipeline_mode = #tpu.pipeline_mode<synchronous>, transform_indices = @transform_1, window_bounds = array<i64: 128, 512>}, {pipeline_mode = #tpu.pipeline_mode<synchronous>, transform_indices = @transform_2, window_bounds = array<i64: 1, 512>}, {pipeline_mode = #tpu.pipeline_mode<synchronous>, transform_indices = @transform_3, window_bounds = array<i64: 512, 128>}, {pipeline_mode = #tpu.pipeline_mode<synchronous>, transform_indices = @transform_4, window_bounds = array<i64: 1, 128>}, {pipeline_mode = #tpu.pipeline_mode<synchronous>, transform_indices = @transform_5, window_bounds = array<i64: 128, 512>}, {pipeline_mode = #tpu.pipeline_mode<synchronous>, transform_indices = @transform_6, window_bounds = array<i64: 1, 512>}, {pipeline_mode = #tpu.pipeline_mode<synchronous>, transform_indices = @transform_7, window_bounds = array<i64: 512, 128>}, {pipeline_mode = #tpu.pipeline_mode<synchronous>, transform_indices = @transform_8, window_bounds = array<i64: 1, 128>}, {transform_indices = @transform_9, window_bounds = array<i64: 256, 128>}, {transform_indices = @transform_10, window_bounds = array<i64: 256, 128>}]} {
    %c0 = arith.constant 0 : index
    %c0_0 = arith.constant 0 : index
    %0 = vector.load %arg1[%c0, %c0_0] : memref<256x128xbf16, #tpu.memory_space<vmem>>, vector<256x128xbf16>
    %c0_1 = arith.constant 0 : index
    %c0_2 = arith.constant 0 : index
    %1 = vector.load %arg2[%c0_1, %c0_2] : memref<128x512xbf16, #tpu.memory_space<vmem>>, vector<128x512xbf16>
    %cst = arith.constant dense<0.000000e+00> : vector<256x512xf32>
    %2 = tpu.matmul %0, %1, %cst {dimension_numbers = #tpu.dot_dimension_numbers<[1], [0], [0], [1], [0, 0, 1, 1], [], []>} : vector<256x128xbf16>, vector<128x512xbf16>, vector<256x512xf32> -> vector<256x512xf32>
    %c0_3 = arith.constant 0 : index
    %c0_4 = arith.constant 0 : index
    %3 = vector.load %arg3[%c0_3, %c0_4] : memref<1x512xf32, #tpu.memory_space<vmem>>, vector<1x512xf32>
    %4 = vector.broadcast %3 : vector<1x512xf32> to vector<256x512xf32>
    %5 = arith.addf %2, %4 : vector<256x512xf32>
    %cst_5 = arith.constant 0.000000e+00 : f32
    %6 = vector.broadcast %cst_5 : f32 to vector<256x512xf32>
    %7 = arith.maximumf %5, %6 : vector<256x512xf32>
    %8 = arith.truncf %7 : vector<256x512xf32> to vector<256x512xbf16>
    %c0_6 = arith.constant 0 : index
    %c0_7 = arith.constant 0 : index
    %9 = vector.load %arg4[%c0_6, %c0_7] : memref<512x128xbf16, #tpu.memory_space<vmem>>, vector<512x128xbf16>
    %cst_8 = arith.constant dense<0.000000e+00> : vector<256x128xf32>
    %10 = tpu.matmul %8, %9, %cst_8 {dimension_numbers = #tpu.dot_dimension_numbers<[1], [0], [0], [1], [0, 0, 1, 1], [], []>} : vector<256x512xbf16>, vector<512x128xbf16>, vector<256x128xf32> -> vector<256x128xf32>
    %c0_9 = arith.constant 0 : index
    %c0_10 = arith.constant 0 : index
    %11 = vector.load %arg5[%c0_9, %c0_10] : memref<1x128xf32, #tpu.memory_space<vmem>>, vector<1x128xf32>
    %12 = vector.broadcast %11 : vector<1x128xf32> to vector<256x128xf32>
    %13 = arith.addf %10, %12 : vector<256x128xf32>
    %c0_11 = arith.constant 0 : index
    %c0_12 = arith.constant 0 : index
    %14 = vector.load %arg11[%c0_11, %c0_12] : memref<256x128xf32, #tpu.memory_space<vmem>>, vector<256x128xf32>
    tpu.vector_store %arg11[%c0_11, %c0_12], %13 {strides = array<i32>} : memref<256x128xf32, #tpu.memory_space<vmem>>, vector<256x128xf32>,
    %15 = tpu.iota {dimensions = array<i32: 1>} : vector<256x128xi32>
    %c32_i32 = arith.constant 32 : i32
    %16 = vector.broadcast %c32_i32 : i32 to vector<256x128xi32>
    %17 = arith.cmpi slt, %15, %16 : vector<256x128xi32>
    %cst_13 = arith.constant 0xFF800000 : f32
    %18 = vector.broadcast %cst_13 : f32 to vector<256x128xf32>
    %19 = arith.select %17, %13, %18 : vector<256x128xi1>, vector<256x128xf32>
    %cst_14 = arith.constant dense<0xFF800000> : vector<256xf32>
    %20 = vector.multi_reduction <maximumf>, %19, %cst_14 [1] : vector<256x128xf32> to vector<256xf32>
    %21 = vector.shape_cast %20 : vector<256xf32> to vector<256x1xf32>
    %22 = vector.broadcast %21 : vector<256x1xf32> to vector<256x128xf32>
    %23 = arith.cmpf oeq, %19, %22 : vector<256x128xf32>
    %c128_i32 = arith.constant 128 : i32
    %24 = vector.broadcast %c128_i32 : i32 to vector<256x128xi32>
    %25 = arith.select %23, %15, %24 : vector<256x128xi1>, vector<256x128xi32>
    %cst_15 = arith.constant dense<2147483647> : vector<256xi32>
    %26 = vector.multi_reduction <minsi>, %25, %cst_15 [1] : vector<256x128xi32> to vector<256xi32>
    %27 = vector.shape_cast %26 : vector<256xi32> to vector<256x1xi32>
    %28 = vector.broadcast %27 : vector<256x1xi32> to vector<256x128xi32>
    %29 = arith.cmpi eq, %15, %28 : vector<256x128xi32>
    %30 = arith.extui %29 : vector<256x128xi1> to vector<256x128xi32>
    %31 = arith.sitofp %30 : vector<256x128xi32> to vector<256x128xf32>
    %32 = arith.truncf %31 : vector<256x128xf32> to vector<256x128xbf16>
    %c0_16 = arith.constant 0 : index
    %c0_17 = arith.constant 0 : index
    %33 = vector.load %arg6[%c0_16, %c0_17] : memref<128x512xbf16, #tpu.memory_space<vmem>>, vector<128x512xbf16>
    %cst_18 = arith.constant dense<0.000000e+00> : vector<256x512xf32>
    %34 = tpu.matmul %32, %33, %cst_18 {dimension_numbers = #tpu.dot_dimension_numbers<[1], [0], [0], [1], [0, 0, 1, 1], [], []>} : vector<256x128xbf16>, vector<128x512xbf16>, vector<256x512xf32> -> vector<256x512xf32>
    %c0_19 = arith.constant 0 : index
    %c0_20 = arith.constant 0 : index
    %35 = vector.load %arg7[%c0_19, %c0_20] : memref<1x512xf32, #tpu.memory_space<vmem>>, vector<1x512xf32>
    %36 = vector.broadcast %35 : vector<1x512xf32> to vector<256x512xf32>
    %37 = arith.addf %34, %36 : vector<256x512xf32>
    %cst_21 = arith.constant 0.000000e+00 : f32
    %38 = vector.broadcast %cst_21 : f32 to vector<256x512xf32>
    %39 = arith.maximumf %37, %38 : vector<256x512xf32>
    %40 = arith.truncf %39 : vector<256x512xf32> to vector<256x512xbf16>
    %c0_22 = arith.constant 0 : index
    %c0_23 = arith.constant 0 : index
    %41 = vector.load %arg8[%c0_22, %c0_23] : memref<512x128xbf16, #tpu.memory_space<vmem>>, vector<512x128xbf16>
    %cst_24 = arith.constant dense<0.000000e+00> : vector<256x128xf32>
    %42 = tpu.matmul %40, %41, %cst_24 {dimension_numbers = #tpu.dot_dimension_numbers<[1], [0], [0], [1], [0, 0, 1, 1], [], []>} : vector<256x512xbf16>, vector<512x128xbf16>, vector<256x128xf32> -> vector<256x128xf32>
    %c0_25 = arith.constant 0 : index
    %c0_26 = arith.constant 0 : index
    %43 = vector.load %arg9[%c0_25, %c0_26] : memref<1x128xf32, #tpu.memory_space<vmem>>, vector<1x128xf32>
    %44 = vector.broadcast %43 : vector<1x128xf32> to vector<256x128xf32>
    %45 = arith.addf %42, %44 : vector<256x128xf32>
    %c0_27 = arith.constant 0 : index
    %c0_28 = arith.constant 0 : index
    %46 = vector.load %arg10[%c0_27, %c0_28] : memref<256x128xf32, #tpu.memory_space<vmem>>, vector<256x128xf32>
    tpu.vector_store %arg10[%c0_27, %c0_28], %45 {strides = array<i32>} : memref<256x128xf32, #tpu.memory_space<vmem>>, vector<256x128xf32>,
    return
  }
  func.func @transform_0(%arg0: i32) -> (i32, i32) {
    %c0_i32 = arith.constant 0 : i32
    %c0_i32_0 = arith.constant 0 : i32
    return %arg0, %c0_i32 : i32, i32
  }
  func.func @transform_1(%arg0: i32) -> (i32, i32) {
    %c0_i32 = arith.constant 0 : i32
    %c0_i32_0 = arith.constant 0 : i32
    %c0_i32_1 = arith.constant 0 : i32
    return %c0_i32, %c0_i32_0 : i32, i32
  }
  func.func @transform_2(%arg0: i32) -> (i32, i32) {
    %c0_i32 = arith.constant 0 : i32
    %c0_i32_0 = arith.constant 0 : i32
    %c0_i32_1 = arith.constant 0 : i32
    return %c0_i32, %c0_i32_0 : i32, i32
  }
  func.func @transform_3(%arg0: i32) -> (i32, i32) {
    %c0_i32 = arith.constant 0 : i32
    %c0_i32_0 = arith.constant 0 : i32
    %c0_i32_1 = arith.constant 0 : i32
    return %c0_i32, %c0_i32_0 : i32, i32
  }
  func.func @transform_4(%arg0: i32) -> (i32, i32) {
    %c0_i32 = arith.constant 0 : i32
    %c0_i32_0 = arith.constant 0 : i32
    %c0_i32_1 = arith.constant 0 : i32
    return %c0_i32, %c0_i32_0 : i32, i32
  }
  func.func @transform_5(%arg0: i32) -> (i32, i32) {
    %c0_i32 = arith.constant 0 : i32
    %c0_i32_0 = arith.constant 0 : i32
    %c0_i32_1 = arith.constant 0 : i32
    return %c0_i32, %c0_i32_0 : i32, i32
  }
  func.func @transform_6(%arg0: i32) -> (i32, i32) {
    %c0_i32 = arith.constant 0 : i32
    %c0_i32_0 = arith.constant 0 : i32
    %c0_i32_1 = arith.constant 0 : i32
    return %c0_i32, %c0_i32_0 : i32, i32
  }
  func.func @transform_7(%arg0: i32) -> (i32, i32) {
    %c0_i32 = arith.constant 0 : i32
    %c0_i32_0 = arith.constant 0 : i32
    %c0_i32_1 = arith.constant 0 : i32
    return %c0_i32, %c0_i32_0 : i32, i32
  }
  func.func @transform_8(%arg0: i32) -> (i32, i32) {
    %c0_i32 = arith.constant 0 : i32
    %c0_i32_0 = arith.constant 0 : i32
    %c0_i32_1 = arith.constant 0 : i32
    return %c0_i32, %c0_i32_0 : i32, i32
  }
  func.func @transform_9(%arg0: i32) -> (i32, i32) {
    %c0_i32 = arith.constant 0 : i32
    %c0_i32_0 = arith.constant 0 : i32
    return %arg0, %c0_i32 : i32, i32
  }
  func.func @transform_10(%arg0: i32) -> (i32, i32) {
    %c0_i32 = arith.constant 0 : i32
    %c0_i32_0 = arith.constant 0 : i32
    return %arg0, %c0_i32 : i32, i32
  }
}

</mosaic_0001>

<bundles_post_ra>
// kernel: vqvae_forward.1
= control target key start
LH: loop header
LB: loop body
LE: loop exit
PB: predicated region body
PF: predicated region fallthrough
CT: control target
= control target key end

     0   :  { %s5091_s13 = smov 0   ;;  %s6760_s0 = inlined_call_operand.vmem [shape: bf16[512,128], index: 0, kind: input, shape index: {}]   ;;  %s6761_s1 = inlined_call_operand.vmem [shape: bf16[128,512], index: 1, kind: input, shape index: {}]   ;;  %s6762_s2 = inlined_call_operand.vmem [shape: f32[1,512], index: 2, kind: input, shape index: {}]   ;;  %s6763_s3 = inlined_call_operand.vmem [shape: bf16[512,128], index: 3, kind: input, shape index: {}]   ;;  %s6764_s4 = inlined_call_operand.vmem [shape: f32[1,128], index: 4, kind: input, shape index: {}]   ;;  %s6765_s5 = inlined_call_operand.vmem [shape: bf16[128,512], index: 5, kind: input, shape index: {}]   ;;  %s6766_s6 = inlined_call_operand.vmem [shape: f32[1,512], index: 6, kind: input, shape index: {}]   ;;  %s6767_s7 = inlined_call_operand.vmem [shape: bf16[512,128], index: 7, kind: input, shape index: {}]   ;;  %s6768_s8 = inlined_call_operand.vmem [shape: f32[1,128], index: 8, kind: input, shape index: {}]   ;;  %s6769_s9 = inlined_call_operand.vmem [shape: f32[512,128], index: 9, kind: output, shape index: {0}]   ;;  %s6770_s10 = inlined_call_operand.vmem [shape: f32[512,128], index: 10, kind: output, shape index: {1}]  }
   0x1 LB: > { %s4137_s14 = sadd.s32 4294967295, %s5032_s13   ;;  %p4141_p0 = scmp.ge.s32.totalorder %s5032_s13, 1  ;;  %s5032_s13 = sphi %s5091_s13, %s21_s13  }
   0x2   : > { %p316_p1 = scmp.lt.s32.totalorder %s5032_s13, 3 }
   0x4   : > { %p317_p2 = pnand %p4141_p0, %p316_p1 }
   0x6   : > { %320 = sbr.rel (%p317_p2) target bundleno = 1569 (0x621), region = 56 }
   0xd   : > { %v4850_v0 = vld [vmem:[%s6761_s1 + $0x4] ss:$16 sps:$4 sm:$0xff]   ;;  %v4852_v1 = vld [vmem:[%s6761_s1 + $0xc] ss:$16 sps:$4 sm:$0xff]   ;;  %v6775_v2 = vmov 0   ;;  %s4142_s15 = sshll.u32 %s4137_s14, 5 }
   0xe   : > { %752 = vmatprep.mubr.bf16.mxu0 %v6775_v2  ;;  %945 = vmatprep.mubr.bf16.mxu1 %v6775_v2  ;;  %v4854_v3 = vld [vmem:[%s6761_s1] ss:$16 sps:$4 sm:$0xff]   ;;  %v4855_v4 = vld [vmem:[%s6761_s1 + $0x8] ss:$16 sps:$4 sm:$0xff]   ;;  %v4856_v5 = vld [vmem:[%s6761_s1 + $0x24] ss:$16 sps:$4 sm:$0xff]  }
   0xf   : > { %720 = vmatprep.subr.bf16.mxu0 %v4850_v0  ;;  %913 = vmatprep.subr.bf16.mxu1 %v4852_v1  ;;  %v4858_v6 = vld [vmem:[%s6761_s1 + $0x2c] ss:$16 sps:$4 sm:$0xff]   ;;  %v4860_v7 = vld [vmem:[%s6761_s1 + $0x20] ss:$16 sps:$4 sm:$0xff]   ;;  %v4861_v8 = vld [vmem:[%s6761_s1 + $0x28] ss:$16 sps:$4 sm:$0xff]  }
  0x10   : > { %721 = vmatpush1.bf16.msra.mxu0 %v4854_v3  ;;  %914 = vmatpush1.bf16.msra.mxu1 %v4855_v4  ;;  %v4862_v9 = vld [vmem:[%s6761_s1 + $0x44] ss:$16 sps:$4 sm:$0xff]   ;;  %v4864_v10 = vld [vmem:[%s6761_s1 + $0x4c] ss:$16 sps:$4 sm:$0xff]   ;;  %v4866_v11 = vld [vmem:[%s6761_s1 + $0x40] ss:$16 sps:$4 sm:$0xff]  }
  0x11   : > { %722 = vmatprep.subr.bf16.mxu0 %v4856_v5  ;;  %915 = vmatprep.subr.bf16.mxu1 %v4858_v6  ;;  %v4867_v12 = vld [vmem:[%s6761_s1 + $0x48] ss:$16 sps:$4 sm:$0xff]   ;;  %v4868_v13 = vld [vmem:[%s6761_s1 + $0x64] ss:$16 sps:$4 sm:$0xff]   ;;  %v4870_v14 = vld [vmem:[%s6761_s1 + $0x6c] ss:$16 sps:$4 sm:$0xff]  }
  0x12   : > { %p360_p3 = scmp.lt.s32.totalorder %s4142_s15, 63  ;;  %v4872_v15 = vld [vmem:[%s6761_s1 + $0x60] ss:$16 sps:$4 sm:$0xff]   ;;  %v4873_v16 = vld [vmem:[%s6761_s1 + $0x68] ss:$16 sps:$4 sm:$0xff]  }
  0x13   : > { %v4874_v17 = vld [vmem:[%s6761_s1 + $0x84] ss:$16 sps:$4 sm:$0xff]   ;;  %v4876_v18 = vld [vmem:[%s6761_s1 + $0x8c] ss:$16 sps:$4 sm:$0xff]   ;;  %v4878_v19 = vld [vmem:[%s6761_s1 + $0x80] ss:$16 sps:$4 sm:$0xff]  }
  0x14   : > { %723 = vmatpush1.bf16.msra.mxu0 %v4860_v7  ;;  %916 = vmatpush1.bf16.msra.mxu1 %v4861_v8  ;;  %s6789_s15 = smov (!%p360_p3, %s4142_s15), 63  ;;  %v4879_v20 = vld [vmem:[%s6761_s1 + $0x88] ss:$16 sps:$4 sm:$0xff]   ;;  %v4880_v21 = vld [vmem:[%s6761_s1 + $0xa4] ss:$16 sps:$4 sm:$0xff]  }
  0x15   : > { %724 = vmatprep.subr.bf16.mxu0 %v4862_v9  ;;  %917 = vmatprep.subr.bf16.mxu1 %v4864_v10  ;;  %v4882_v22 = vld [vmem:[%s6761_s1 + $0xac] ss:$16 sps:$4 sm:$0xff]   ;;  %s4143_s14 = sshll.u32 %s6789_s15, 2  ;;  %v4884_v23 = vld [vmem:[%s6761_s1 + $0xa0] ss:$16 sps:$4 sm:$0xff]   ;;  %s4145_s28 = sshll.u32 %s6789_s15, 3 }
  0x16   : > { %v4885_v24 = vld [vmem:[%s6761_s1 + $0xa8] ss:$16 sps:$4 sm:$0xff]   ;;  %v4886_v25 = vld [vmem:[%s6761_s1 + $0xc4] ss:$16 sps:$4 sm:$0xff]   ;;  %s5182_s12 = scalar_lea.vmem %s6760_s0, %s4143_s14  ;;  %v4888_v26 = vld [vmem:[%s6761_s1 + $0xcc] ss:$16 sps:$4 sm:$0xff]   ;;  %s5518_s11 = scalar_lea.vmem %s6770_s10, %s4145_s28 }
  0x17   : > { %v4890_v27 = vld [vmem:[%s6761_s1 + $0xc0] ss:$16 sps:$4 sm:$0xff]   ;;  %v4891_v28 = vld [vmem:[%s6761_s1 + $0xc8] ss:$16 sps:$4 sm:$0xff]   ;;  %v4892_v29 = vld [vmem:[%s6761_s1 + $0xe4] ss:$16 sps:$4 sm:$0xff]   ;;  %s6692_s30 = scalar_lea.vmem %s6769_s9, %s4145_s28 }
  0x18   : > { %725 = vmatpush1.bf16.msra.mxu0 %v4866_v11  ;;  %918 = vmatpush1.bf16.msra.mxu1 %v4867_v12  ;;  %v4894_v30 = vld [vmem:[%s6761_s1 + $0xec] ss:$16 sps:$4 sm:$0xff]   ;;  %v4896_v31 = vld [vmem:[%s6761_s1 + $0xe0] ss:$16 sps:$4 sm:$0xff]   ;;  %v4897_v32 = vld [vmem:[%s6761_s1 + $0xe8] ss:$16 sps:$4 sm:$0xff]  }
  0x19   : > { %726 = vmatprep.subr.bf16.mxu0 %v4868_v13  ;;  %919 = vmatprep.subr.bf16.mxu1 %v4870_v14  ;;  %v4898_v33 = vld [vmem:[%s5182_s12] sm:$0xff]   ;;  %v4912_v38 = vld [vmem:[%s6763_s3 + $0x48] sm:$0xff]   ;;  %v4916_v43 = vld [vmem:[%s6763_s3 + $0x50] sm:$0xff]  }
  0x1a   : > { %v4908_v34 = vld [vmem:[%s6763_s3 + $0x40] sm:$0xff]   ;;  %v4899_v39 = vld [vmem:[%s5182_s12 + $0x8] sm:$0xff]   ;;  %v4917_v44 = vld [vmem:[%s6763_s3 + $0x10] sm:$0xff]  }
  0x1b   : > { %v4909_v35 = vld [vmem:[%s6763_s3] sm:$0xff]   ;;  %v4913_v40 = vld [vmem:[%s6763_s3 + $0x8] sm:$0xff]   ;;  %v4918_v45 = vld [vmem:[%s6763_s3 + $0xd0] sm:$0xff]  }
  0x1c   : > { %727 = vmatpush1.bf16.msra.mxu0 %v4872_v15  ;;  %920 = vmatpush1.bf16.msra.mxu1 %v4873_v16  ;;  %v4910_v36 = vld [vmem:[%s6763_s3 + $0xc0] sm:$0xff]   ;;  %v4914_v41 = vld [vmem:[%s6763_s3 + $0xc8] sm:$0xff]   ;;  %v4919_v46 = vld [vmem:[%s6763_s3 + $0x90] sm:$0xff]  }
  0x1d   : > { %728 = vmatprep.subr.bf16.mxu0 %v4874_v17  ;;  %921 = vmatprep.subr.bf16.mxu1 %v4876_v18  ;;  %v4911_v37 = vld [vmem:[%s6763_s3 + $0x80] sm:$0xff]   ;;  %v4915_v42 = vld [vmem:[%s6763_s3 + $0x88] sm:$0xff]   ;;  %v4920_v47 = vld [vmem:[%s6763_s3 + $0x58] sm:$0xff]   ;;  %v444_v18 = vlaneseq }
  0x1e   : > { %v4900_v48 = vld [vmem:[%s5182_s12 + $0x10] sm:$0xff]   ;;  %v4921_v49 = vld [vmem:[%s6763_s3 + $0x18] sm:$0xff]   ;;  %v4926_v52 = vld [vmem:[%s6763_s3 + $0x60] sm:$0xff]  }
  0x1f   : > { %v4922_v50 = vld [vmem:[%s6763_s3 + $0xd8] sm:$0xff]   ;;  %v4927_v53 = vld [vmem:[%s6763_s3 + $0x20] sm:$0xff]   ;;  %v4932_v57 = vld [vmem:[%s6763_s3 + $0x68] sm:$0xff]  }
  0x20   : > { %729 = vmatpush1.bf16.msra.mxu0 %v4878_v19  ;;  %922 = vmatpush1.bf16.msra.mxu1 %v4879_v20  ;;  %v4923_v51 = vld [vmem:[%s6763_s3 + $0x98] sm:$0xff]   ;;  %v4928_v54 = vld [vmem:[%s6763_s3 + $0xe0] sm:$0xff]   ;;  %v4933_v58 = vld [vmem:[%s6763_s3 + $0x28] sm:$0xff]   ;;  %v5348_v19 = vshrl.u32 %v444_v18, 7 }
  0x21   : > { %730 = vmatprep.subr.bf16.mxu0 %v4880_v21  ;;  %923 = vmatprep.subr.bf16.mxu1 %v4882_v22  ;;  %v4929_v55 = vld [vmem:[%s6763_s3 + $0xa0] sm:$0xff]   ;;  %v4901_v56 = vld [vmem:[%s5182_s12 + $0x18] sm:$0xff]   ;;  %v4934_v59 = vld [vmem:[%s6763_s3 + $0xe8] sm:$0xff]  }
  0x22   : > { %v4935_v60 = vld [vmem:[%s6763_s3 + $0xa8] sm:$0xff]   ;;  %v4902_v61 = vld [vmem:[%s5182_s12 + $0x20] sm:$0xff]   ;;  %v4938_v62 = vld [vmem:[%s6763_s3 + $0x70] sm:$0xff]   ;;  %6779 = vst [vmem:[#allocation2_spill] sm:$0xff] %v5348_v19  ;;  %v6774_v20 = vsub.s32 0, %v5348_v19  ;;  %v6773_v21 = vsub.s32 2, %v5348_v19 }
  0x23   : > { %v4939_v63 = vld [vmem:[%s6763_s3 + $0x30] sm:$0xff]   ;;  %v4942_v3 = vld [vmem:[%s6763_s3 + $0x78] sm:$0xff]   ;;  %v4903_v6 = vld [vmem:[%s5182_s12 + $0x28] sm:$0xff]  }
  0x24   : > { %731 = vmatpush1.bf16.msra.mxu0 %v4884_v23  ;;  %924 = vmatpush1.bf16.msra.mxu1 %v4885_v24  ;;  %v4940_v0 = vld [vmem:[%s6763_s3 + $0xf0] sm:$0xff]   ;;  %v4943_v4 = vld [vmem:[%s6763_s3 + $0x38] sm:$0xff]   ;;  %v4906_v10 = vld [vmem:[%s5182_s12 + $0x40] sm:$0xff]   ;;  %v6772_v23 = vsub.s32 1, %v5348_v19  ;;  %v6771_v24 = vsub.s32 3, %v5348_v19 }
  0x25   : > { %732 = vmatprep.subr.bf16.mxu0 %v4886_v25  ;;  %925 = vmatprep.subr.bf16.mxu1 %v4888_v26  ;;  %v4941_v1 = vld [vmem:[%s6763_s3 + $0xb0] sm:$0xff]   ;;  %v4944_v5 = vld [vmem:[%s6763_s3 + $0xf8] sm:$0xff]   ;;  %v4907_v11 = vld [vmem:[%s5182_s12 + $0x48] sm:$0xff]  }
  0x26   : > { %v4945_v7 = vld [vmem:[%s6763_s3 + $0xb8] sm:$0xff]   ;;  %v4904_v8 = vld [vmem:[%s5182_s12 + $0x30] sm:$0xff]   ;;  %v4930_v14 = vld [vmem:[%s5182_s12 + $0x60] sm:$0xff]  }
  0x27   : > { %v4905_v9 = vld [vmem:[%s5182_s12 + $0x38] sm:$0xff]   ;;  %v4924_v12 = vld [vmem:[%s5182_s12 + $0x50] sm:$0xff]   ;;  %v4931_v15 = vld [vmem:[%s5182_s12 + $0x68] sm:$0xff]  }
  0x28   : > { %733 = vmatpush1.bf16.msra.mxu0 %v4890_v27  ;;  %926 = vmatpush1.bf16.msra.mxu1 %v4891_v28  ;;  %v4925_v13 = vld [vmem:[%s5182_s12 + $0x58] sm:$0xff]   ;;  %v4936_v16 = vld [vmem:[%s5182_s12 + $0x70] sm:$0xff]   ;;  %v442_v22 = vld [vmem:[%s6762_s2] sm:$0xf] }
  0x29   : > { %734 = vmatprep.subr.bf16.mxu0 %v4892_v29  ;;  %927 = vmatprep.subr.bf16.mxu1 %v4894_v30  ;;  %v4937_v17 = vld [vmem:[%s5182_s12 + $0x78] sm:$0xff]   ;;  %v5359_v25 = vrot.slane %v442_v22, %v6774_v20  ;;  %v5363_v26 = vrot.slane %v442_v22, %v6773_v21  ;;  %v5367_v27 = vrot.slane %v442_v22, %v6772_v23  ;;  %v4952_v23 = vld [vmem:[%s6765_s5 + $0x20] ss:$16 sps:$4 sm:$0xff]  }
  0x2a   : > { %v5371_v28 = vrot.slane %v442_v22, %v6771_v24  ;;  %v4957_v24 = vld [vmem:[%s6765_s5 + $0x2c] ss:$16 sps:$4 sm:$0xff]   ;;  %v4955_v21 = vld [vmem:[%s6765_s5 + $0x28] ss:$16 sps:$4 sm:$0xff]  }
  0x2c   : > { %735 = vmatpush1.bf16.msra.mxu0 %v4896_v31  ;;  %928 = vmatpush1.bf16.msra.mxu1 %v4897_v32 }
  0x2d   : > { %4392 = vmatprep.subr.bf16.mxu0 %v4908_v34  ;;  %4504 = vmatprep.subr.bf16.mxu1 %v4910_v36 }
  0x2f   : > { %753 = vmatmul.mubr.bf16.vlgmr.msra.gmra.mrb[0].mxu0 %v4898_v33  ;;  %946 = vmatmul.mubr.bf16.vlgmr.msra.gmra.mrb[0].mxu1 %v4898_v33 }
  0x30   : > { %762 = vmatprep.mubr.bf16.mxu0 %v6775_v2  ;;  %955 = vmatprep.mubr.bf16.mxu1 %v6775_v2 }
  0x31   : > { %4393 = vmatpush3.bf16.msra.mxu0 %v4909_v35  ;;  %4505 = vmatpush3.bf16.msra.mxu1 %v4911_v37 }
  0x32   : > { %4394 = vmatprep.subr.bf16.mxu0 %v4912_v38  ;;  %4506 = vmatprep.subr.bf16.mxu1 %v4914_v41 }
  0x35   : > { %4395 = vmatpush3.bf16.msra.mxu0 %v4913_v40  ;;  %4507 = vmatpush3.bf16.msra.mxu1 %v4915_v42 }
  0x36   : > { %4396 = vmatprep.subr.bf16.mxu0 %v4916_v43  ;;  %4508 = vmatprep.subr.bf16.mxu1 %v4918_v45 }
  0x37   : > { %763 = vmatmul.mubr.bf16.gmra.mrb[4].mxu0 %v4899_v39  ;;  %956 = vmatmul.mubr.bf16.gmra.mrb[4].mxu1 %v4899_v39 }
  0x38   : > { %772 = vmatprep.mubr.bf16.mxu0 %v6775_v2  ;;  %965 = vmatprep.mubr.bf16.mxu1 %v6775_v2 }
  0x39   : > { %4397 = vmatpush3.bf16.msra.mxu0 %v4917_v44  ;;  %4509 = vmatpush3.bf16.msra.mxu1 %v4919_v46 }
  0x3a   : > { %4398 = vmatprep.subr.bf16.mxu0 %v4920_v47  ;;  %4510 = vmatprep.subr.bf16.mxu1 %v4922_v50 }
  0x3d   : > { %4399 = vmatpush3.bf16.msra.mxu0 %v4921_v49  ;;  %4511 = vmatpush3.bf16.msra.mxu1 %v4923_v51 }
  0x3e   : > { %4400 = vmatprep.subr.bf16.mxu0 %v4926_v52  ;;  %4512 = vmatprep.subr.bf16.mxu1 %v4928_v54 }
  0x3f   : > { %773 = vmatmul.mubr.bf16.gmra.mrb[8].mxu0 %v4900_v48  ;;  %966 = vmatmul.mubr.bf16.gmra.mrb[8].mxu1 %v4900_v48 }
  0x40   : > { %782 = vmatprep.mubr.bf16.mxu0 %v6775_v2  ;;  %975 = vmatprep.mubr.bf16.mxu1 %v6775_v2 }
  0x41   : > { %4401 = vmatpush3.bf16.msra.mxu0 %v4927_v53  ;;  %4513 = vmatpush3.bf16.msra.mxu1 %v4929_v55 }
  0x42   : > { %4402 = vmatprep.subr.bf16.mxu0 %v4932_v57  ;;  %4514 = vmatprep.subr.bf16.mxu1 %v4934_v59 }
  0x45   : > { %4403 = vmatpush3.bf16.msra.mxu0 %v4933_v58  ;;  %4515 = vmatpush3.bf16.msra.mxu1 %v4935_v60 }
  0x46   : > { %4404 = vmatprep.subr.bf16.mxu0 %v4938_v62  ;;  %4516 = vmatprep.subr.bf16.mxu1 %v4940_v0 }
  0x47   : > { %783 = vmatmul.mubr.bf16.gmra.mrb[12].mxu0 %v4901_v56  ;;  %976 = vmatmul.mubr.bf16.gmra.mrb[12].mxu1 %v4901_v56 }
  0x48   : > { %792 = vmatprep.mubr.bf16.mxu0 %v6775_v2  ;;  %985 = vmatprep.mubr.bf16.mxu1 %v6775_v2 }
  0x49   : > { %4405 = vmatpush3.bf16.msra.mxu0 %v4939_v63  ;;  %4517 = vmatpush3.bf16.msra.mxu1 %v4941_v1 }
  0x4a   : > { %4406 = vmatprep.subr.bf16.mxu0 %v4942_v3  ;;  %4518 = vmatprep.subr.bf16.mxu1 %v4944_v5 }
  0x4d   : > { %4407 = vmatpush3.bf16.msra.mxu0 %v4943_v4  ;;  %4519 = vmatpush3.bf16.msra.mxu1 %v4945_v7 }
  0x4f   : > { %793 = vmatmul.mubr.bf16.gmra.mrb[16].mxu0 %v4902_v61  ;;  %986 = vmatmul.mubr.bf16.gmra.mrb[16].mxu1 %v4902_v61 }
  0x50   : > { %802 = vmatprep.mubr.bf16.mxu0 %v6775_v2  ;;  %995 = vmatprep.mubr.bf16.mxu1 %v6775_v2 }
  0x57   : > { %803 = vmatmul.mubr.bf16.gmra.mrb[20].mxu0 %v4903_v6  ;;  %996 = vmatmul.mubr.bf16.gmra.mrb[20].mxu1 %v4903_v6 }
  0x58   : > { %812 = vmatprep.mubr.bf16.mxu0 %v6775_v2  ;;  %1005 = vmatprep.mubr.bf16.mxu1 %v6775_v2 }
  0x5f   : > { %813 = vmatmul.mubr.bf16.gmra.mrb[24].mxu0 %v4904_v8  ;;  %1006 = vmatmul.mubr.bf16.gmra.mrb[24].mxu1 %v4904_v8 }
  0x60   : > { %822 = vmatprep.mubr.bf16.mxu0 %v6775_v2  ;;  %1015 = vmatprep.mubr.bf16.mxu1 %v6775_v2 }
  0x67   : > { %823 = vmatmul.mubr.bf16.gmra.mrb[28].mxu0 %v4905_v9  ;;  %1016 = vmatmul.mubr.bf16.gmra.mrb[28].mxu1 %v4905_v9 }
  0x68   : > { %832 = vmatprep.mubr.bf16.mxu0 %v6775_v2  ;;  %1025 = vmatprep.mubr.bf16.mxu1 %v6775_v2 }
  0x6f   : > { %833 = vmatmul.mubr.bf16.gmra.mrb[32].mxu0 %v4906_v10  ;;  %1026 = vmatmul.mubr.bf16.gmra.mrb[32].mxu1 %v4906_v10 }
  0x70   : > { %842 = vmatprep.mubr.bf16.mxu0 %v6775_v2  ;;  %1035 = vmatprep.mubr.bf16.mxu1 %v6775_v2 }
  0x77   : > { %843 = vmatmul.mubr.bf16.gmra.mrb[36].mxu0 %v4907_v11  ;;  %1036 = vmatmul.mubr.bf16.gmra.mrb[36].mxu1 %v4907_v11 }
  0x78   : > { %852 = vmatprep.mubr.bf16.mxu0 %v6775_v2  ;;  %1045 = vmatprep.mubr.bf16.mxu1 %v6775_v2 }
  0x7f   : > { %853 = vmatmul.mubr.bf16.gmra.mrb[40].mxu0 %v4924_v12  ;;  %1046 = vmatmul.mubr.bf16.gmra.mrb[40].mxu1 %v4924_v12 }
  0x80   : > { %862 = vmatprep.mubr.bf16.mxu0 %v6775_v2  ;;  %1055 = vmatprep.mubr.bf16.mxu1 %v6775_v2 }
  0x87   : > { %863 = vmatmul.mubr.bf16.gmra.mrb[44].mxu0 %v4925_v13  ;;  %1056 = vmatmul.mubr.bf16.gmra.mrb[44].mxu1 %v4925_v13 }
  0x88   : > { %872 = vmatprep.mubr.bf16.mxu0 %v6775_v2  ;;  %1065 = vmatprep.mubr.bf16.mxu1 %v6775_v2 }
  0x8f   : > { %873 = vmatmul.mubr.bf16.gmra.mrb[48].mxu0 %v4930_v14  ;;  %1066 = vmatmul.mubr.bf16.gmra.mrb[48].mxu1 %v4930_v14 }
  0x90   : > { %882 = vmatprep.mubr.bf16.mxu0 %v6775_v2  ;;  %1075 = vmatprep.mubr.bf16.mxu1 %v6775_v2 }
  0x97   : > { %883 = vmatmul.mubr.bf16.gmra.mrb[52].mxu0 %v4931_v15  ;;  %1076 = vmatmul.mubr.bf16.gmra.mrb[52].mxu1 %v4931_v15 }
  0x98   : > { %892 = vmatprep.mubr.bf16.mxu0 %v6775_v2  ;;  %1085 = vmatprep.mubr.bf16.mxu1 %v6775_v2 }
  0x9f   : > { %893 = vmatmul.mubr.bf16.gmra.mrb[56].mxu0 %v4936_v16  ;;  %1086 = vmatmul.mubr.bf16.gmra.mrb[56].mxu1 %v4936_v16 }
  0xa0   : > { %902 = vmatprep.mubr.bf16.mxu0 %v6775_v2  ;;  %1095 = vmatprep.mubr.bf16.mxu1 %v6775_v2 }
  0xa7   : > { %903 = vmatmul.mubr.bf16.gmra.mrb[60].mxu0 %v4937_v17  ;;  %1096 = vmatmul.mubr.bf16.gmra.mrb[60].mxu1 %v4937_v17 }
 0x102   : > { %v754_v29 = vpop.f32.mrb[0].mxu0  ;;  %v947_v30 = vpop.f32.mrb[0].mxu1 }
 0x103   : > { %v755_v31 = vadd.f32 %v754_v29, %v5359_v25  ;;  %v948_v32 = vadd.f32 %v947_v30, %v5363_v26  ;;  %v756_v33 = vpop.f32.mrb[1].mxu0  ;;  %v949_v34 = vpop.f32.mrb[1].mxu1 }
 0x104   : > { %v757_v35 = vadd.f32 %v756_v33, %v5367_v27  ;;  %v950_v36 = vadd.f32 %v949_v34, %v5371_v28  ;;  %v758_v37 = vpop.f32.mrb[2].mxu0  ;;  %v951_v38 = vpop.f32.mrb[2].mxu1 }
 0x105   : > { %v1108_v39 = vmax.f32 %v948_v32, 0.0  ;;  %v759_v40 = vadd.f32 %v758_v37, %v5359_v25  ;;  %v952_v41 = vadd.f32 %v951_v38, %v5363_v26  ;;  %v760_v42 = vpop.f32.mrb[3].mxu0  ;;  %v953_v43 = vpop.f32.mrb[3].mxu1  ;;  %v1106_v47 = vmax.f32 %v755_v31, 0.0 }
 0x106   : > { %v1109_v44 = vmax.f32 %v950_v36, 0.0  ;;  %v761_v45 = vadd.f32 %v760_v42, %v5367_v27  ;;  %v954_v46 = vadd.f32 %v953_v43, %v5371_v28  ;;  %v1107_v50 = vmax.f32 %v757_v35, 0.0 }
 0x107   : > { %v1110_v48 = vmax.f32 %v759_v40, 0.0  ;;  %v1112_v49 = vmax.f32 %v952_v41, 0.0 }
 0x108   : > { %v1111_v51 = vmax.f32 %v761_v45, 0.0  ;;  %v1113_v52 = vmax.f32 %v954_v46, 0.0 }
 0x109   : > { %v1234_v53 = vpack.c.bf16 %v1110_v48, %v1106_v47  ;;  %v1236_v54 = vpack.c.bf16 %v1112_v49, %v1108_v39 }
 0x10a   : > { %v1235_v55 = vpack.c.bf16 %v1111_v51, %v1107_v50  ;;  %v1237_v56 = vpack.c.bf16 %v1113_v52, %v1109_v44  ;;  %v764_v57 = vpop.f32.mrb[4].mxu0  ;;  %v957_v58 = vpop.f32.mrb[4].mxu1 }
 0x10b   : > { %v765_v59 = vadd.f32 %v764_v57, %v5359_v25  ;;  %v958_v60 = vadd.f32 %v957_v58, %v5363_v26  ;;  %v766_v61 = vpop.f32.mrb[5].mxu0  ;;  %v959_v62 = vpop.f32.mrb[5].mxu1 }
 0x10c   : > { %v767_v63 = vadd.f32 %v766_v61, %v5367_v27  ;;  %v960_v0 = vadd.f32 %v959_v62, %v5371_v28  ;;  %v768_v1 = vpop.f32.mrb[6].mxu0  ;;  %v961_v3 = vpop.f32.mrb[6].mxu1  ;;  %1593 = vmatprep.mubr.bf16.mxu0 %v1235_v55  ;;  %1754 = vmatprep.mubr.bf16.mxu1 %v1237_v56 }
 0x10d   : > { %v1116_v4 = vmax.f32 %v958_v60, 0.0  ;;  %v769_v5 = vadd.f32 %v768_v1, %v5359_v25  ;;  %v962_v6 = vadd.f32 %v961_v3, %v5363_v26  ;;  %v770_v7 = vpop.f32.mrb[7].mxu0  ;;  %v963_v8 = vpop.f32.mrb[7].mxu1  ;;  %1594 = vmatmul.mubr.bf16.vlgmr.msra.gmra.mrb[64].mxu0 %v1234_v53  ;;  %1755 = vmatmul.mubr.bf16.vlgmr.msra.gmra.mrb[64].mxu1 %v1236_v54  ;;  %v1114_v12 = vmax.f32 %v765_v59, 0.0 }
 0x10e   : > { %v1117_v9 = vmax.f32 %v960_v0, 0.0  ;;  %v771_v10 = vadd.f32 %v770_v7, %v5367_v27  ;;  %v964_v11 = vadd.f32 %v963_v8, %v5371_v28  ;;  %v1115_v15 = vmax.f32 %v767_v63, 0.0 }
 0x10f   : > { %v1118_v13 = vmax.f32 %v769_v5, 0.0  ;;  %v1120_v14 = vmax.f32 %v962_v6, 0.0 }
 0x110   : > { %v1119_v16 = vmax.f32 %v771_v10, 0.0  ;;  %v1121_v17 = vmax.f32 %v964_v11, 0.0 }
 0x111   : > { %v1238_v22 = vpack.c.bf16 %v1118_v13, %v1114_v12  ;;  %v1240_v29 = vpack.c.bf16 %v1120_v14, %v1116_v4 }
 0x112   : > { %v1239_v30 = vpack.c.bf16 %v1119_v16, %v1115_v15  ;;  %v1241_v31 = vpack.c.bf16 %v1121_v17, %v1117_v9  ;;  %v774_v32 = vpop.f32.mrb[8].mxu0  ;;  %v967_v33 = vpop.f32.mrb[8].mxu1 }
 0x113   : > { %v775_v34 = vadd.f32 %v774_v32, %v5359_v25  ;;  %v968_v35 = vadd.f32 %v967_v33, %v5363_v26  ;;  %v776_v36 = vpop.f32.mrb[9].mxu0  ;;  %v969_v37 = vpop.f32.mrb[9].mxu1 }
 0x114   : > { %v777_v38 = vadd.f32 %v776_v36, %v5367_v27  ;;  %v970_v39 = vadd.f32 %v969_v37, %v5371_v28  ;;  %v778_v40 = vpop.f32.mrb[10].mxu0  ;;  %v971_v41 = vpop.f32.mrb[10].mxu1  ;;  %1601 = vmatprep.mubr.bf16.mxu0 %v1239_v30  ;;  %1762 = vmatprep.mubr.bf16.mxu1 %v1241_v31 }
 0x115   : > { %v1122_v42 = vmax.f32 %v775_v34, 0.0  ;;  %v1124_v43 = vmax.f32 %v968_v35, 0.0  ;;  %v779_v44 = vadd.f32 %v778_v40, %v5359_v25  ;;  %v972_v45 = vadd.f32 %v971_v41, %v5363_v26  ;;  %v780_v46 = vpop.f32.mrb[11].mxu0  ;;  %v973_v47 = vpop.f32.mrb[11].mxu1  ;;  %1602 = vmatmul.mubr.bf16.gmra.mrb[68].mxu0 %v1238_v22  ;;  %1763 = vmatmul.mubr.bf16.gmra.mrb[68].mxu1 %v1240_v29 }
 0x116   : > { %v1123_v48 = vmax.f32 %v777_v38, 0.0  ;;  %v1125_v49 = vmax.f32 %v970_v39, 0.0  ;;  %v781_v50 = vadd.f32 %v780_v46, %v5367_v27  ;;  %v974_v51 = vadd.f32 %v973_v47, %v5371_v28 }
 0x117   : > { %v1126_v52 = vmax.f32 %v779_v44, 0.0  ;;  %v1128_v53 = vmax.f32 %v972_v45, 0.0 }
 0x118   : > { %v1127_v54 = vmax.f32 %v781_v50, 0.0  ;;  %v1129_v55 = vmax.f32 %v974_v51, 0.0 }
 0x119   : > { %v1242_v56 = vpack.c.bf16 %v1126_v52, %v1122_v42  ;;  %v1244_v57 = vpack.c.bf16 %v1128_v53, %v1124_v43 }
 0x11a   : > { %v1243_v58 = vpack.c.bf16 %v1127_v54, %v1123_v48  ;;  %v1245_v59 = vpack.c.bf16 %v1129_v55, %v1125_v49  ;;  %v784_v60 = vpop.f32.mrb[12].mxu0  ;;  %v977_v61 = vpop.f32.mrb[12].mxu1 }
 0x11b   : > { %v785_v62 = vadd.f32 %v784_v60, %v5359_v25  ;;  %v978_v63 = vadd.f32 %v977_v61, %v5363_v26  ;;  %v786_v0 = vpop.f32.mrb[13].mxu0  ;;  %v979_v1 = vpop.f32.mrb[13].mxu1 }
 0x11c   : > { %v787_v3 = vadd.f32 %v786_v0, %v5367_v27  ;;  %v980_v4 = vadd.f32 %v979_v1, %v5371_v28  ;;  %v788_v5 = vpop.f32.mrb[14].mxu0  ;;  %v981_v6 = vpop.f32.mrb[14].mxu1  ;;  %1609 = vmatprep.mubr.bf16.mxu0 %v1243_v58  ;;  %1770 = vmatprep.mubr.bf16.mxu1 %v1245_v59 }
 0x11d   : > { %v1130_v7 = vmax.f32 %v785_v62, 0.0  ;;  %v1132_v8 = vmax.f32 %v978_v63, 0.0  ;;  %v789_v9 = vadd.f32 %v788_v5, %v5359_v25  ;;  %v982_v10 = vadd.f32 %v981_v6, %v5363_v26  ;;  %v790_v11 = vpop.f32.mrb[15].mxu0  ;;  %v983_v12 = vpop.f32.mrb[15].mxu1  ;;  %1610 = vmatmul.mubr.bf16.gmra.mrb[72].mxu0 %v1242_v56  ;;  %1771 = vmatmul.mubr.bf16.gmra.mrb[72].mxu1 %v1244_v57 }
 0x11e   : > { %v1131_v13 = vmax.f32 %v787_v3, 0.0  ;;  %v1133_v14 = vmax.f32 %v980_v4, 0.0  ;;  %v791_v15 = vadd.f32 %v790_v11, %v5367_v27  ;;  %v984_v16 = vadd.f32 %v983_v12, %v5371_v28 }
 0x11f   : > { %v1134_v17 = vmax.f32 %v789_v9, 0.0  ;;  %v1136_v22 = vmax.f32 %v982_v10, 0.0 }
 0x120   : > { %v1135_v29 = vmax.f32 %v791_v15, 0.0  ;;  %v1137_v30 = vmax.f32 %v984_v16, 0.0 }
 0x121   : > { %v1246_v31 = vpack.c.bf16 %v1134_v17, %v1130_v7  ;;  %v1248_v32 = vpack.c.bf16 %v1136_v22, %v1132_v8 }
 0x122   : > { %v1247_v33 = vpack.c.bf16 %v1135_v29, %v1131_v13  ;;  %v1249_v34 = vpack.c.bf16 %v1137_v30, %v1133_v14  ;;  %v794_v35 = vpop.f32.mrb[16].mxu0  ;;  %v987_v36 = vpop.f32.mrb[16].mxu1 }
 0x123   : > { %v795_v37 = vadd.f32 %v794_v35, %v5359_v25  ;;  %v988_v38 = vadd.f32 %v987_v36, %v5363_v26  ;;  %v796_v39 = vpop.f32.mrb[17].mxu0  ;;  %v989_v40 = vpop.f32.mrb[17].mxu1 }
 0x124   : > { %v797_v41 = vadd.f32 %v796_v39, %v5367_v27  ;;  %v990_v42 = vadd.f32 %v989_v40, %v5371_v28  ;;  %v798_v43 = vpop.f32.mrb[18].mxu0  ;;  %v991_v44 = vpop.f32.mrb[18].mxu1  ;;  %1617 = vmatprep.mubr.bf16.mxu0 %v1247_v33  ;;  %1778 = vmatprep.mubr.bf16.mxu1 %v1249_v34 }
 0x125   : > { %v1138_v45 = vmax.f32 %v795_v37, 0.0  ;;  %v1140_v46 = vmax.f32 %v988_v38, 0.0  ;;  %v799_v47 = vadd.f32 %v798_v43, %v5359_v25  ;;  %v992_v48 = vadd.f32 %v991_v44, %v5363_v26  ;;  %v800_v49 = vpop.f32.mrb[19].mxu0  ;;  %v993_v50 = vpop.f32.mrb[19].mxu1  ;;  %1618 = vmatmul.mubr.bf16.gmra.mrb[76].mxu0 %v1246_v31  ;;  %1779 = vmatmul.mubr.bf16.gmra.mrb[76].mxu1 %v1248_v32 }
 0x126   : > { %v1139_v51 = vmax.f32 %v797_v41, 0.0  ;;  %v1141_v52 = vmax.f32 %v990_v42, 0.0  ;;  %v801_v53 = vadd.f32 %v800_v49, %v5367_v27  ;;  %v994_v54 = vadd.f32 %v993_v50, %v5371_v28 }
 0x127   : > { %v1142_v55 = vmax.f32 %v799_v47, 0.0  ;;  %v1144_v56 = vmax.f32 %v992_v48, 0.0 }
 0x128   : > { %v1143_v57 = vmax.f32 %v801_v53, 0.0  ;;  %v1145_v58 = vmax.f32 %v994_v54, 0.0 }
 0x129   : > { %v1250_v59 = vpack.c.bf16 %v1142_v55, %v1138_v45  ;;  %v1252_v60 = vpack.c.bf16 %v1144_v56, %v1140_v46 }
 0x12a   : > { %v1251_v61 = vpack.c.bf16 %v1143_v57, %v1139_v51  ;;  %v1253_v62 = vpack.c.bf16 %v1145_v58, %v1141_v52  ;;  %v804_v63 = vpop.f32.mrb[20].mxu0  ;;  %v997_v0 = vpop.f32.mrb[20].mxu1 }
 0x12b   : > { %v805_v1 = vadd.f32 %v804_v63, %v5359_v25  ;;  %v998_v3 = vadd.f32 %v997_v0, %v5363_v26  ;;  %v806_v4 = vpop.f32.mrb[21].mxu0  ;;  %v999_v5 = vpop.f32.mrb[21].mxu1 }
 0x12c   : > { %v807_v6 = vadd.f32 %v806_v4, %v5367_v27  ;;  %v1000_v7 = vadd.f32 %v999_v5, %v5371_v28  ;;  %v808_v8 = vpop.f32.mrb[22].mxu0  ;;  %v1001_v9 = vpop.f32.mrb[22].mxu1  ;;  %1625 = vmatprep.mubr.bf16.mxu0 %v1251_v61  ;;  %1786 = vmatprep.mubr.bf16.mxu1 %v1253_v62 }
 0x12d   : > { %v1146_v10 = vmax.f32 %v805_v1, 0.0  ;;  %v1148_v11 = vmax.f32 %v998_v3, 0.0  ;;  %v809_v12 = vadd.f32 %v808_v8, %v5359_v25  ;;  %v1002_v13 = vadd.f32 %v1001_v9, %v5363_v26  ;;  %v810_v14 = vpop.f32.mrb[23].mxu0  ;;  %v1003_v15 = vpop.f32.mrb[23].mxu1  ;;  %1626 = vmatmul.mubr.bf16.gmra.mrb[80].mxu0 %v1250_v59  ;;  %1787 = vmatmul.mubr.bf16.gmra.mrb[80].mxu1 %v1252_v60 }
 0x12e   : > { %v1147_v16 = vmax.f32 %v807_v6, 0.0  ;;  %v1149_v17 = vmax.f32 %v1000_v7, 0.0  ;;  %v811_v22 = vadd.f32 %v810_v14, %v5367_v27  ;;  %v1004_v29 = vadd.f32 %v1003_v15, %v5371_v28 }
 0x12f   : > { %v1150_v30 = vmax.f32 %v809_v12, 0.0  ;;  %v1152_v31 = vmax.f32 %v1002_v13, 0.0 }
 0x130   : > { %v1151_v32 = vmax.f32 %v811_v22, 0.0  ;;  %v1153_v33 = vmax.f32 %v1004_v29, 0.0 }
 0x131   : > { %v1254_v34 = vpack.c.bf16 %v1150_v30, %v1146_v10  ;;  %v1256_v35 = vpack.c.bf16 %v1152_v31, %v1148_v11 }
 0x132   : > { %v1255_v36 = vpack.c.bf16 %v1151_v32, %v1147_v16  ;;  %v1257_v37 = vpack.c.bf16 %v1153_v33, %v1149_v17  ;;  %v814_v38 = vpop.f32.mrb[24].mxu0  ;;  %v1007_v39 = vpop.f32.mrb[24].mxu1 }
 0x133   : > { %v815_v40 = vadd.f32 %v814_v38, %v5359_v25  ;;  %v816_v41 = vpop.f32.mrb[25].mxu0  ;;  %v1008_v42 = vadd.f32 %v1007_v39, %v5363_v26  ;;  %v1009_v43 = vpop.f32.mrb[25].mxu1 }
 0x134   : > { %v817_v44 = vadd.f32 %v816_v41, %v5367_v27  ;;  %v818_v45 = vpop.f32.mrb[26].mxu0  ;;  %1633 = vmatprep.mubr.bf16.mxu0 %v1255_v36  ;;  %1794 = vmatprep.mubr.bf16.mxu1 %v1257_v37  ;;  %v1010_v46 = vadd.f32 %v1009_v43, %v5371_v28  ;;  %v1011_v47 = vpop.f32.mrb[26].mxu1 }
 0x135   : > { %v1154_v48 = vmax.f32 %v815_v40, 0.0  ;;  %v819_v49 = vadd.f32 %v818_v45, %v5359_v25  ;;  %v1156_v50 = vmax.f32 %v1008_v42, 0.0  ;;  %v820_v51 = vpop.f32.mrb[27].mxu0  ;;  %1634 = vmatmul.mubr.bf16.gmra.mrb[84].mxu0 %v1254_v34  ;;  %1795 = vmatmul.mubr.bf16.gmra.mrb[84].mxu1 %v1256_v35  ;;  %v1012_v52 = vadd.f32 %v1011_v47, %v5363_v26  ;;  %v1013_v53 = vpop.f32.mrb[27].mxu1 }
 0x136   : > { %v1155_v54 = vmax.f32 %v817_v44, 0.0  ;;  %v821_v55 = vadd.f32 %v820_v51, %v5367_v27  ;;  %v1157_v56 = vmax.f32 %v1010_v46, 0.0  ;;  %v1014_v57 = vadd.f32 %v1013_v53, %v5371_v28 }
 0x137   : > { %v1158_v58 = vmax.f32 %v819_v49, 0.0  ;;  %v1160_v59 = vmax.f32 %v1012_v52, 0.0 }
 0x138   : > { %v1159_v60 = vmax.f32 %v821_v55, 0.0  ;;  %v1161_v61 = vmax.f32 %v1014_v57, 0.0 }
 0x139   : > { %v1258_v62 = vpack.c.bf16 %v1158_v58, %v1154_v48  ;;  %v1260_v63 = vpack.c.bf16 %v1160_v59, %v1156_v50 }
 0x13a   : > { %v1259_v0 = vpack.c.bf16 %v1159_v60, %v1155_v54  ;;  %v1261_v1 = vpack.c.bf16 %v1161_v61, %v1157_v56  ;;  %v824_v3 = vpop.f32.mrb[28].mxu0  ;;  %v1017_v4 = vpop.f32.mrb[28].mxu1 }
 0x13b   : > { %v825_v5 = vadd.f32 %v824_v3, %v5359_v25  ;;  %v826_v6 = vpop.f32.mrb[29].mxu0  ;;  %v1018_v7 = vadd.f32 %v1017_v4, %v5363_v26  ;;  %v1019_v8 = vpop.f32.mrb[29].mxu1 }
 0x13c   : > { %v827_v9 = vadd.f32 %v826_v6, %v5367_v27  ;;  %v828_v10 = vpop.f32.mrb[30].mxu0  ;;  %1641 = vmatprep.mubr.bf16.mxu0 %v1259_v0  ;;  %v1020_v11 = vadd.f32 %v1019_v8, %v5371_v28  ;;  %v1021_v12 = vpop.f32.mrb[30].mxu1  ;;  %1802 = vmatprep.mubr.bf16.mxu1 %v1261_v1 }
 0x13d   : > { %v1162_v13 = vmax.f32 %v825_v5, 0.0  ;;  %v829_v14 = vadd.f32 %v828_v10, %v5359_v25  ;;  %v1164_v15 = vmax.f32 %v1018_v7, 0.0  ;;  %v830_v16 = vpop.f32.mrb[31].mxu0  ;;  %1642 = vmatmul.mubr.bf16.gmra.mrb[88].mxu0 %v1258_v62  ;;  %v1022_v17 = vadd.f32 %v1021_v12, %v5363_v26  ;;  %v1023_v22 = vpop.f32.mrb[31].mxu1  ;;  %1803 = vmatmul.mubr.bf16.gmra.mrb[88].mxu1 %v1260_v63 }
 0x13e   : > { %v1163_v29 = vmax.f32 %v827_v9, 0.0  ;;  %v831_v30 = vadd.f32 %v830_v16, %v5367_v27  ;;  %v1165_v31 = vmax.f32 %v1020_v11, 0.0  ;;  %v1024_v32 = vadd.f32 %v1023_v22, %v5371_v28 }
 0x13f   : > { %v1166_v33 = vmax.f32 %v829_v14, 0.0  ;;  %v1168_v34 = vmax.f32 %v1022_v17, 0.0 }
 0x140   : > { %v1167_v35 = vmax.f32 %v831_v30, 0.0  ;;  %v1169_v36 = vmax.f32 %v1024_v32, 0.0 }
 0x141   : > { %v1262_v37 = vpack.c.bf16 %v1166_v33, %v1162_v13  ;;  %v1264_v38 = vpack.c.bf16 %v1168_v34, %v1164_v15 }
 0x142   : > { %v1263_v39 = vpack.c.bf16 %v1167_v35, %v1163_v29  ;;  %v1265_v40 = vpack.c.bf16 %v1169_v36, %v1165_v31  ;;  %v834_v41 = vpop.f32.mrb[32].mxu0  ;;  %v1027_v42 = vpop.f32.mrb[32].mxu1 }
 0x143   : > { %v835_v43 = vadd.f32 %v834_v41, %v5359_v25  ;;  %v836_v44 = vpop.f32.mrb[33].mxu0  ;;  %v1028_v45 = vadd.f32 %v1027_v42, %v5363_v26  ;;  %v1029_v46 = vpop.f32.mrb[33].mxu1 }
 0x144   : > { %v837_v47 = vadd.f32 %v836_v44, %v5367_v27  ;;  %v838_v48 = vpop.f32.mrb[34].mxu0  ;;  %1649 = vmatprep.mubr.bf16.mxu0 %v1263_v39  ;;  %v1030_v49 = vadd.f32 %v1029_v46, %v5371_v28  ;;  %v1031_v50 = vpop.f32.mrb[34].mxu1  ;;  %1810 = vmatprep.mubr.bf16.mxu1 %v1265_v40 }
 0x145   : > { %v1170_v51 = vmax.f32 %v835_v43, 0.0  ;;  %v839_v52 = vadd.f32 %v838_v48, %v5359_v25  ;;  %v1172_v53 = vmax.f32 %v1028_v45, 0.0  ;;  %v840_v54 = vpop.f32.mrb[35].mxu0  ;;  %1650 = vmatmul.mubr.bf16.gmra.mrb[92].mxu0 %v1262_v37  ;;  %v1032_v55 = vadd.f32 %v1031_v50, %v5363_v26  ;;  %v1033_v56 = vpop.f32.mrb[35].mxu1  ;;  %1811 = vmatmul.mubr.bf16.gmra.mrb[92].mxu1 %v1264_v38 }
 0x146   : > { %v1171_v57 = vmax.f32 %v837_v47, 0.0  ;;  %v841_v58 = vadd.f32 %v840_v54, %v5367_v27  ;;  %v1173_v59 = vmax.f32 %v1030_v49, 0.0  ;;  %v1034_v60 = vadd.f32 %v1033_v56, %v5371_v28 }
 0x147   : > { %v1174_v61 = vmax.f32 %v839_v52, 0.0  ;;  %v1176_v62 = vmax.f32 %v1032_v55, 0.0 }
 0x148   : > { %v1175_v63 = vmax.f32 %v841_v58, 0.0  ;;  %v1177_v0 = vmax.f32 %v1034_v60, 0.0 }
 0x149   : > { %v1266_v1 = vpack.c.bf16 %v1174_v61, %v1170_v51  ;;  %v1268_v3 = vpack.c.bf16 %v1176_v62, %v1172_v53 }
 0x14a   : > { %v1267_v4 = vpack.c.bf16 %v1175_v63, %v1171_v57  ;;  %v1269_v5 = vpack.c.bf16 %v1177_v0, %v1173_v59  ;;  %v844_v6 = vpop.f32.mrb[36].mxu0  ;;  %v1037_v7 = vpop.f32.mrb[36].mxu1 }
 0x14b   : > { %v845_v8 = vadd.f32 %v844_v6, %v5359_v25  ;;  %v846_v9 = vpop.f32.mrb[37].mxu0  ;;  %v1038_v10 = vadd.f32 %v1037_v7, %v5363_v26  ;;  %v1039_v11 = vpop.f32.mrb[37].mxu1 }
 0x14c   : > { %v847_v12 = vadd.f32 %v846_v9, %v5367_v27  ;;  %v848_v13 = vpop.f32.mrb[38].mxu0  ;;  %1657 = vmatprep.mubr.bf16.mxu0 %v1267_v4  ;;  %v1040_v14 = vadd.f32 %v1039_v11, %v5371_v28  ;;  %v1041_v15 = vpop.f32.mrb[38].mxu1  ;;  %1818 = vmatprep.mubr.bf16.mxu1 %v1269_v5 }
 0x14d   : > { %v1178_v16 = vmax.f32 %v845_v8, 0.0  ;;  %v849_v17 = vadd.f32 %v848_v13, %v5359_v25  ;;  %v1180_v22 = vmax.f32 %v1038_v10, 0.0  ;;  %v850_v29 = vpop.f32.mrb[39].mxu0  ;;  %1658 = vmatmul.mubr.bf16.gmra.mrb[96].mxu0 %v1266_v1  ;;  %v1042_v30 = vadd.f32 %v1041_v15, %v5363_v26  ;;  %v1043_v31 = vpop.f32.mrb[39].mxu1  ;;  %1819 = vmatmul.mubr.bf16.gmra.mrb[96].mxu1 %v1268_v3 }
 0x14e   : > { %v1179_v32 = vmax.f32 %v847_v12, 0.0  ;;  %v851_v33 = vadd.f32 %v850_v29, %v5367_v27  ;;  %v1181_v34 = vmax.f32 %v1040_v14, 0.0  ;;  %v1044_v35 = vadd.f32 %v1043_v31, %v5371_v28 }
 0x14f   : > { %v1182_v36 = vmax.f32 %v849_v17, 0.0  ;;  %v1184_v37 = vmax.f32 %v1042_v30, 0.0 }
 0x150   : > { %v1183_v38 = vmax.f32 %v851_v33, 0.0  ;;  %v1185_v39 = vmax.f32 %v1044_v35, 0.0 }
 0x151   : > { %v1270_v40 = vpack.c.bf16 %v1182_v36, %v1178_v16  ;;  %v1272_v41 = vpack.c.bf16 %v1184_v37, %v1180_v22 }
 0x152   : > { %v1271_v42 = vpack.c.bf16 %v1183_v38, %v1179_v32  ;;  %v1273_v43 = vpack.c.bf16 %v1185_v39, %v1181_v34  ;;  %v854_v44 = vpop.f32.mrb[40].mxu0  ;;  %v1047_v45 = vpop.f32.mrb[40].mxu1 }
 0x153   : > { %v855_v46 = vadd.f32 %v854_v44, %v5359_v25  ;;  %v856_v47 = vpop.f32.mrb[41].mxu0  ;;  %v1048_v48 = vadd.f32 %v1047_v45, %v5363_v26  ;;  %v1049_v49 = vpop.f32.mrb[41].mxu1 }
 0x154   : > { %1665 = vmatprep.mubr.bf16.mxu0 %v1271_v42  ;;  %1826 = vmatprep.mubr.bf16.mxu1 %v1273_v43  ;;  %v857_v50 = vadd.f32 %v856_v47, %v5367_v27  ;;  %v858_v51 = vpop.f32.mrb[42].mxu0  ;;  %v1050_v52 = vadd.f32 %v1049_v49, %v5371_v28  ;;  %v1051_v53 = vpop.f32.mrb[42].mxu1 }
 0x155   : > { %1666 = vmatmul.mubr.bf16.gmra.mrb[100].mxu0 %v1270_v40  ;;  %1827 = vmatmul.mubr.bf16.gmra.mrb[100].mxu1 %v1272_v41  ;;  %v1186_v54 = vmax.f32 %v855_v46, 0.0  ;;  %v859_v55 = vadd.f32 %v858_v51, %v5359_v25  ;;  %v1188_v56 = vmax.f32 %v1048_v48, 0.0  ;;  %v860_v57 = vpop.f32.mrb[43].mxu0  ;;  %v1052_v58 = vadd.f32 %v1051_v53, %v5363_v26  ;;  %v1053_v59 = vpop.f32.mrb[43].mxu1 }
 0x156   : > { %v1187_v60 = vmax.f32 %v857_v50, 0.0  ;;  %v861_v61 = vadd.f32 %v860_v57, %v5367_v27  ;;  %v1189_v62 = vmax.f32 %v1050_v52, 0.0  ;;  %v1054_v63 = vadd.f32 %v1053_v59, %v5371_v28 }
 0x157   : > { %v1190_v0 = vmax.f32 %v859_v55, 0.0  ;;  %v1192_v1 = vmax.f32 %v1052_v58, 0.0 }
 0x158   : > { %v1191_v3 = vmax.f32 %v861_v61, 0.0  ;;  %v1193_v4 = vmax.f32 %v1054_v63, 0.0 }
 0x159   : > { %v1274_v5 = vpack.c.bf16 %v1190_v0, %v1186_v54  ;;  %v1276_v6 = vpack.c.bf16 %v1192_v1, %v1188_v56 }
 0x15a   : > { %v1275_v7 = vpack.c.bf16 %v1191_v3, %v1187_v60  ;;  %v1277_v8 = vpack.c.bf16 %v1193_v4, %v1189_v62  ;;  %v864_v9 = vpop.f32.mrb[44].mxu0  ;;  %v1057_v10 = vpop.f32.mrb[44].mxu1 }
 0x15b   : > { %v865_v11 = vadd.f32 %v864_v9, %v5359_v25  ;;  %v866_v12 = vpop.f32.mrb[45].mxu0  ;;  %v1058_v13 = vadd.f32 %v1057_v10, %v5363_v26  ;;  %v1059_v14 = vpop.f32.mrb[45].mxu1 }
 0x15c   : > { %v867_v15 = vadd.f32 %v866_v12, %v5367_v27  ;;  %v868_v16 = vpop.f32.mrb[46].mxu0  ;;  %1673 = vmatprep.mubr.bf16.mxu0 %v1275_v7  ;;  %v1060_v17 = vadd.f32 %v1059_v14, %v5371_v28  ;;  %v1061_v22 = vpop.f32.mrb[46].mxu1  ;;  %1834 = vmatprep.mubr.bf16.mxu1 %v1277_v8 }
 0x15d   : > { %v1194_v29 = vmax.f32 %v865_v11, 0.0  ;;  %v869_v30 = vadd.f32 %v868_v16, %v5359_v25  ;;  %v1196_v31 = vmax.f32 %v1058_v13, 0.0  ;;  %v870_v32 = vpop.f32.mrb[47].mxu0  ;;  %1674 = vmatmul.mubr.bf16.gmra.mrb[104].mxu0 %v1274_v5  ;;  %v1062_v33 = vadd.f32 %v1061_v22, %v5363_v26  ;;  %v1063_v34 = vpop.f32.mrb[47].mxu1  ;;  %1835 = vmatmul.mubr.bf16.gmra.mrb[104].mxu1 %v1276_v6 }
 0x15e   : > { %v1195_v35 = vmax.f32 %v867_v15, 0.0  ;;  %v871_v36 = vadd.f32 %v870_v32, %v5367_v27  ;;  %v1197_v37 = vmax.f32 %v1060_v17, 0.0  ;;  %v1064_v38 = vadd.f32 %v1063_v34, %v5371_v28 }
 0x15f   : > { %v1198_v39 = vmax.f32 %v869_v30, 0.0  ;;  %v1200_v40 = vmax.f32 %v1062_v33, 0.0 }
 0x160   : > { %v1199_v41 = vmax.f32 %v871_v36, 0.0  ;;  %v1201_v42 = vmax.f32 %v1064_v38, 0.0 }
 0x161   : > { %v1278_v43 = vpack.c.bf16 %v1198_v39, %v1194_v29  ;;  %v1280_v44 = vpack.c.bf16 %v1200_v40, %v1196_v31 }
 0x162   : > { %v1279_v45 = vpack.c.bf16 %v1199_v41, %v1195_v35  ;;  %v1281_v46 = vpack.c.bf16 %v1201_v42, %v1197_v37  ;;  %v874_v47 = vpop.f32.mrb[48].mxu0  ;;  %v1067_v48 = vpop.f32.mrb[48].mxu1 }
 0x163   : > { %v875_v49 = vadd.f32 %v874_v47, %v5359_v25  ;;  %v876_v50 = vpop.f32.mrb[49].mxu0  ;;  %v1068_v51 = vadd.f32 %v1067_v48, %v5363_v26  ;;  %v1069_v52 = vpop.f32.mrb[49].mxu1 }
 0x164   : > { %v877_v53 = vadd.f32 %v876_v50, %v5367_v27  ;;  %v878_v54 = vpop.f32.mrb[50].mxu0  ;;  %1681 = vmatprep.mubr.bf16.mxu0 %v1279_v45  ;;  %v1070_v55 = vadd.f32 %v1069_v52, %v5371_v28  ;;  %v1071_v56 = vpop.f32.mrb[50].mxu1  ;;  %1842 = vmatprep.mubr.bf16.mxu1 %v1281_v46 }
 0x165   : > { %v1202_v57 = vmax.f32 %v875_v49, 0.0  ;;  %v879_v58 = vadd.f32 %v878_v54, %v5359_v25  ;;  %v1204_v59 = vmax.f32 %v1068_v51, 0.0  ;;  %v880_v60 = vpop.f32.mrb[51].mxu0  ;;  %1682 = vmatmul.mubr.bf16.gmra.mrb[108].mxu0 %v1278_v43  ;;  %v1072_v61 = vadd.f32 %v1071_v56, %v5363_v26  ;;  %v1073_v62 = vpop.f32.mrb[51].mxu1  ;;  %1843 = vmatmul.mubr.bf16.gmra.mrb[108].mxu1 %v1280_v44 }
 0x166   : > { %v1203_v63 = vmax.f32 %v877_v53, 0.0  ;;  %v881_v0 = vadd.f32 %v880_v60, %v5367_v27  ;;  %v1205_v1 = vmax.f32 %v1070_v55, 0.0  ;;  %v1074_v3 = vadd.f32 %v1073_v62, %v5371_v28 }
 0x167   : > { %v1206_v4 = vmax.f32 %v879_v58, 0.0  ;;  %v1208_v5 = vmax.f32 %v1072_v61, 0.0 }
 0x168   : > { %v1207_v6 = vmax.f32 %v881_v0, 0.0  ;;  %v1209_v7 = vmax.f32 %v1074_v3, 0.0 }
 0x169   : > { %v1282_v8 = vpack.c.bf16 %v1206_v4, %v1202_v57  ;;  %v1284_v9 = vpack.c.bf16 %v1208_v5, %v1204_v59 }
 0x16a   : > { %v1283_v10 = vpack.c.bf16 %v1207_v6, %v1203_v63  ;;  %v1285_v11 = vpack.c.bf16 %v1209_v7, %v1205_v1  ;;  %v884_v12 = vpop.f32.mrb[52].mxu0  ;;  %v1077_v13 = vpop.f32.mrb[52].mxu1 }
 0x16b   : > { %v885_v14 = vadd.f32 %v884_v12, %v5359_v25  ;;  %v886_v15 = vpop.f32.mrb[53].mxu0  ;;  %v1078_v16 = vadd.f32 %v1077_v13, %v5363_v26  ;;  %v1079_v17 = vpop.f32.mrb[53].mxu1 }
 0x16c   : > { %v887_v22 = vadd.f32 %v886_v15, %v5367_v27  ;;  %v888_v29 = vpop.f32.mrb[54].mxu0  ;;  %1689 = vmatprep.mubr.bf16.mxu0 %v1283_v10  ;;  %v1080_v30 = vadd.f32 %v1079_v17, %v5371_v28  ;;  %v1081_v31 = vpop.f32.mrb[54].mxu1  ;;  %1850 = vmatprep.mubr.bf16.mxu1 %v1285_v11 }
 0x16d   : > { %v1210_v32 = vmax.f32 %v885_v14, 0.0  ;;  %v889_v33 = vadd.f32 %v888_v29, %v5359_v25  ;;  %v1212_v34 = vmax.f32 %v1078_v16, 0.0  ;;  %v890_v35 = vpop.f32.mrb[55].mxu0  ;;  %1690 = vmatmul.mubr.bf16.gmra.mrb[112].mxu0 %v1282_v8  ;;  %v1082_v36 = vadd.f32 %v1081_v31, %v5363_v26  ;;  %v1083_v37 = vpop.f32.mrb[55].mxu1  ;;  %1851 = vmatmul.mubr.bf16.gmra.mrb[112].mxu1 %v1284_v9 }
 0x16e   : > { %v1211_v38 = vmax.f32 %v887_v22, 0.0  ;;  %v891_v39 = vadd.f32 %v890_v35, %v5367_v27  ;;  %v1213_v40 = vmax.f32 %v1080_v30, 0.0  ;;  %v1084_v41 = vadd.f32 %v1083_v37, %v5371_v28 }
 0x16f   : > { %v1214_v42 = vmax.f32 %v889_v33, 0.0  ;;  %v1216_v43 = vmax.f32 %v1082_v36, 0.0 }
 0x170   : > { %v1215_v44 = vmax.f32 %v891_v39, 0.0  ;;  %v1217_v45 = vmax.f32 %v1084_v41, 0.0 }
 0x171   : > { %v1286_v46 = vpack.c.bf16 %v1214_v42, %v1210_v32  ;;  %v1288_v47 = vpack.c.bf16 %v1216_v43, %v1212_v34 }
 0x172   : > { %v1287_v48 = vpack.c.bf16 %v1215_v44, %v1211_v38  ;;  %v1289_v49 = vpack.c.bf16 %v1217_v45, %v1213_v40  ;;  %v894_v50 = vpop.f32.mrb[56].mxu0  ;;  %v1087_v51 = vpop.f32.mrb[56].mxu1 }
 0x173   : > { %v895_v52 = vadd.f32 %v894_v50, %v5359_v25  ;;  %v896_v53 = vpop.f32.mrb[57].mxu0  ;;  %v1088_v54 = vadd.f32 %v1087_v51, %v5363_v26  ;;  %v1089_v55 = vpop.f32.mrb[57].mxu1 }
 0x174   : > { %v897_v56 = vadd.f32 %v896_v53, %v5367_v27  ;;  %v898_v57 = vpop.f32.mrb[58].mxu0  ;;  %1697 = vmatprep.mubr.bf16.mxu0 %v1287_v48  ;;  %v1090_v58 = vadd.f32 %v1089_v55, %v5371_v28  ;;  %v1091_v59 = vpop.f32.mrb[58].mxu1  ;;  %1858 = vmatprep.mubr.bf16.mxu1 %v1289_v49 }
 0x175   : > { %v1218_v60 = vmax.f32 %v895_v52, 0.0  ;;  %v899_v61 = vadd.f32 %v898_v57, %v5359_v25  ;;  %v1220_v62 = vmax.f32 %v1088_v54, 0.0  ;;  %v900_v63 = vpop.f32.mrb[59].mxu0  ;;  %1698 = vmatmul.mubr.bf16.gmra.mrb[116].mxu0 %v1286_v46  ;;  %v1092_v0 = vadd.f32 %v1091_v59, %v5363_v26  ;;  %v1093_v1 = vpop.f32.mrb[59].mxu1  ;;  %1859 = vmatmul.mubr.bf16.gmra.mrb[116].mxu1 %v1288_v47  ;;  %v5509_v52 = vld [vmem:[%s6764_s4] ss:$0 sm:$0xff] }
 0x176   : > { %v1219_v3 = vmax.f32 %v897_v56, 0.0  ;;  %v901_v4 = vadd.f32 %v900_v63, %v5367_v27  ;;  %v1221_v5 = vmax.f32 %v1090_v58, 0.0  ;;  %v1094_v6 = vadd.f32 %v1093_v1, %v5371_v28 }
 0x177   : > { %v1222_v7 = vmax.f32 %v899_v61, 0.0  ;;  %v1224_v8 = vmax.f32 %v1092_v0, 0.0 }
 0x178   : > { %v1223_v9 = vmax.f32 %v901_v4, 0.0  ;;  %v1225_v10 = vmax.f32 %v1094_v6, 0.0 }
 0x179   : > { %v1290_v11 = vpack.c.bf16 %v1222_v7, %v1218_v60  ;;  %v1292_v12 = vpack.c.bf16 %v1224_v8, %v1220_v62 }
 0x17a   : > { %v1291_v13 = vpack.c.bf16 %v1223_v9, %v1219_v3  ;;  %v1293_v14 = vpack.c.bf16 %v1225_v10, %v1221_v5  ;;  %v904_v15 = vpop.f32.mrb[60].mxu0  ;;  %v1097_v16 = vpop.f32.mrb[60].mxu1 }
 0x17b   : > { %v905_v17 = vadd.f32 %v904_v15, %v5359_v25  ;;  %v906_v22 = vpop.f32.mrb[61].mxu0  ;;  %v1098_v29 = vadd.f32 %v1097_v16, %v5363_v26  ;;  %v1099_v30 = vpop.f32.mrb[61].mxu1 }
 0x17c   : > { %v907_v31 = vadd.f32 %v906_v22, %v5367_v27  ;;  %v908_v32 = vpop.f32.mrb[62].mxu0  ;;  %1705 = vmatprep.mubr.bf16.mxu0 %v1291_v13  ;;  %v1100_v33 = vadd.f32 %v1099_v30, %v5371_v28  ;;  %v1101_v34 = vpop.f32.mrb[62].mxu1  ;;  %1866 = vmatprep.mubr.bf16.mxu1 %v1293_v14 }
 0x17d   : > { %v1226_v35 = vmax.f32 %v905_v17, 0.0  ;;  %v909_v36 = vadd.f32 %v908_v32, %v5359_v25  ;;  %v1228_v37 = vmax.f32 %v1098_v29, 0.0  ;;  %v910_v38 = vpop.f32.mrb[63].mxu0  ;;  %1706 = vmatmul.mubr.bf16.gmra.mrb[120].mxu0 %v1290_v11  ;;  %v1102_v39 = vadd.f32 %v1101_v34, %v5363_v26  ;;  %v1103_v40 = vpop.f32.mrb[63].mxu1  ;;  %1867 = vmatmul.mubr.bf16.gmra.mrb[120].mxu1 %v1292_v12 }
 0x17e   : > { %v1227_v41 = vmax.f32 %v907_v31, 0.0  ;;  %v911_v42 = vadd.f32 %v910_v38, %v5367_v27  ;;  %v1229_v43 = vmax.f32 %v1100_v33, 0.0  ;;  %v1104_v44 = vadd.f32 %v1103_v40, %v5371_v28 }
 0x17f   : > { %v1230_v45 = vmax.f32 %v909_v36, 0.0  ;;  %v1232_v46 = vmax.f32 %v1102_v39, 0.0  ;;  %v5504_v28 = vand.u32 127, %v444_v18 }
 0x180   : > { %v1231_v47 = vmax.f32 %v911_v42, 0.0  ;;  %v1233_v48 = vmax.f32 %v1104_v44, 0.0 }
 0x181   : > { %v1294_v49 = vpack.c.bf16 %v1230_v45, %v1226_v35  ;;  %v1296_v50 = vpack.c.bf16 %v1232_v46, %v1228_v37  ;;  %vm1917_vm0 = vcmp.lt.s32.totalorder %v5504_v28, 32 }
 0x182   : > { %v1295_v25 = vpack.c.bf16 %v1231_v47, %v1227_v41  ;;  %v1297_v51 = vpack.c.bf16 %v1233_v48, %v1229_v43 }
 0x184   : > { %1713 = vmatprep.mubr.bf16.mxu0 %v1295_v25  ;;  %1874 = vmatprep.mubr.bf16.mxu1 %v1297_v51 }
 0x185   : > { %1714 = vmatmul.mubr.bf16.gmra.mrb[124].mxu0 %v1294_v49  ;;  %1875 = vmatmul.mubr.bf16.gmra.mrb[124].mxu1 %v1296_v50 }
 0x186   : > { %2884 = vmatprep.mubr.bf16.mxu0 %v6775_v2  ;;  %3077 = vmatprep.mubr.bf16.mxu1 %v6775_v2 }
 0x1e0   : > { %v4408_v26 = vpop.f32.mrb[64].mxu0  ;;  %v4520_v27 = vpop.f32.mrb[64].mxu1 }
 0x1e1   : > { %v4409_v53 = vpop.f32.mrb[65].mxu0  ;;  %v4521_v54 = vpop.f32.mrb[65].mxu1 }
 0x1e2   : > { %v4410_v55 = vadd.f32 %v4409_v53, %v4408_v26  ;;  %v4522_v56 = vadd.f32 %v4521_v54, %v4520_v27  ;;  %v4411_v57 = vpop.f32.mrb[66].mxu0  ;;  %v4523_v58 = vpop.f32.mrb[66].mxu1 }
 0x1e3   : > { %v4412_v59 = vpop.f32.mrb[67].mxu0  ;;  %v4524_v60 = vpop.f32.mrb[67].mxu1 }
 0x1e4   : > { %v1596_v61 = vadd.f32 %v4410_v55, %v5509_v52  ;;  %v4413_v62 = vadd.f32 %v4412_v59, %v4411_v57  ;;  %v4525_v63 = vadd.f32 %v4524_v60, %v4523_v58 }
 0x1e6   : > { %v1599_v18 = vadd.f32 %v4413_v62, %v5509_v52  ;;  %v1757_v0 = vadd.f32 %v4522_v56, %v1596_v61 }
 0x1e8   : > { %v4414_v1 = vpop.f32.mrb[68].mxu0  ;;  %v4526_v3 = vpop.f32.mrb[68].mxu1  ;;  %v5524_v4 = vsel %vm1917_vm0, %v1757_v0, -inf  ;;  %1883 = vst [vmem:[%s5518_s11] sm:$0xff] %v1757_v0  ;;  %v1760_v5 = vadd.f32 %v4525_v63, %v1599_v18 }
 0x1e9   : > { %v4415_v6 = vpop.f32.mrb[69].mxu0  ;;  %v4527_v7 = vpop.f32.mrb[69].mxu1  ;;  %1950 = vmax.xlane.f32.xlu0 %v5524_v4 }
 0x1ea   : > { %v4416_v8 = vadd.f32 %v4415_v6, %v4414_v1  ;;  %v4528_v9 = vadd.f32 %v4527_v7, %v4526_v3  ;;  %v4417_v10 = vpop.f32.mrb[70].mxu0  ;;  %v4529_v11 = vpop.f32.mrb[70].mxu1  ;;  %1884 = vst [vmem:[%s5518_s11 + $0x8] sm:$0xff] %v1760_v5  ;;  %v5532_v17 = vsel %vm1917_vm0, %v1760_v5, -inf }
 0x1eb   : > { %v4418_v12 = vpop.f32.mrb[71].mxu0  ;;  %v4530_v13 = vpop.f32.mrb[71].mxu1 }
 0x1ec   : > { %v1604_v14 = vadd.f32 %v4416_v8, %v5509_v52  ;;  %v4419_v15 = vadd.f32 %v4418_v12, %v4417_v10  ;;  %v4531_v16 = vadd.f32 %v4530_v13, %v4529_v11 }
 0x1ed   : > { %1952 = vmax.xlane.f32.xlu0 %v5532_v17 }
 0x1ee   : > { %v1607_v22 = vadd.f32 %v4419_v15, %v5509_v52  ;;  %v1765_v29 = vadd.f32 %v4528_v9, %v1604_v14 }
 0x1f0   : > { %v4420_v30 = vpop.f32.mrb[72].mxu0  ;;  %v4532_v31 = vpop.f32.mrb[72].mxu1  ;;  %v5538_v32 = vsel %vm1917_vm0, %v1765_v29, -inf  ;;  %1885 = vst [vmem:[%s5518_s11 + $0x10] sm:$0xff] %v1765_v29  ;;  %v1768_v33 = vadd.f32 %v4531_v16, %v1607_v22 }
 0x1f1   : > { %v4421_v34 = vpop.f32.mrb[73].mxu0  ;;  %v4533_v35 = vpop.f32.mrb[73].mxu1  ;;  %1954 = vmax.xlane.f32.xlu1 %v5538_v32 }
 0x1f2   : > { %v4422_v36 = vadd.f32 %v4421_v34, %v4420_v30  ;;  %v4534_v37 = vadd.f32 %v4533_v35, %v4532_v31  ;;  %v4423_v38 = vpop.f32.mrb[74].mxu0  ;;  %v4535_v39 = vpop.f32.mrb[74].mxu1  ;;  %1886 = vst [vmem:[%s5518_s11 + $0x18] sm:$0xff] %v1768_v33  ;;  %v5546_v45 = vsel %vm1917_vm0, %v1768_v33, -inf }
 0x1f3   : > { %v4424_v40 = vpop.f32.mrb[75].mxu0  ;;  %v4536_v41 = vpop.f32.mrb[75].mxu1 }
 0x1f4   : > { %v1612_v42 = vadd.f32 %v4422_v36, %v5509_v52  ;;  %v4425_v43 = vadd.f32 %v4424_v40, %v4423_v38  ;;  %v4537_v44 = vadd.f32 %v4536_v41, %v4535_v39 }
 0x1f5   : > { %1956 = vmax.xlane.f32.xlu1 %v5546_v45 }
 0x1f6   : > { %v1615_v46 = vadd.f32 %v4425_v43, %v5509_v52  ;;  %v1773_v47 = vadd.f32 %v4534_v37, %v1612_v42 }
 0x1f8   : > { %v4426_v48 = vpop.f32.mrb[76].mxu0  ;;  %v4538_v49 = vpop.f32.mrb[76].mxu1  ;;  %1887 = vst [vmem:[%s5518_s11 + $0x20] sm:$0xff] %v1773_v47  ;;  %v5553_v50 = vsel %vm1917_vm0, %v1773_v47, -inf  ;;  %v1776_v25 = vadd.f32 %v4537_v44, %v1615_v46 }
 0x1f9   : > { %v4427_v51 = vpop.f32.mrb[77].mxu0  ;;  %v4539_v26 = vpop.f32.mrb[77].mxu1  ;;  %1958 = vmax.xlane.f32.xlu0 %v5553_v50 }
 0x1fa   : > { %v4428_v27 = vadd.f32 %v4427_v51, %v4426_v48  ;;  %v4540_v53 = vadd.f32 %v4539_v26, %v4538_v49  ;;  %v4429_v54 = vpop.f32.mrb[78].mxu0  ;;  %v4541_v55 = vpop.f32.mrb[78].mxu1  ;;  %1888 = vst [vmem:[%s5518_s11 + $0x28] sm:$0xff] %v1776_v25  ;;  %v5559_v56 = vsel %vm1917_vm0, %v1776_v25, -inf }
 0x1fb   : > { %v4430_v57 = vpop.f32.mrb[79].mxu0  ;;  %v4542_v58 = vpop.f32.mrb[79].mxu1  ;;  %1960 = vmax.xlane.f32.xlu1 %v5559_v56 }
 0x1fc   : > { %v1620_v59 = vadd.f32 %v4428_v27, %v5509_v52  ;;  %v4431_v60 = vadd.f32 %v4430_v57, %v4429_v54  ;;  %v4543_v61 = vadd.f32 %v4542_v58, %v4541_v55 }
 0x1fe   : > { %v1623_v62 = vadd.f32 %v4431_v60, %v5509_v52  ;;  %v1781_v63 = vadd.f32 %v4540_v53, %v1620_v59 }
 0x200   : > { %v4432_v18 = vpop.f32.mrb[80].mxu0  ;;  %v4544_v0 = vpop.f32.mrb[80].mxu1  ;;  %1889 = vst [vmem:[%s5518_s11 + $0x30] sm:$0xff] %v1781_v63  ;;  %v5567_v1 = vsel %vm1917_vm0, %v1781_v63, -inf  ;;  %v1784_v3 = vadd.f32 %v4543_v61, %v1623_v62 }
 0x201   : > { %v4433_v5 = vpop.f32.mrb[81].mxu0  ;;  %v4545_v6 = vpop.f32.mrb[81].mxu1  ;;  %1962 = vmax.xlane.f32.xlu0 %v5567_v1 }
 0x202   : > { %v4434_v7 = vadd.f32 %v4433_v5, %v4432_v18  ;;  %v4546_v8 = vadd.f32 %v4545_v6, %v4544_v0  ;;  %v4435_v9 = vpop.f32.mrb[82].mxu0  ;;  %v4547_v10 = vpop.f32.mrb[82].mxu1  ;;  %1890 = vst [vmem:[%s5518_s11 + $0x38] sm:$0xff] %v1784_v3  ;;  %v5573_v11 = vsel %vm1917_vm0, %v1784_v3, -inf }
 0x203   : > { %v4436_v12 = vpop.f32.mrb[83].mxu0  ;;  %v4548_v13 = vpop.f32.mrb[83].mxu1  ;;  %1964 = vmax.xlane.f32.xlu1 %v5573_v11 }
 0x204   : > { %v1628_v14 = vadd.f32 %v4434_v7, %v5509_v52  ;;  %v4437_v15 = vadd.f32 %v4436_v12, %v4435_v9  ;;  %v4549_v16 = vadd.f32 %v4548_v13, %v4547_v10 }
 0x206   : > { %v1631_v22 = vadd.f32 %v4437_v15, %v5509_v52  ;;  %v1789_v29 = vadd.f32 %v4546_v8, %v1628_v14 }
 0x208   : > { %v4438_v30 = vpop.f32.mrb[84].mxu0  ;;  %v4550_v31 = vpop.f32.mrb[84].mxu1  ;;  %1891 = vst [vmem:[%s5518_s11 + $0x40] sm:$0xff] %v1789_v29  ;;  %v5581_v33 = vsel %vm1917_vm0, %v1789_v29, -inf  ;;  %v1792_v34 = vadd.f32 %v4549_v16, %v1631_v22 }
 0x209   : > { %v4439_v35 = vpop.f32.mrb[85].mxu0  ;;  %v4551_v36 = vpop.f32.mrb[85].mxu1  ;;  %1966 = vmax.xlane.f32.xlu0 %v5581_v33 }
 0x20a   : > { %v4440_v37 = vadd.f32 %v4439_v35, %v4438_v30  ;;  %v4552_v38 = vadd.f32 %v4551_v36, %v4550_v31  ;;  %v4441_v39 = vpop.f32.mrb[86].mxu0  ;;  %v4553_v40 = vpop.f32.mrb[86].mxu1  ;;  %1892 = vst [vmem:[%s5518_s11 + $0x48] sm:$0xff] %v1792_v34  ;;  %v5587_v41 = vsel %vm1917_vm0, %v1792_v34, -inf }
 0x20b   : > { %v4442_v42 = vpop.f32.mrb[87].mxu0  ;;  %v4554_v43 = vpop.f32.mrb[87].mxu1  ;;  %1968 = vmax.xlane.f32.xlu1 %v5587_v41 }
 0x20c   : > { %v1636_v44 = vadd.f32 %v4440_v37, %v5509_v52  ;;  %v4443_v46 = vadd.f32 %v4442_v42, %v4441_v39  ;;  %v4555_v47 = vadd.f32 %v4554_v43, %v4553_v40 }
 0x20e   : > { %v1639_v48 = vadd.f32 %v4443_v46, %v5509_v52  ;;  %v1797_v49 = vadd.f32 %v4552_v38, %v1636_v44 }
 0x210   : > { %v4444_v25 = vpop.f32.mrb[88].mxu0  ;;  %1893 = vst [vmem:[%s5518_s11 + $0x50] sm:$0xff] %v1797_v49  ;;  %v5595_v51 = vsel %vm1917_vm0, %v1797_v49, -inf  ;;  %v4556_v26 = vpop.f32.mrb[88].mxu1  ;;  %v1800_v27 = vadd.f32 %v4555_v47, %v1639_v48 }
 0x211   : > { %v4445_v53 = vpop.f32.mrb[89].mxu0  ;;  %1970 = vmax.xlane.f32.xlu0 %v5595_v51  ;;  %v4557_v54 = vpop.f32.mrb[89].mxu1 }
 0x212   : > { %v4446_v55 = vadd.f32 %v4445_v53, %v4444_v25  ;;  %v4447_v57 = vpop.f32.mrb[90].mxu0  ;;  %v4558_v58 = vadd.f32 %v4557_v54, %v4556_v26  ;;  %1894 = vst [vmem:[%s5518_s11 + $0x58] sm:$0xff] %v1800_v27  ;;  %v5601_v59 = vsel %vm1917_vm0, %v1800_v27, -inf  ;;  %v4559_v60 = vpop.f32.mrb[90].mxu1 }
 0x213   : > { %v4448_v61 = vpop.f32.mrb[91].mxu0  ;;  %1972 = vmax.xlane.f32.xlu1 %v5601_v59  ;;  %v4560_v62 = vpop.f32.mrb[91].mxu1 }
 0x214   : > { %v1644_v63 = vadd.f32 %v4446_v55, %v5509_v52  ;;  %v4449_v18 = vadd.f32 %v4448_v61, %v4447_v57  ;;  %v4561_v0 = vadd.f32 %v4560_v62, %v4559_v60 }
 0x216   : > { %v1647_v3 = vadd.f32 %v4449_v18, %v5509_v52  ;;  %v1805_v5 = vadd.f32 %v4558_v58, %v1644_v63 }
 0x218   : > { %v4450_v6 = vpop.f32.mrb[92].mxu0  ;;  %1895 = vst [vmem:[%s5518_s11 + $0x60] sm:$0xff] %v1805_v5  ;;  %v5609_v7 = vsel %vm1917_vm0, %v1805_v5, -inf  ;;  %v4562_v8 = vpop.f32.mrb[92].mxu1  ;;  %v1808_v9 = vadd.f32 %v4561_v0, %v1647_v3 }
 0x219   : > { %v4451_v10 = vpop.f32.mrb[93].mxu0  ;;  %1974 = vmax.xlane.f32.xlu0 %v5609_v7  ;;  %v4563_v12 = vpop.f32.mrb[93].mxu1 }
 0x21a   : > { %v4452_v13 = vadd.f32 %v4451_v10, %v4450_v6  ;;  %v4453_v14 = vpop.f32.mrb[94].mxu0  ;;  %v4564_v15 = vadd.f32 %v4563_v12, %v4562_v8  ;;  %1896 = vst [vmem:[%s5518_s11 + $0x68] sm:$0xff] %v1808_v9  ;;  %v5615_v16 = vsel %vm1917_vm0, %v1808_v9, -inf  ;;  %v4565_v22 = vpop.f32.mrb[94].mxu1 }
 0x21b   : > { %v4454_v29 = vpop.f32.mrb[95].mxu0  ;;  %1976 = vmax.xlane.f32.xlu1 %v5615_v16  ;;  %v4566_v30 = vpop.f32.mrb[95].mxu1 }
 0x21c   : > { %v1652_v31 = vadd.f32 %v4452_v13, %v5509_v52  ;;  %v4455_v34 = vadd.f32 %v4454_v29, %v4453_v14  ;;  %v4567_v35 = vadd.f32 %v4566_v30, %v4565_v22 }
 0x21e   : > { %v1655_v36 = vadd.f32 %v4455_v34, %v5509_v52  ;;  %v1813_v37 = vadd.f32 %v4564_v15, %v1652_v31 }
 0x220   : > { %v4456_v38 = vpop.f32.mrb[96].mxu0  ;;  %1897 = vst [vmem:[%s5518_s11 + $0x70] sm:$0xff] %v1813_v37  ;;  %v5623_v39 = vsel %vm1917_vm0, %v1813_v37, -inf  ;;  %v4568_v40 = vpop.f32.mrb[96].mxu1  ;;  %v1816_v42 = vadd.f32 %v4567_v35, %v1655_v36 }
 0x221   : > { %v4457_v43 = vpop.f32.mrb[97].mxu0  ;;  %1978 = vmax.xlane.f32.xlu0 %v5623_v39  ;;  %v4569_v44 = vpop.f32.mrb[97].mxu1 }
 0x222   : > { %v4458_v46 = vadd.f32 %v4457_v43, %v4456_v38  ;;  %v4459_v47 = vpop.f32.mrb[98].mxu0  ;;  %v4570_v48 = vadd.f32 %v4569_v44, %v4568_v40  ;;  %1898 = vst [vmem:[%s5518_s11 + $0x78] sm:$0xff] %v1816_v42  ;;  %v5629_v49 = vsel %vm1917_vm0, %v1816_v42, -inf  ;;  %v4571_v25 = vpop.f32.mrb[98].mxu1 }
 0x223   : > { %v4460_v26 = vpop.f32.mrb[99].mxu0  ;;  %1980 = vmax.xlane.f32.xlu1 %v5629_v49  ;;  %v4572_v27 = vpop.f32.mrb[99].mxu1 }
 0x224   : > { %v1660_v53 = vadd.f32 %v4458_v46, %v5509_v52  ;;  %v4461_v54 = vadd.f32 %v4460_v26, %v4459_v47  ;;  %v4573_v55 = vadd.f32 %v4572_v27, %v4571_v25 }
 0x226   : > { %v1663_v57 = vadd.f32 %v4461_v54, %v5509_v52  ;;  %v1821_v58 = vadd.f32 %v4570_v48, %v1660_v53 }
 0x228   : > { %v4462_v60 = vpop.f32.mrb[100].mxu0  ;;  %1899 = vst [vmem:[%s5518_s11 + $0x80] sm:$0xff] %v1821_v58  ;;  %v5637_v61 = vsel %vm1917_vm0, %v1821_v58, -inf  ;;  %v4574_v62 = vpop.f32.mrb[100].mxu1  ;;  %v1824_v63 = vadd.f32 %v4573_v55, %v1663_v57 }
 0x229   : > { %v4463_v18 = vpop.f32.mrb[101].mxu0  ;;  %1982 = vmax.xlane.f32.xlu0 %v5637_v61  ;;  %v4575_v0 = vpop.f32.mrb[101].mxu1 }
 0x22a   : > { %v4464_v3 = vadd.f32 %v4463_v18, %v4462_v60  ;;  %v4465_v5 = vpop.f32.mrb[102].mxu0  ;;  %v4576_v6 = vadd.f32 %v4575_v0, %v4574_v62  ;;  %1900 = vst [vmem:[%s5518_s11 + $0x88] sm:$0xff] %v1824_v63  ;;  %v5643_v8 = vsel %vm1917_vm0, %v1824_v63, -inf  ;;  %v4577_v9 = vpop.f32.mrb[102].mxu1 }
 0x22b   : > { %v4466_v10 = vpop.f32.mrb[103].mxu0  ;;  %1984 = vmax.xlane.f32.xlu1 %v5643_v8  ;;  %v4578_v12 = vpop.f32.mrb[103].mxu1 }
 0x22c   : > { %v1668_v13 = vadd.f32 %v4464_v3, %v5509_v52  ;;  %v4467_v14 = vadd.f32 %v4466_v10, %v4465_v5  ;;  %v4579_v15 = vadd.f32 %v4578_v12, %v4577_v9 }
 0x22e   : > { %v1671_v22 = vadd.f32 %v4467_v14, %v5509_v52  ;;  %v1829_v29 = vadd.f32 %v4576_v6, %v1668_v13 }
 0x230   : > { %1901 = vst [vmem:[%s5518_s11 + $0x90] sm:$0xff] %v1829_v29  ;;  %v5651_v30 = vsel %vm1917_vm0, %v1829_v29, -inf  ;;  %v1832_v31 = vadd.f32 %v4579_v15, %v1671_v22  ;;  %v4468_v34 = vpop.f32.mrb[104].mxu0  ;;  %v4580_v35 = vpop.f32.mrb[104].mxu1 }
 0x231   : > { %1986 = vmax.xlane.f32.xlu0 %v5651_v30  ;;  %v4469_v36 = vpop.f32.mrb[105].mxu0  ;;  %v4581_v37 = vpop.f32.mrb[105].mxu1 }
 0x232   : > { %1902 = vst [vmem:[%s5518_s11 + $0x98] sm:$0xff] %v1832_v31  ;;  %v5657_v38 = vsel %vm1917_vm0, %v1832_v31, -inf  ;;  %v4470_v40 = vadd.f32 %v4469_v36, %v4468_v34  ;;  %v4471_v42 = vpop.f32.mrb[106].mxu0  ;;  %v4582_v43 = vadd.f32 %v4581_v37, %v4580_v35  ;;  %v4583_v44 = vpop.f32.mrb[106].mxu1 }
 0x233   : > { %1988 = vmax.xlane.f32.xlu1 %v5657_v38  ;;  %v4472_v46 = vpop.f32.mrb[107].mxu0  ;;  %v4584_v47 = vpop.f32.mrb[107].mxu1 }
 0x234   : > { %v1676_v48 = vadd.f32 %v4470_v40, %v5509_v52  ;;  %v4473_v25 = vadd.f32 %v4472_v46, %v4471_v42  ;;  %v4585_v26 = vadd.f32 %v4584_v47, %v4583_v44 }
 0x236   : > { %v1679_v27 = vadd.f32 %v4473_v25, %v5509_v52  ;;  %v5662_v53 = vadd.f32 %v4582_v43, %v1676_v48 }
 0x238   : > { %v4474_v54 = vpop.f32.mrb[108].mxu0  ;;  %v4586_v55 = vpop.f32.mrb[108].mxu1  ;;  %1903 = vst [vmem:[%s5518_s11 + $0xa0] sm:$0xff] %v5662_v53  ;;  %v5666_v57 = vadd.f32 %v4585_v26, %v1679_v27 }
 0x239   : > { %v4475_v58 = vpop.f32.mrb[109].mxu0  ;;  %v4587_v60 = vpop.f32.mrb[109].mxu1 }
 0x23a   : > { %v4476_v62 = vadd.f32 %v4475_v58, %v4474_v54  ;;  %v4477_v63 = vpop.f32.mrb[110].mxu0  ;;  %v4588_v18 = vadd.f32 %v4587_v60, %v4586_v55  ;;  %v4589_v0 = vpop.f32.mrb[110].mxu1  ;;  %1904 = vst [vmem:[%s5518_s11 + $0xa8] sm:$0xff] %v5666_v57 }
 0x23b   : > { %v4478_v3 = vpop.f32.mrb[111].mxu0  ;;  %v4590_v5 = vpop.f32.mrb[111].mxu1 }
 0x23c   : > { %v1684_v6 = vadd.f32 %v4476_v62, %v5509_v52  ;;  %v4479_v9 = vadd.f32 %v4478_v3, %v4477_v63  ;;  %v4591_v10 = vadd.f32 %v4590_v5, %v4589_v0 }
 0x23e   : > { %v1687_v12 = vadd.f32 %v4479_v9, %v5509_v52  ;;  %v5672_v13 = vadd.f32 %v4588_v18, %v1684_v6 }
 0x240   : > { %v4480_v14 = vpop.f32.mrb[112].mxu0  ;;  %v4592_v15 = vpop.f32.mrb[112].mxu1  ;;  %1905 = vst [vmem:[%s5518_s11 + $0xb0] sm:$0xff] %v5672_v13  ;;  %v5676_v22 = vadd.f32 %v4591_v10, %v1687_v12 }
 0x241   : > { %v4481_v29 = vpop.f32.mrb[113].mxu0  ;;  %v4593_v31 = vpop.f32.mrb[113].mxu1 }
 0x242   : > { %v4482_v34 = vadd.f32 %v4481_v29, %v4480_v14  ;;  %v4483_v35 = vpop.f32.mrb[114].mxu0  ;;  %v4594_v36 = vadd.f32 %v4593_v31, %v4592_v15  ;;  %v4595_v37 = vpop.f32.mrb[114].mxu1  ;;  %1906 = vst [vmem:[%s5518_s11 + $0xb8] sm:$0xff] %v5676_v22 }
 0x243   : > { %v4484_v40 = vpop.f32.mrb[115].mxu0  ;;  %v4596_v42 = vpop.f32.mrb[115].mxu1 }
 0x244   : > { %v1692_v43 = vadd.f32 %v4482_v34, %v5509_v52  ;;  %v4485_v44 = vadd.f32 %v4484_v40, %v4483_v35  ;;  %v4597_v46 = vadd.f32 %v4596_v42, %v4595_v37 }
 0x246   : > { %v1695_v47 = vadd.f32 %v4485_v44, %v5509_v52  ;;  %v5682_v48 = vadd.f32 %v4594_v36, %v1692_v43 }
 0x248   : > { %v4486_v25 = vpop.f32.mrb[116].mxu0  ;;  %v4598_v26 = vpop.f32.mrb[116].mxu1  ;;  %1907 = vst [vmem:[%s5518_s11 + $0xc0] sm:$0xff] %v5682_v48  ;;  %v5686_v27 = vadd.f32 %v4597_v46, %v1695_v47 }
 0x249   : > { %v4487_v54 = vpop.f32.mrb[117].mxu0  ;;  %v4599_v55 = vpop.f32.mrb[117].mxu1 }
 0x24a   : > { %v4488_v58 = vadd.f32 %v4487_v54, %v4486_v25  ;;  %v4489_v60 = vpop.f32.mrb[118].mxu0  ;;  %v4600_v62 = vadd.f32 %v4599_v55, %v4598_v26  ;;  %v4601_v63 = vpop.f32.mrb[118].mxu1  ;;  %1908 = vst [vmem:[%s5518_s11 + $0xc8] sm:$0xff] %v5686_v27 }
 0x24b   : > { %v4490_v18 = vpop.f32.mrb[119].mxu0  ;;  %v4602_v0 = vpop.f32.mrb[119].mxu1 }
 0x24c   : > { %v1700_v3 = vadd.f32 %v4488_v58, %v5509_v52  ;;  %v4491_v5 = vadd.f32 %v4490_v18, %v4489_v60  ;;  %v4603_v6 = vadd.f32 %v4602_v0, %v4601_v63 }
 0x24e   : > { %v1703_v9 = vadd.f32 %v4491_v5, %v5509_v52  ;;  %v5692_v10 = vadd.f32 %v4600_v62, %v1700_v3 }
 0x250   : > { %v4492_v12 = vpop.f32.mrb[120].mxu0  ;;  %v4604_v14 = vpop.f32.mrb[120].mxu1  ;;  %1909 = vst [vmem:[%s5518_s11 + $0xd0] sm:$0xff] %v5692_v10  ;;  %v5696_v15 = vadd.f32 %v4603_v6, %v1703_v9 }
 0x251   : > { %v4493_v29 = vpop.f32.mrb[121].mxu0  ;;  %v4605_v31 = vpop.f32.mrb[121].mxu1 }
 0x252   : > { %v4494_v34 = vadd.f32 %v4493_v29, %v4492_v12  ;;  %v4495_v35 = vpop.f32.mrb[122].mxu0  ;;  %v4606_v36 = vadd.f32 %v4605_v31, %v4604_v14  ;;  %v4607_v37 = vpop.f32.mrb[122].mxu1  ;;  %1910 = vst [vmem:[%s5518_s11 + $0xd8] sm:$0xff] %v5696_v15 }
 0x253   : > { %v4496_v40 = vpop.f32.mrb[123].mxu0  ;;  %v4608_v42 = vpop.f32.mrb[123].mxu1 }
 0x254   : > { %v1708_v43 = vadd.f32 %v4494_v34, %v5509_v52  ;;  %v4497_v44 = vadd.f32 %v4496_v40, %v4495_v35  ;;  %v4609_v46 = vadd.f32 %v4608_v42, %v4607_v37 }
 0x256   : > { %v1711_v47 = vadd.f32 %v4497_v44, %v5509_v52  ;;  %v5702_v25 = vadd.f32 %v4606_v36, %v1708_v43 }
 0x258   : > { %v4498_v26 = vpop.f32.mrb[124].mxu0  ;;  %v4610_v54 = vpop.f32.mrb[124].mxu1  ;;  %1911 = vst [vmem:[%s5518_s11 + $0xe0] sm:$0xff] %v5702_v25  ;;  %v5706_v55 = vadd.f32 %v4609_v46, %v1711_v47 }
 0x259   : > { %v4499_v58 = vpop.f32.mrb[125].mxu0  ;;  %v4611_v60 = vpop.f32.mrb[125].mxu1 }
 0x25a   : > { %v4500_v62 = vadd.f32 %v4499_v58, %v4498_v26  ;;  %v4501_v63 = vpop.f32.mrb[126].mxu0  ;;  %v4612_v18 = vadd.f32 %v4611_v60, %v4610_v54  ;;  %v4613_v0 = vpop.f32.mrb[126].mxu1  ;;  %1912 = vst [vmem:[%s5518_s11 + $0xe8] sm:$0xff] %v5706_v55  ;;  %v5756_v54 = vsel %vm1917_vm0, %v5666_v57, -inf  ;;  %v5770_v57 = vsel %vm1917_vm0, %v5672_v13, -inf }
 0x25b   : > { %v4502_v3 = vpop.f32.mrb[127].mxu0  ;;  %v4614_v5 = vpop.f32.mrb[127].mxu1  ;;  %v5785_v13 = vsel %vm1917_vm0, %v5676_v22, -inf }
 0x25c   : > { %v1716_v6 = vadd.f32 %v4500_v62, %v5509_v52  ;;  %v4503_v9 = vadd.f32 %v4502_v3, %v4501_v63  ;;  %v4615_v12 = vadd.f32 %v4614_v5, %v4613_v0 }
 0x25e   : > { %v1719_v14 = vadd.f32 %v4503_v9, %v5509_v52  ;;  %v5712_v29 = vadd.f32 %v4612_v18, %v1716_v6  ;;  %v5798_v9 = vsel %vm1917_vm0, %v5682_v48, -inf  ;;  %v5813_v48 = vsel %vm1917_vm0, %v5686_v27, -inf }
 0x260   : > { %1913 = vst [vmem:[%s5518_s11 + $0xf0] sm:$0xff] %v5712_v29  ;;  %v5716_v31 = vadd.f32 %v4615_v12, %v1719_v14 }
 0x262   : > { %1914 = vst [vmem:[%s5518_s11 + $0xf8] sm:$0xff] %v5716_v31 }
 0x276   : > { %v1951_v34 = vpop.xlane.xlu0 %1950 }
 0x277   : > { %vm2014_vm1 = vcmp.eq.f32.partialorder %v5524_v4, %v1951_v34 }
 0x278   : > { %v5722_v35 = vsel %vm2014_vm1, %v5504_v28, 128 }
 0x279   : > { %v2079_v36 = vshra.s32 %v5722_v35, 16 }
 0x27a   : > { %v1953_v37 = vpop.xlane.xlu0 %1952 }
 0x27b   : > { %vm2015_vm2 = vcmp.eq.f32.partialorder %v5532_v17, %v1953_v37  ;;  %v5726_v52 = vcvt.s32.f32 %v2079_v36  ;;  %v5742_v17 = vsel %vm1917_vm0, %v5662_v53, -inf }
 0x27c   : > { %v5729_v40 = vsel %vm2015_vm2, %v5504_v28, 128 }
 0x27d   : > { %2082 = vmin.xlane.f32.xlu0 %v5726_v52  ;;  %v2093_v42 = vshra.s32 %v5729_v40, 16 }
 0x27e   : > { %v1955_v43 = vpop.xlane.xlu1 %1954 }
 0x27f   : > { %vm2016_vm3 = vcmp.eq.f32.partialorder %v5538_v32, %v1955_v43  ;;  %v5734_v4 = vcvt.s32.f32 %v2093_v42  ;;  %v5826_v42 = vsel %vm1917_vm0, %v5692_v10, -inf  ;;  %v5841_v10 = vsel %vm1917_vm0, %v5696_v15, -inf }
 0x280   : > { %v5737_v44 = vsel %vm2016_vm3, %v5504_v28, 128 }
 0x281   : > { %1990 = vmax.xlane.f32.xlu0 %v5742_v17  ;;  %2096 = vmin.xlane.f32.xlu1 %v5734_v4  ;;  %v2107_v46 = vshra.s32 %v5737_v44, 16 }
 0x282   : > { %v1957_v47 = vpop.xlane.xlu1 %1956 }
 0x283   : > { %vm2017_vm4 = vcmp.eq.f32.partialorder %v5546_v45, %v1957_v47  ;;  %v5748_v32 = vcvt.s32.f32 %v2107_v46 }
 0x284   : > { %v5751_v26 = vsel %vm2017_vm4, %v5504_v28, 128 }
 0x285   : > { %2110 = vmin.xlane.f32.xlu0 %v5748_v32  ;;  %1992 = vmax.xlane.f32.xlu1 %v5756_v54  ;;  %v2121_v53 = vshra.s32 %v5751_v26, 16 }
 0x286   : > { %v1959_v58 = vpop.xlane.xlu0 %1958 }
 0x287   : > { %vm2018_vm5 = vcmp.eq.f32.partialorder %v5553_v50, %v1959_v58  ;;  %v5762_v45 = vcvt.s32.f32 %v2121_v53 }
 0x288   : > { %v5765_v60 = vsel %vm2018_vm5, %v5504_v28, 128  ;;  %v1961_v62 = vpop.xlane.xlu1 %1960 }
 0x289   : > { %vm2019_vm6 = vcmp.eq.f32.partialorder %v5559_v56, %v1961_v62  ;;  %1994 = vmax.xlane.f32.xlu0 %v5770_v57  ;;  %2124 = vmin.xlane.f32.xlu1 %v5762_v45  ;;  %v2135_v63 = vshra.s32 %v5765_v60, 16  ;;  %v5854_v62 = vsel %vm1917_vm0, %v5702_v25, -inf  ;;  %v5869_v25 = vsel %vm1917_vm0, %v5706_v55, -inf }
 0x28a   : > { %v5777_v50 = vsel %vm2019_vm6, %v5504_v28, 128 }
 0x28b   : > { %v5779_v18 = vcvt.s32.f32 %v2135_v63  ;;  %v2149_v0 = vshra.s32 %v5777_v50, 16 }
 0x28d   : > { %1996 = vmax.xlane.f32.xlu1 %v5785_v13  ;;  %2138 = vmin.xlane.f32.xlu0 %v5779_v18  ;;  %v5790_v3 = vcvt.s32.f32 %v2149_v0 }
 0x28e   : > { %v1963_v56 = vpop.xlane.xlu0 %1962 }
 0x28f   : > { %vm2020_vm7 = vcmp.eq.f32.partialorder %v5567_v1, %v1963_v56 }
 0x290   : > { %v5793_v5 = vsel %vm2020_vm7, %v5504_v28, 128  ;;  %v1965_v6 = vpop.xlane.xlu1 %1964 }
 0x291   : > { %vm2021_vm8 = vcmp.eq.f32.partialorder %v5573_v11, %v1965_v6  ;;  %2152 = vmin.xlane.f32.xlu1 %v5790_v3  ;;  %1998 = vmax.xlane.f32.xlu0 %v5798_v9  ;;  %v2163_v22 = vshra.s32 %v5793_v5, 16 }
 0x292   : > { %v5805_v1 = vsel %vm2021_vm8, %v5504_v28, 128 }
 0x293   : > { %v5807_v12 = vcvt.s32.f32 %v2163_v22  ;;  %v2177_v14 = vshra.s32 %v5805_v1, 16 }
 0x295   : > { %2000 = vmax.xlane.f32.xlu1 %v5813_v48  ;;  %2166 = vmin.xlane.f32.xlu0 %v5807_v12  ;;  %v5818_v34 = vcvt.s32.f32 %v2177_v14  ;;  %v5882_v14 = vsel %vm1917_vm0, %v5712_v29, -inf  ;;  %v5897_v29 = vsel %vm1917_vm0, %v5716_v31, -inf }
 0x296   : > { %v1967_v11 = vpop.xlane.xlu0 %1966 }
 0x297   : > { %vm2022_vm9 = vcmp.eq.f32.partialorder %v5581_v33, %v1967_v11 }
 0x298   : > { %v5821_v36 = vsel %vm2022_vm9, %v5504_v28, 128  ;;  %v1969_v37 = vpop.xlane.xlu1 %1968 }
 0x299   : > { %vm2023_vm10 = vcmp.eq.f32.partialorder %v5587_v41, %v1969_v37  ;;  %2180 = vmin.xlane.f32.xlu1 %v5818_v34  ;;  %2002 = vmax.xlane.f32.xlu0 %v5826_v42  ;;  %v2191_v27 = vshra.s32 %v5821_v36, 16 }
 0x29a   : > { %v5833_v33 = vsel %vm2023_vm10, %v5504_v28, 128 }
 0x29b   : > { %v5835_v43 = vcvt.s32.f32 %v2191_v27  ;;  %v2205_v46 = vshra.s32 %v5833_v33, 16 }
 0x29d   : > { %2004 = vmax.xlane.f32.xlu1 %v5841_v10  ;;  %2194 = vmin.xlane.f32.xlu0 %v5835_v43  ;;  %v5846_v47 = vcvt.s32.f32 %v2205_v46 }
 0x29e   : > { %v1971_v41 = vpop.xlane.xlu0 %1970 }
 0x29f   : > { %vm2024_vm11 = vcmp.eq.f32.partialorder %v5595_v51, %v1971_v41 }
 0x2a0   : > { %v5849_v53 = vsel %vm2024_vm11, %v5504_v28, 128  ;;  %v1973_v58 = vpop.xlane.xlu1 %1972 }
 0x2a1   : > { %vm2025_vm12 = vcmp.eq.f32.partialorder %v5601_v59, %v1973_v58  ;;  %2208 = vmin.xlane.f32.xlu1 %v5846_v47  ;;  %2006 = vmax.xlane.f32.xlu0 %v5854_v62  ;;  %v2219_v15 = vshra.s32 %v5849_v53, 16 }
 0x2a2   : > { %v5861_v51 = vsel %vm2025_vm12, %v5504_v28, 128 }
 0x2a3   : > { %v5863_v63 = vcvt.s32.f32 %v2219_v15  ;;  %v2233_v0 = vshra.s32 %v5861_v51, 16 }
 0x2a5   : > { %2008 = vmax.xlane.f32.xlu1 %v5869_v25  ;;  %2222 = vmin.xlane.f32.xlu0 %v5863_v63  ;;  %v5874_v56 = vcvt.s32.f32 %v2233_v0 }
 0x2a6   : > { %v1975_v59 = vpop.xlane.xlu0 %1974 }
 0x2a7   : > { %vm2026_vm13 = vcmp.eq.f32.partialorder %v5609_v7, %v1975_v59 }
 0x2a8   : > { %v5877_v6 = vsel %vm2026_vm13, %v5504_v28, 128  ;;  %v1977_v22 = vpop.xlane.xlu1 %1976 }
 0x2a9   : > { %vm2027_vm14 = vcmp.eq.f32.partialorder %v5615_v16, %v1977_v22  ;;  %2236 = vmin.xlane.f32.xlu1 %v5874_v56  ;;  %2010 = vmax.xlane.f32.xlu0 %v5882_v14  ;;  %v2247_v55 = vshra.s32 %v5877_v6, 16 }
 0x2aa   : > { %v5889_v7 = vsel %vm2027_vm14, %v5504_v28, 128 }
 0x2ab   : > { %v5891_v11 = vcvt.s32.f32 %v2247_v55  ;;  %v2261_v37 = vshra.s32 %v5889_v7, 16 }
 0x2ad   : > { %2012 = vmax.xlane.f32.xlu1 %v5897_v29  ;;  %2250 = vmin.xlane.f32.xlu0 %v5891_v11  ;;  %v5902_v27 = vcvt.s32.f32 %v2261_v37 }
 0x2ae   : > { %v1979_v16 = vpop.xlane.xlu0 %1978 }
 0x2af   : > { %vm2028_vm15 = vcmp.eq.f32.partialorder %v5623_v39, %v1979_v16 }
 0x2b0   : > { %v5905_v46 = vsel %vm2028_vm15, %v5504_v28, 128  ;;  %v1981_v41 = vpop.xlane.xlu1 %1980 }
 0x2b1   : > { %vm2029_vm1 = vcmp.eq.f32.partialorder %v5629_v49, %v1981_v41  ;;  %2264 = vmin.xlane.f32.xlu1 %v5902_v27  ;;  %v2275_v31 = vshra.s32 %v5905_v46, 16 }
 0x2b2   : > { %v5911_v58 = vsel %vm2029_vm1, %v5504_v28, 128 }
 0x2b3   : > { %v5913_v15 = vcvt.s32.f32 %v2275_v31  ;;  %v2289_v0 = vshra.s32 %v5911_v58, 16 }
 0x2b5   : > { %2278 = vmin.xlane.f32.xlu0 %v5913_v15  ;;  %v5917_v39 = vcvt.s32.f32 %v2289_v0 }
 0x2b6   : > { %v1983_v59 = vpop.xlane.xlu0 %1982 }
 0x2b7   : > { %vm2030_vm0 = vcmp.eq.f32.partialorder %v5637_v61, %v1983_v59  ;;  %2292 = vmin.xlane.f32.xlu1 %v5917_v39 }
 0x2b8   : > { %v5922_v49 = vsel %vm2030_vm0, %v5504_v28, 128  ;;  %v1985_v22 = vpop.xlane.xlu1 %1984 }
 0x2b9   : > { %vm2031_vm2 = vcmp.eq.f32.partialorder %v5643_v8, %v1985_v22  ;;  %v2303_v55 = vshra.s32 %v5922_v49, 16 }
 0x2ba   : > { %v5927_v37 = vsel %vm2031_vm2, %v5504_v28, 128 }
 0x2bb   : > { %v5929_v16 = vcvt.s32.f32 %v2303_v55  ;;  %v2317_v41 = vshra.s32 %v5927_v37, 16 }
 0x2bd   : > { %2306 = vmin.xlane.f32.xlu0 %v5929_v16  ;;  %v5933_v61 = vcvt.s32.f32 %v2317_v41 }
 0x2be   : > { %v1987_v31 = vpop.xlane.xlu0 %1986 }
 0x2bf   : > { %vm2032_vm3 = vcmp.eq.f32.partialorder %v5651_v30, %v1987_v31  ;;  %2320 = vmin.xlane.f32.xlu1 %v5933_v61  ;;  %v4946_v31 = vld [vmem:[%s6765_s5] ss:$16 sps:$4 sm:$0xff]  }
 0x2c0   : > { %v5938_v8 = vsel %vm2032_vm3, %v5504_v28, 128  ;;  %v1989_v0 = vpop.xlane.xlu1 %1988 }
 0x2c1   : > { %vm2033_vm4 = vcmp.eq.f32.partialorder %v5657_v38, %v1989_v0  ;;  %v2331_v59 = vshra.s32 %v5938_v8, 16  ;;  %v4948_v38 = vld [vmem:[%s6765_s5 + $0x4] ss:$16 sps:$4 sm:$0xff]   ;;  %v4949_v0 = vld [vmem:[%s6765_s5 + $0x8] ss:$16 sps:$4 sm:$0xff]  }
 0x2c2   : > { %v5943_v22 = vsel %vm2033_vm4, %v5504_v28, 128  ;;  %2852 = vmatprep.subr.bf16.mxu0 %v4948_v38  ;;  %v4960_v38 = vld [vmem:[%s6765_s5 + $0x44] ss:$16 sps:$4 sm:$0xff]  }
 0x2c3   : > { %v5945_v55 = vcvt.s32.f32 %v2331_v59  ;;  %v2345_v41 = vshra.s32 %v5943_v22, 16  ;;  %v4951_v59 = vld [vmem:[%s6765_s5 + $0xc] ss:$16 sps:$4 sm:$0xff]   ;;  %2853 = vmatpush1.bf16.msra.mxu0 %v4946_v31 }
 0x2c4   : > { %3045 = vmatprep.subr.bf16.mxu1 %v4951_v59  ;;  %v4963_v31 = vld [vmem:[%s6765_s5 + $0x4c] ss:$16 sps:$4 sm:$0xff]   ;;  %v4958_v59 = vld [vmem:[%s6765_s5 + $0x40] ss:$16 sps:$4 sm:$0xff]  }
 0x2c5   : > { %2334 = vmin.xlane.f32.xlu0 %v5945_v55  ;;  %v5949_v30 = vcvt.s32.f32 %v2345_v41  ;;  %v4954_v41 = vld [vmem:[%s6765_s5 + $0x24] ss:$16 sps:$4 sm:$0xff]   ;;  %3046 = vmatpush1.bf16.msra.mxu1 %v4949_v0  ;;  %v4961_v0 = vld [vmem:[%s6765_s5 + $0x48] ss:$16 sps:$4 sm:$0xff]  }
 0x2c6   : > { %2854 = vmatprep.subr.bf16.mxu0 %v4954_v41  ;;  %3047 = vmatprep.subr.bf16.mxu1 %v4957_v24  ;;  %v4966_v41 = vld [vmem:[%s6765_s5 + $0x64] ss:$16 sps:$4 sm:$0xff]   ;;  %v4969_v24 = vld [vmem:[%s6765_s5 + $0x6c] ss:$16 sps:$4 sm:$0xff]  }
 0x2c7   : > { %2348 = vmin.xlane.f32.xlu1 %v5949_v30  ;;  %2855 = vmatpush1.bf16.msra.mxu0 %v4952_v23  ;;  %v4964_v23 = vld [vmem:[%s6765_s5 + $0x60] ss:$16 sps:$4 sm:$0xff]  }
 0x2c8   : > { %2856 = vmatprep.subr.bf16.mxu0 %v4960_v38  ;;  %v4972_v38 = vld [vmem:[%s6765_s5 + $0x84] ss:$16 sps:$4 sm:$0xff]  }
 0x2c9   : > { %3048 = vmatpush1.bf16.msra.mxu1 %v4955_v21  ;;  %v4967_v21 = vld [vmem:[%s6765_s5 + $0x68] ss:$16 sps:$4 sm:$0xff]  }
 0x2ca   : > { %3049 = vmatprep.subr.bf16.mxu1 %v4963_v31  ;;  %v4975_v31 = vld [vmem:[%s6765_s5 + $0x8c] ss:$16 sps:$4 sm:$0xff]  }
 0x2cb   : > { %2857 = vmatpush1.bf16.msra.mxu0 %v4958_v59  ;;  %v4970_v59 = vld [vmem:[%s6765_s5 + $0x80] ss:$16 sps:$4 sm:$0xff]  }
 0x2cc   : > { %2858 = vmatprep.subr.bf16.mxu0 %v4966_v41  ;;  %v4978_v41 = vld [vmem:[%s6765_s5 + $0xa4] ss:$16 sps:$4 sm:$0xff]  }
 0x2cd   : > { %3050 = vmatpush1.bf16.msra.mxu1 %v4961_v0  ;;  %v4973_v0 = vld [vmem:[%s6765_s5 + $0x88] ss:$16 sps:$4 sm:$0xff]  }
 0x2ce   : > { %3051 = vmatprep.subr.bf16.mxu1 %v4969_v24  ;;  %v4981_v24 = vld [vmem:[%s6765_s5 + $0xac] ss:$16 sps:$4 sm:$0xff]  }
 0x2cf   : > { %2859 = vmatpush1.bf16.msra.mxu0 %v4964_v23  ;;  %v4976_v23 = vld [vmem:[%s6765_s5 + $0xa0] ss:$16 sps:$4 sm:$0xff]  }
 0x2d0   : > { %2860 = vmatprep.subr.bf16.mxu0 %v4972_v38  ;;  %v2078_v38 = vand.u32 65535, %v5722_v35 }
 0x2d1   : > { %3052 = vmatpush1.bf16.msra.mxu1 %v4967_v21  ;;  %v4979_v21 = vld [vmem:[%s6765_s5 + $0xa8] ss:$16 sps:$4 sm:$0xff]  }
 0x2d2   : > { %3053 = vmatprep.subr.bf16.mxu1 %v4975_v31  ;;  %v2092_v31 = vand.u32 65535, %v5729_v40 }
 0x2d3   : > { %2861 = vmatpush1.bf16.msra.mxu0 %v4970_v59  ;;  %v2080_v59 = vcvt.s32.f32 %v2078_v38 }
 0x2d4   : > { %2862 = vmatprep.subr.bf16.mxu0 %v4978_v41  ;;  %v2094_v19 = vcvt.s32.f32 %v2092_v31 }
 0x2d5   : > { %3054 = vmatpush1.bf16.msra.mxu1 %v4973_v0 }
 0x2d6   : > { %3055 = vmatprep.subr.bf16.mxu1 %v4981_v24 }
 0x2d7   : > { %2863 = vmatpush1.bf16.msra.mxu0 %v4976_v23 }
 0x2d9   : > { %3056 = vmatpush1.bf16.msra.mxu1 %v4979_v21 }
 0x30a   : > { %v6026_v20 = vpop.xlane.xlu0 %2082 }
 0x30b   : > { %vm2084_vm5 = vcmp.eq.f32.partialorder %v5726_v52, %v6026_v20  ;;  %v2106_v52 = vand.u32 65535, %v5737_v44 }
 0x30c   : > { %v2085_v2 = vsel %vm2084_vm5, %v2080_v59, inf }
 0x30d   : > { %2086 = vmin.xlane.f32.xlu0 %v2085_v2  ;;  %v2108_v31 = vcvt.s32.f32 %v2106_v52 }
 0x30e   : > { %v6030_v0 = vpop.xlane.xlu1 %2096  ;;  %v1991_v41 = vpop.xlane.xlu0 %1990 }
 0x30f   : > { %vm2034_vm6 = vcmp.eq.f32.partialorder %v5742_v17, %v1991_v41  ;;  %vm2098_vm7 = vcmp.eq.f32.partialorder %v5734_v4, %v6030_v0 }
 0x310   : > { %v6036_v35 = vsel %vm2034_vm6, %v5504_v28, 128  ;;  %v2099_v40 = vsel %vm2098_vm7, %v2094_v19, inf  ;;  %v2120_v19 = vand.u32 65535, %v5751_v26  ;;  %v2134_v26 = vand.u32 65535, %v5765_v60 }
 0x311   : > { %2100 = vmin.xlane.f32.xlu1 %v2099_v40  ;;  %v2359_v24 = vshra.s32 %v6036_v35, 16 }
 0x312   : > { %v1993_v23 = vpop.xlane.xlu1 %1992  ;;  %v6040_v2 = vpop.xlane.xlu0 %2110 }
 0x313   : > { %vm2035_vm8 = vcmp.eq.f32.partialorder %v5756_v54, %v1993_v23  ;;  %v6043_v21 = vcvt.s32.f32 %v2359_v24  ;;  %vm2112_vm9 = vcmp.eq.f32.partialorder %v5748_v32, %v6040_v2  ;;  %v4984_v23 = vld [vmem:[%s6765_s5 + $0xc4] ss:$16 sps:$4 sm:$0xff]  }
 0x314   : > { %v6046_v17 = vsel %vm2035_vm8, %v5504_v28, 128  ;;  %v2113_v41 = vsel %vm2112_vm9, %v2108_v31, inf  ;;  %v2148_v31 = vand.u32 65535, %v5777_v50  ;;  %2864 = vmatprep.subr.bf16.mxu0 %v4984_v23  ;;  %v4993_v50 = vld [vmem:[%s6765_s5 + $0xec] ss:$16 sps:$4 sm:$0xff]  }
 0x315   : > { %2362 = vmin.xlane.f32.xlu0 %v6043_v21  ;;  %v2373_v4 = vshra.s32 %v6046_v17, 16  ;;  %v4991_v23 = vld [vmem:[%s6765_s5 + $0xe8] ss:$16 sps:$4 sm:$0xff]  }
 0x316   : > { %v6053_v44 = vpop.xlane.xlu1 %2124  ;;  %v1995_v38 = vpop.xlane.xlu0 %1994 }
 0x317   : > { %vm2036_vm10 = vcmp.eq.f32.partialorder %v5770_v57, %v1995_v38  ;;  %v6056_v54 = vcvt.s32.f32 %v2373_v4  ;;  %vm2126_vm11 = vcmp.eq.f32.partialorder %v5762_v45, %v6053_v44  ;;  %v2122_v57 = vcvt.s32.f32 %v2120_v19  ;;  %v4987_v45 = vld [vmem:[%s6765_s5 + $0xcc] ss:$16 sps:$4 sm:$0xff]   ;;  %v4982_v19 = vld [vmem:[%s6765_s5 + $0xc0] ss:$16 sps:$4 sm:$0xff]  }
 0x318   : > { %v6059_v59 = vsel %vm2036_vm10, %v5504_v28, 128  ;;  %3057 = vmatprep.subr.bf16.mxu1 %v4987_v45  ;;  %2865 = vmatpush1.bf16.msra.mxu0 %v4982_v19  ;;  %v2162_v19 = vand.u32 65535, %v5793_v5 }
 0x319   : > { %2376 = vmin.xlane.f32.xlu1 %v6056_v54  ;;  %2114 = vmin.xlane.f32.xlu0 %v2113_v41  ;;  %v2387_v32 = vshra.s32 %v6059_v59, 16  ;;  %v2127_v60 = vsel %vm2126_vm11, %v2122_v57, inf }
 0x31a   : > { %v1997_v40 = vpop.xlane.xlu1 %1996  ;;  %v6066_v24 = vpop.xlane.xlu0 %2138 }
 0x31b   : > { %vm2037_vm12 = vcmp.eq.f32.partialorder %v5785_v13, %v1997_v40  ;;  %v6069_v52 = vcvt.s32.f32 %v2387_v32  ;;  %v4985_v13 = vld [vmem:[%s6765_s5 + $0xc8] ss:$16 sps:$4 sm:$0xff]   ;;  %vm2140_vm13 = vcmp.eq.f32.partialorder %v5779_v18, %v6066_v24  ;;  %v2136_v40 = vcvt.s32.f32 %v2134_v26 }
 0x31c   : > { %v6078_v4 = vsel %vm2037_vm12, %v5504_v28, 128  ;;  %3058 = vmatpush1.bf16.msra.mxu1 %v4985_v13 }
 0x31d   : > { %2128 = vmin.xlane.f32.xlu1 %v2127_v60  ;;  %2390 = vmin.xlane.f32.xlu0 %v6069_v52  ;;  %v2401_v38 = vshra.s32 %v6078_v4, 16  ;;  %v4990_v60 = vld [vmem:[%s6765_s5 + $0xe4] ss:$16 sps:$4 sm:$0xff]   ;;  %v2141_v26 = vsel %vm2140_vm13, %v2136_v40, inf }
 0x31e   : > { %v6091_v41 = vpop.xlane.xlu1 %2152  ;;  %v1999_v32 = vpop.xlane.xlu0 %1998  ;;  %2866 = vmatprep.subr.bf16.mxu0 %v4990_v60  ;;  %3059 = vmatprep.subr.bf16.mxu1 %v4993_v50  ;;  %v2164_v50 = vcvt.s32.f32 %v2162_v19 }
 0x31f   : > { %vm2038_vm14 = vcmp.eq.f32.partialorder %v5798_v9, %v1999_v32  ;;  %v6094_v57 = vcvt.s32.f32 %v2401_v38  ;;  %v4988_v9 = vld [vmem:[%s6765_s5 + $0xe0] ss:$16 sps:$4 sm:$0xff]   ;;  %vm2154_vm15 = vcmp.eq.f32.partialorder %v5790_v3, %v6091_v41  ;;  %v2150_v32 = vcvt.s32.f32 %v2148_v31 }
 0x320   : > { %v6103_v18 = vsel %vm2038_vm14, %v5504_v28, 128  ;;  %2867 = vmatpush1.bf16.msra.mxu0 %v4988_v9  ;;  %3060 = vmatpush1.bf16.msra.mxu1 %v4991_v23  ;;  %v2176_v31 = vand.u32 65535, %v5805_v1 }
 0x321   : > { %2404 = vmin.xlane.f32.xlu1 %v6094_v57  ;;  %2142 = vmin.xlane.f32.xlu0 %v2141_v26  ;;  %v2415_v45 = vshra.s32 %v6103_v18, 16  ;;  %v2155_v3 = vsel %vm2154_vm15, %v2150_v32, inf }
 0x322   : > { %v2001_v13 = vpop.xlane.xlu1 %2000  ;;  %v6116_v38 = vpop.xlane.xlu0 %2166 }
 0x323   : > { %vm2039_vm1 = vcmp.eq.f32.partialorder %v5813_v48, %v2001_v13  ;;  %v6119_v40 = vcvt.s32.f32 %v2415_v45  ;;  %vm2168_vm0 = vcmp.eq.f32.partialorder %v5807_v12, %v6116_v38  ;;  %v2190_v12 = vand.u32 65535, %v5821_v36 }
 0x324   : > { %v6122_v26 = vsel %vm2039_vm1, %v5504_v28, 128  ;;  %v2169_v45 = vsel %vm2168_vm0, %v2164_v50, inf  ;;  %v2204_v36 = vand.u32 65535, %v5833_v33 }
 0x325   : > { %2156 = vmin.xlane.f32.xlu1 %v2155_v3  ;;  %2418 = vmin.xlane.f32.xlu0 %v6119_v40  ;;  %v2429_v5 = vshra.s32 %v6122_v26, 16 }
 0x326   : > { %v6129_v60 = vpop.xlane.xlu1 %2180  ;;  %v2003_v48 = vpop.xlane.xlu0 %2002 }
 0x327   : > { %vm2040_vm2 = vcmp.eq.f32.partialorder %v5826_v42, %v2003_v48  ;;  %v6132_v9 = vcvt.s32.f32 %v2429_v5  ;;  %vm2182_vm3 = vcmp.eq.f32.partialorder %v5818_v34, %v6129_v60  ;;  %v2178_v42 = vcvt.s32.f32 %v2176_v31 }
 0x328   : > { %v6135_v23 = vsel %vm2040_vm2, %v5504_v28, 128 }
 0x329   : > { %2432 = vmin.xlane.f32.xlu1 %v6132_v9  ;;  %2170 = vmin.xlane.f32.xlu0 %v2169_v45  ;;  %v2443_v1 = vshra.s32 %v6135_v23, 16  ;;  %v2183_v5 = vsel %vm2182_vm3, %v2178_v42, inf }
 0x32a   : > { %v2005_v13 = vpop.xlane.xlu1 %2004  ;;  %v6142_v19 = vpop.xlane.xlu0 %2194 }
 0x32b   : > { %vm2041_vm4 = vcmp.eq.f32.partialorder %v5841_v10, %v2005_v13  ;;  %v6145_v32 = vcvt.s32.f32 %v2443_v1  ;;  %vm2196_vm5 = vcmp.eq.f32.partialorder %v5835_v43, %v6142_v19  ;;  %v2192_v10 = vcvt.s32.f32 %v2190_v12 }
 0x32c   : > { %v6148_v3 = vsel %vm2041_vm4, %v5504_v28, 128  ;;  %v2218_v43 = vand.u32 65535, %v5849_v53  ;;  %v2232_v53 = vand.u32 65535, %v5861_v51 }
 0x32d   : > { %2184 = vmin.xlane.f32.xlu1 %v2183_v5  ;;  %2446 = vmin.xlane.f32.xlu0 %v6145_v32  ;;  %v2457_v34 = vshra.s32 %v6148_v3, 16  ;;  %v2197_v1 = vsel %vm2196_vm5, %v2192_v10, inf }
 0x32e   : > { %v6155_v48 = vpop.xlane.xlu1 %2208  ;;  %v2007_v31 = vpop.xlane.xlu0 %2006 }
 0x32f   : > { %vm2042_vm6 = vcmp.eq.f32.partialorder %v5854_v62, %v2007_v31  ;;  %v6158_v50 = vcvt.s32.f32 %v2457_v34  ;;  %vm2210_vm7 = vcmp.eq.f32.partialorder %v5846_v47, %v6155_v48  ;;  %v2206_v62 = vcvt.s32.f32 %v2204_v36 }
 0x330   : > { %v6161_v45 = vsel %vm2042_vm6, %v5504_v28, 128 }
 0x331   : > { %2460 = vmin.xlane.f32.xlu1 %v6158_v50  ;;  %2198 = vmin.xlane.f32.xlu0 %v2197_v1  ;;  %v2471_v33 = vshra.s32 %v6161_v45, 16  ;;  %v2211_v34 = vsel %vm2210_vm7, %v2206_v62, inf }
 0x332   : > { %v2009_v13 = vpop.xlane.xlu1 %2008  ;;  %v6168_v12 = vpop.xlane.xlu0 %2222 }
 0x333   : > { %vm2043_vm8 = vcmp.eq.f32.partialorder %v5869_v25, %v2009_v13  ;;  %v6171_v42 = vcvt.s32.f32 %v2471_v33  ;;  %vm2224_vm9 = vcmp.eq.f32.partialorder %v5863_v63, %v6168_v12  ;;  %v2220_v25 = vcvt.s32.f32 %v2218_v43 }
 0x334   : > { %v6174_v5 = vsel %vm2043_vm8, %v5504_v28, 128  ;;  %v2246_v63 = vand.u32 65535, %v5877_v6  ;;  %v2260_v6 = vand.u32 65535, %v5889_v7 }
 0x335   : > { %2212 = vmin.xlane.f32.xlu1 %v2211_v34  ;;  %2474 = vmin.xlane.f32.xlu0 %v6171_v42  ;;  %v2485_v47 = vshra.s32 %v6174_v5, 16  ;;  %v2225_v33 = vsel %vm2224_vm9, %v2220_v25, inf }
 0x336   : > { %v6181_v31 = vpop.xlane.xlu1 %2236  ;;  %v2011_v36 = vpop.xlane.xlu0 %2010 }
 0x337   : > { %vm2044_vm10 = vcmp.eq.f32.partialorder %v5882_v14, %v2011_v36  ;;  %v6184_v10 = vcvt.s32.f32 %v2485_v47  ;;  %vm2238_vm11 = vcmp.eq.f32.partialorder %v5874_v56, %v6181_v31  ;;  %v2234_v14 = vcvt.s32.f32 %v2232_v53 }
 0x338   : > { %v6187_v1 = vsel %vm2044_vm10, %v5504_v28, 128  ;;  %v2274_v53 = vand.u32 65535, %v5905_v46 }
 0x339   : > { %2488 = vmin.xlane.f32.xlu1 %v6184_v10  ;;  %2226 = vmin.xlane.f32.xlu0 %v2225_v33  ;;  %v2499_v51 = vshra.s32 %v6187_v1, 16  ;;  %v2239_v47 = vsel %vm2238_vm11, %v2234_v14, inf }
 0x33a   : > { %v2013_v13 = vpop.xlane.xlu1 %2012  ;;  %v6194_v43 = vpop.xlane.xlu0 %2250  ;;  %v2276_v7 = vcvt.s32.f32 %v2274_v53 }
 0x33b   : > { %vm2045_vm12 = vcmp.eq.f32.partialorder %v5897_v29, %v2013_v13  ;;  %v6197_v62 = vcvt.s32.f32 %v2499_v51  ;;  %vm2252_vm13 = vcmp.eq.f32.partialorder %v5891_v11, %v6194_v43  ;;  %v2248_v29 = vcvt.s32.f32 %v2246_v63 }
 0x33c   : > { %v6200_v34 = vsel %vm2045_vm12, %v5504_v28, 128  ;;  %v2288_v51 = vand.u32 65535, %v5911_v58  ;;  %v2262_v11 = vcvt.s32.f32 %v2260_v6  ;;  %v2316_v58 = vand.u32 65535, %v5927_v37 }
 0x33d   : > { %2240 = vmin.xlane.f32.xlu1 %v2239_v47  ;;  %2502 = vmin.xlane.f32.xlu0 %v6197_v62  ;;  %v2513_v56 = vshra.s32 %v6200_v34, 16  ;;  %v2253_v33 = vsel %vm2252_vm13, %v2248_v29, inf  ;;  %v2344_v37 = vand.u32 65535, %v5943_v22  ;;  %v2103_v22 = vcvt.f32.s32 %v6030_v0 }
 0x33e   : > { %v6208_v36 = vpop.xlane.xlu1 %2264  ;;  %v2290_v47 = vcvt.s32.f32 %v2288_v51  ;;  %v2117_v0 = vcvt.f32.s32 %v6040_v2 }
 0x33f   : > { %v6210_v25 = vcvt.s32.f32 %v2513_v56  ;;  %vm2266_vm14 = vcmp.eq.f32.partialorder %v5902_v27, %v6208_v36  ;;  %v2302_v27 = vand.u32 65535, %v5922_v49 }
 0x340   : > { %v2267_v63 = vsel %vm2266_vm14, %v2262_v11, inf }
 0x341   : > { %2516 = vmin.xlane.f32.xlu1 %v6210_v25  ;;  %2254 = vmin.xlane.f32.xlu0 %v2253_v33  ;;  %v2304_v53 = vcvt.s32.f32 %v2302_v27  ;;  %v2318_v33 = vcvt.s32.f32 %v2316_v58  ;;  %v2358_v58 = vand.u32 65535, %v6036_v35  ;;  %v5035_v35 = vmov 1.0|1.0  }
 0x342   : > { %v6216_v13 = vpop.xlane.xlu0 %2278 }
 0x343   : > { %vm2280_vm15 = vcmp.eq.f32.partialorder %v5913_v15, %v6216_v13 }
 0x344   : > { %v6220_v46 = vpop.xlane.xlu1 %2292  ;;  %v2281_v14 = vsel %vm2280_vm15, %v2276_v7, inf }
 0x345   : > { %2268 = vmin.xlane.f32.xlu1 %v2267_v63  ;;  %2282 = vmin.xlane.f32.xlu0 %v2281_v14  ;;  %vm2294_vm1 = vcmp.eq.f32.partialorder %v5917_v39, %v6220_v46  ;;  %v2330_v39 = vand.u32 65535, %v5938_v8  ;;  %v2346_v63 = vcvt.s32.f32 %v2344_v37  ;;  %v2089_v8 = vcvt.f32.s32 %v6026_v20 }
 0x346   : > { %v2295_v56 = vsel %vm2294_vm1, %v2290_v47, inf }
 0x347   : > { %v2332_v11 = vcvt.s32.f32 %v2330_v39  ;;  %v2090_v47 = vshll.u32 %v2089_v8, 16  ;;  %v2372_v39 = vand.u32 65535, %v6046_v17  ;;  %v2386_v17 = vand.u32 65535, %v6059_v59 }
 0x348   : > { %v2118_v8 = vshll.u32 %v2117_v0, 16  ;;  %v2400_v59 = vand.u32 65535, %v6078_v4 }
 0x349   : > { %2296 = vmin.xlane.f32.xlu1 %v2295_v56  ;;  %v2104_v56 = vshll.u32 %v2103_v22, 16 }
 0x34a   : > { %v6226_v6 = vpop.xlane.xlu0 %2306 }
 0x34b   : > { %vm2308_vm0 = vcmp.eq.f32.partialorder %v5929_v16, %v6226_v6 }
 0x34c   : > { %v6230_v15 = vpop.xlane.xlu1 %2320  ;;  %v2309_v29 = vsel %vm2308_vm0, %v2304_v53, inf }
 0x34d   : > { %2310 = vmin.xlane.f32.xlu0 %v2309_v29  ;;  %vm2322_vm2 = vcmp.eq.f32.partialorder %v5933_v61, %v6230_v15 }
 0x34e   : > { %v2323_v49 = vsel %vm2322_vm2, %v2318_v33, inf }
 0x34f   : > { %2324 = vmin.xlane.f32.xlu1 %v2323_v49 }
 0x352   : > { %v6236_v51 = vpop.xlane.xlu0 %2334 }
 0x353   : > { %vm2336_vm3 = vcmp.eq.f32.partialorder %v5945_v55, %v6236_v51 }
 0x354   : > { %v6240_v16 = vpop.xlane.xlu1 %2348  ;;  %v2337_v7 = vsel %vm2336_vm3, %v2332_v11, inf }
 0x355   : > { %2338 = vmin.xlane.f32.xlu0 %v2337_v7  ;;  %vm2350_vm4 = vcmp.eq.f32.partialorder %v5949_v30, %v6240_v16  ;;  %v2360_v30 = vcvt.s32.f32 %v2358_v58  ;;  %v2374_v7 = vcvt.s32.f32 %v2372_v39  ;;  %v2402_v39 = vcvt.s32.f32 %v2400_v59 }
 0x356   : > { %v2351_v61 = vsel %vm2350_vm4, %v2346_v63, inf  ;;  %v6780_v63 = vmov 0  }
 0x357   : > { %2352 = vmin.xlane.f32.xlu1 %v2351_v61 }
 0x39a   : > { %v2087_v14 = vpop.xlane.xlu0 %2086 }
 0x39b   : > { %v2088_v27 = vcvt.f32.s32 %v2087_v14 }
 0x39d   : > { %v2091_v53 = vadd.s32 %v2090_v47, %v2088_v27  ;;  %v2388_v27 = vcvt.s32.f32 %v2386_v17 }
 0x39e   : > { %v2101_v55 = vpop.xlane.xlu1 %2100 }
 0x39f   : > { %v2102_v29 = vcvt.f32.s32 %v2101_v55  ;;  %vm2526_vm5 = vcmp.eq.s32.totalorder %v5504_v28, %v2091_v53  ;;  %v2159_v53 = vcvt.f32.s32 %v6091_v41  ;;  %v2428_v41 = vand.u32 65535, %v6122_v26 }
 0x3a1   : > { %v2105_v33 = vadd.s32 %v2104_v56, %v2102_v29  ;;  %v2414_v29 = vand.u32 65535, %v6103_v18 }
 0x3a2   : > { %v6248_v49 = vpop.xlane.xlu0 %2362 }
 0x3a3   : > { %vm2527_vm6 = vcmp.eq.s32.totalorder %v5504_v28, %v2105_v33  ;;  %vm2364_vm7 = vcmp.eq.f32.partialorder %v6043_v21, %v6248_v49  ;;  %v2131_v21 = vcvt.f32.s32 %v6053_v44  ;;  %v2416_v0 = vcvt.s32.f32 %v2414_v29 }
 0x3a4   : > { %vm4293_vm8 = vmpackc.low %vm2527_vm6, %vm2526_vm5  ;;  %v2365_v20 = vsel %vm2364_vm7, %v2360_v30, inf  ;;  %v2470_v29 = vand.u32 65535, %v6161_v45 }
 0x3a5   : > { %4294 = vmatmul.mubr.msk.bf16.vlgmr.msra.gmra.mrb[128].mxu0 %vm4293_vm8, %v5035_v35  ;;  %4326 = vmatmul.mubr.msk.bf16.vlgmr.msra.gmra.mrb[128].mxu1 %vm4293_vm8, %v5035_v35  ;;  %v2132_v47 = vshll.u32 %v2131_v21, 16  ;;  %v2173_v21 = vcvt.f32.s32 %v6116_v38 }
 0x3a6   : > { %2366 = vmin.xlane.f32.xlu0 %v2365_v20  ;;  %v6258_v37 = vpop.xlane.xlu1 %2376  ;;  %v2115_v11 = vpop.xlane.xlu0 %2114  ;;  %2894 = vmatprep.mubr.bf16.mxu0 %v6780_v63 }
 0x3a7   : > { %v2116_v61 = vcvt.f32.s32 %v2115_v11  ;;  %vm2378_vm9 = vcmp.eq.f32.partialorder %v6056_v54, %v6258_v37  ;;  %3087 = vmatprep.mubr.bf16.mxu1 %v6780_v63  ;;  %v2145_v54 = vcvt.f32.s32 %v6066_v24  ;;  %v2174_v38 = vshll.u32 %v2173_v21, 16 }
 0x3a8   : > { %v2379_v2 = vsel %vm2378_vm9, %v2374_v7, inf }
 0x3a9   : > { %2380 = vmin.xlane.f32.xlu1 %v2379_v2  ;;  %v2119_v58 = vadd.s32 %v2118_v8, %v2116_v61  ;;  %v2146_v24 = vshll.u32 %v2145_v54, 16  ;;  %v2187_v61 = vcvt.f32.s32 %v6129_v60  ;;  %v2442_v2 = vand.u32 65535, %v6135_v23 }
 0x3aa   : > { %v2129_v14 = vpop.xlane.xlu1 %2128  ;;  %v6266_v22 = vpop.xlane.xlu0 %2390  ;;  %v2456_v60 = vand.u32 65535, %v6148_v3 }
 0x3ab   : > { %v2130_v55 = vcvt.f32.s32 %v2129_v14  ;;  %vm2392_vm10 = vcmp.eq.f32.partialorder %v6069_v52, %v6266_v22  ;;  %vm2528_vm12 = vcmp.eq.s32.totalorder %v5504_v28, %v2119_v58  ;;  %v2430_v14 = vcvt.s32.f32 %v2428_v41 }
 0x3ac   : > { %v2393_v44 = vsel %vm2392_vm10, %v2388_v27, inf  ;;  %v2444_v58 = vcvt.s32.f32 %v2442_v2  ;;  %v2472_v41 = vcvt.s32.f32 %v2470_v29  ;;  %v2299_v29 = vcvt.f32.s32 %v6220_v46 }
 0x3ad   : > { %v2133_v56 = vadd.s32 %v2132_v47, %v2130_v55  ;;  %2394 = vmin.xlane.f32.xlu0 %v2393_v44 }
 0x3ae   : > { %v6273_v4 = vpop.xlane.xlu1 %2404  ;;  %v2143_v33 = vpop.xlane.xlu0 %2142 }
 0x3af   : > { %v2144_v30 = vcvt.f32.s32 %v2143_v33  ;;  %vm2406_vm11 = vcmp.eq.f32.partialorder %v6094_v57, %v6273_v4  ;;  %vm2529_vm13 = vcmp.eq.s32.totalorder %v5504_v28, %v2133_v56  ;;  %v2160_v57 = vshll.u32 %v2159_v53, 16 }
 0x3b0   : > { %v2407_v52 = vsel %vm2406_vm11, %v2402_v39, inf  ;;  %vm4295_vm14 = vmpackc.low %vm2529_vm13, %vm2528_vm12  ;;  %v2201_v56 = vcvt.f32.s32 %v6142_v19  ;;  %v2215_v53 = vcvt.f32.s32 %v6155_v48  ;;  %v2484_v48 = vand.u32 65535, %v6174_v5 }
 0x3b1   : > { %2408 = vmin.xlane.f32.xlu1 %v2407_v52  ;;  %4296 = vmatmul.mubr.msk.bf16.gmra.mrb[132].mxu0 %vm4295_vm14, %v5035_v35  ;;  %v2147_v17 = vadd.s32 %v2146_v24, %v2144_v30  ;;  %v2458_v30 = vcvt.s32.f32 %v2456_v60 }
 0x3b2   : > { %4328 = vmatmul.mubr.msk.bf16.gmra.mrb[132].mxu1 %vm4295_vm14, %v5035_v35  ;;  %v2157_v18 = vpop.xlane.xlu1 %2156  ;;  %v6282_v20 = vpop.xlane.xlu0 %2418  ;;  %2904 = vmatprep.mubr.bf16.mxu0 %v6780_v63  ;;  %v2202_v19 = vshll.u32 %v2201_v56, 16 }
 0x3b3   : > { %v2158_v11 = vcvt.f32.s32 %v2157_v18  ;;  %vm2420_vm15 = vcmp.eq.f32.partialorder %v6119_v40, %v6282_v20  ;;  %3097 = vmatprep.mubr.bf16.mxu1 %v6780_v63  ;;  %vm2530_vm0 = vcmp.eq.s32.totalorder %v5504_v28, %v2147_v17  ;;  %v2229_v17 = vcvt.f32.s32 %v6168_v12 }
 0x3b4   : > { %v2421_v7 = vsel %vm2420_vm15, %v2416_v0, inf }
 0x3b5   : > { %v2161_v26 = vadd.s32 %v2160_v57, %v2158_v11  ;;  %2422 = vmin.xlane.f32.xlu0 %v2421_v7  ;;  %v2243_v11 = vcvt.f32.s32 %v6181_v31  ;;  %v2498_v7 = vand.u32 65535, %v6187_v1  ;;  %v2230_v12 = vshll.u32 %v2229_v17, 16  ;;  %v4994_v31 = vld [vmem:[%s6767_s7 + $0x40] sm:$0xff]   ;;  %v4998_v17 = vld [vmem:[%s6767_s7 + $0x48] sm:$0xff]  }
 0x3b6   : > { %v6291_v8 = vpop.xlane.xlu1 %2432  ;;  %v2171_v59 = vpop.xlane.xlu0 %2170  ;;  %v2512_v1 = vand.u32 65535, %v6200_v34  ;;  %4616 = vmatprep.subr.bf16.mxu0 %v4994_v31  ;;  %v2257_v34 = vcvt.f32.s32 %v6194_v43  ;;  %v5001_v31 = vld [vmem:[%s6767_s7 + $0x88] sm:$0xff]  }
 0x3b7   : > { %v2172_v27 = vcvt.f32.s32 %v2171_v59  ;;  %vm2434_vm1 = vcmp.eq.f32.partialorder %v6132_v9, %v6291_v8  ;;  %vm2531_vm2 = vcmp.eq.s32.totalorder %v5504_v28, %v2161_v26  ;;  %v2188_v9 = vshll.u32 %v2187_v61, 16 }
 0x3b8   : > { %v2435_v40 = vsel %vm2434_vm1, %v2430_v14, inf  ;;  %vm4297_vm3 = vmpackc.low %vm2531_vm2, %vm2530_vm0  ;;  %v2486_v61 = vcvt.s32.f32 %v2484_v48  ;;  %v2500_v14 = vcvt.s32.f32 %v2498_v7  ;;  %v2514_v43 = vcvt.s32.f32 %v2512_v1 }
 0x3b9   : > { %2436 = vmin.xlane.f32.xlu1 %v2435_v40  ;;  %4298 = vmatmul.mubr.msk.bf16.gmra.mrb[136].mxu0 %vm4297_vm3, %v5035_v35  ;;  %v2175_v55 = vadd.s32 %v2174_v38, %v2172_v27  ;;  %v2244_v27 = vshll.u32 %v2243_v11, 16 }
 0x3ba   : > { %4330 = vmatmul.mubr.msk.bf16.gmra.mrb[136].mxu1 %vm4297_vm3, %v5035_v35  ;;  %v2185_v23 = vpop.xlane.xlu1 %2184  ;;  %v6300_v47 = vpop.xlane.xlu0 %2446  ;;  %2914 = vmatprep.mubr.bf16.mxu0 %v6780_v63 }
 0x3bb   : > { %v2186_v44 = vcvt.f32.s32 %v2185_v23  ;;  %vm2448_vm4 = vcmp.eq.f32.partialorder %v6145_v32, %v6300_v47  ;;  %3107 = vmatprep.mubr.bf16.mxu1 %v6780_v63  ;;  %vm2532_vm6 = vcmp.eq.s32.totalorder %v5504_v28, %v2175_v55  ;;  %v2271_v55 = vcvt.f32.s32 %v6208_v36 }
 0x3bc   : > { %v2449_v54 = vsel %vm2448_vm4, %v2444_v58, inf  ;;  %v4995_v58 = vld [vmem:[%s6767_s7] sm:$0xff]   ;;  %v2285_v36 = vcvt.f32.s32 %v6216_v13  ;;  %v2300_v13 = vshll.u32 %v2299_v29, 16 }
 0x3bd   : > { %v2189_v3 = vadd.s32 %v2188_v9, %v2186_v44  ;;  %2450 = vmin.xlane.f32.xlu0 %v2449_v54  ;;  %v4996_v9 = vld [vmem:[%s6767_s7 + $0xc0] sm:$0xff]   ;;  %4617 = vmatpush3.bf16.msra.mxu0 %v4995_v58 }
 0x3be   : > { %v6309_v33 = vpop.xlane.xlu1 %2460  ;;  %v2199_v39 = vpop.xlane.xlu0 %2198  ;;  %4728 = vmatprep.subr.bf16.mxu1 %v4996_v9  ;;  %v2286_v48 = vshll.u32 %v2285_v36, 16  ;;  %4618 = vmatprep.subr.bf16.mxu0 %v4998_v17  ;;  %v5012_v29 = vld [vmem:[%s6767_s7 + $0x20] sm:$0xff]  }
 0x3bf   : > { %v2200_v52 = vcvt.f32.s32 %v2199_v39  ;;  %vm2462_vm5 = vcmp.eq.f32.partialorder %v6158_v50, %v6309_v33  ;;  %vm2533_vm7 = vcmp.eq.s32.totalorder %v5504_v28, %v2189_v3  ;;  %v2216_v50 = vshll.u32 %v2215_v53, 16 }
 0x3c0   : > { %v2463_v32 = vsel %vm2462_vm5, %v2458_v30, inf  ;;  %vm4299_vm8 = vmpackc.low %vm2533_vm7, %vm2532_vm6  ;;  %v2258_v53 = vshll.u32 %v2257_v34, 16  ;;  %v2272_v30 = vshll.u32 %v2271_v55, 16  ;;  %v5003_v34 = vld [vmem:[%s6767_s7 + $0x10] sm:$0xff]   ;;  %v5008_v55 = vld [vmem:[%s6767_s7 + $0x18] sm:$0xff]  }
 0x3c1   : > { %2464 = vmin.xlane.f32.xlu1 %v2463_v32  ;;  %4300 = vmatmul.mubr.msk.bf16.gmra.mrb[140].mxu0 %vm4299_vm8, %v5035_v35  ;;  %v2203_v18 = vadd.s32 %v2202_v19, %v2200_v52 }
 0x3c2   : > { %4332 = vmatmul.mubr.msk.bf16.gmra.mrb[140].mxu1 %vm4299_vm8, %v5035_v35  ;;  %v2213_v45 = vpop.xlane.xlu1 %2212  ;;  %v6318_v24 = vpop.xlane.xlu0 %2474  ;;  %2924 = vmatprep.mubr.bf16.mxu0 %v6780_v63 }
 0x3c3   : > { %v2214_v0 = vcvt.f32.s32 %v2213_v45  ;;  %vm2476_vm9 = vcmp.eq.f32.partialorder %v6171_v42, %v6318_v24  ;;  %3117 = vmatprep.mubr.bf16.mxu1 %v6780_v63  ;;  %vm2534_vm11 = vcmp.eq.s32.totalorder %v5504_v28, %v2203_v18 }
 0x3c4   : > { %v2477_v57 = vsel %vm2476_vm9, %v2472_v41, inf  ;;  %v2313_v41 = vcvt.f32.s32 %v6226_v6 }
 0x3c5   : > { %v2217_v5 = vadd.s32 %v2216_v50, %v2214_v0  ;;  %2478 = vmin.xlane.f32.xlu0 %v2477_v57  ;;  %v2327_v0 = vcvt.f32.s32 %v6230_v15 }
 0x3c6   : > { %v6327_v21 = vpop.xlane.xlu1 %2488  ;;  %v2227_v26 = vpop.xlane.xlu0 %2226 }
 0x3c7   : > { %v2228_v2 = vcvt.f32.s32 %v2227_v26  ;;  %vm2490_vm10 = vcmp.eq.f32.partialorder %v6184_v10, %v6327_v21  ;;  %vm2535_vm12 = vcmp.eq.s32.totalorder %v5504_v28, %v2217_v5  ;;  %v2314_v5 = vshll.u32 %v2313_v41, 16  ;;  %v5022_v41 = vld [vmem:[%s6767_s7 + $0x78] sm:$0xff]  }
 0x3c8   : > { %v2491_v42 = vsel %vm2490_vm10, %v2486_v61, inf  ;;  %vm4301_vm13 = vmpackc.low %vm2535_vm12, %vm2534_vm11  ;;  %v2328_v7 = vshll.u32 %v2327_v0, 16  ;;  %v2369_v0 = vcvt.f32.s32 %v6248_v49 }
 0x3c9   : > { %2492 = vmin.xlane.f32.xlu1 %v2491_v42  ;;  %4302 = vmatmul.mubr.msk.bf16.gmra.mrb[144].mxu0 %vm4301_vm13, %v5035_v35  ;;  %v2231_v40 = vadd.s32 %v2230_v12, %v2228_v2  ;;  %v4999_v42 = vld [vmem:[%s6767_s7 + $0x8] sm:$0xff]  }
 0x3ca   : > { %4334 = vmatmul.mubr.msk.bf16.gmra.mrb[144].mxu1 %vm4301_vm13, %v5035_v35  ;;  %v2241_v59 = vpop.xlane.xlu1 %2240  ;;  %v6339_v10 = vpop.xlane.xlu0 %2502  ;;  %2934 = vmatprep.mubr.bf16.mxu0 %v6780_v63  ;;  %v5000_v12 = vld [vmem:[%s6767_s7 + $0xc8] sm:$0xff]  }
 0x3cb   : > { %v2242_v38 = vcvt.f32.s32 %v2241_v59  ;;  %vm2504_vm14 = vcmp.eq.f32.partialorder %v6197_v62, %v6339_v10  ;;  %3127 = vmatprep.mubr.bf16.mxu1 %v6780_v63  ;;  %v4997_v62 = vld [vmem:[%s6767_s7 + $0x80] sm:$0xff]   ;;  %vm2536_vm1 = vcmp.eq.s32.totalorder %v5504_v28, %v2231_v40  ;;  %v2355_v59 = vcvt.f32.s32 %v6240_v16  ;;  %4619 = vmatpush3.bf16.msra.mxu0 %v4999_v42  ;;  %v5004_v16 = vld [vmem:[%s6767_s7 + $0xd0] sm:$0xff]  }
 0x3cc   : > { %v2505_v60 = vsel %vm2504_vm14, %v2500_v14, inf  ;;  %4729 = vmatpush3.bf16.msra.mxu1 %v4997_v62  ;;  %v2341_v40 = vcvt.f32.s32 %v6236_v51  ;;  %v5006_v51 = vld [vmem:[%s6767_s7 + $0x58] sm:$0xff]  }
 0x3cd   : > { %v2245_v23 = vadd.s32 %v2244_v27, %v2242_v38  ;;  %2506 = vmin.xlane.f32.xlu0 %v2505_v60  ;;  %4730 = vmatprep.subr.bf16.mxu1 %v5000_v12  ;;  %v5002_v60 = vld [vmem:[%s6767_s7 + $0x50] sm:$0xff]   ;;  %v2356_v58 = vshll.u32 %v2355_v59, 16  ;;  %v5007_v62 = vld [vmem:[%s6767_s7 + $0xd8] sm:$0xff]   ;;  %v2411_v12 = vcvt.f32.s32 %v6273_v4  ;;  %v2425_v4 = vcvt.f32.s32 %v6282_v20 }
 0x3ce   : > { %v6356_v44 = vpop.xlane.xlu1 %2516  ;;  %v2255_v54 = vpop.xlane.xlu0 %2254  ;;  %4620 = vmatprep.subr.bf16.mxu0 %v5002_v60 }
 0x3cf   : > { %v2256_v56 = vcvt.f32.s32 %v2255_v54  ;;  %vm2518_vm15 = vcmp.eq.f32.partialorder %v6210_v25, %v6356_v44  ;;  %vm2537_vm0 = vcmp.eq.s32.totalorder %v5504_v28, %v2245_v23  ;;  %v5005_v23 = vld [vmem:[%s6767_s7 + $0x90] sm:$0xff]   ;;  %4621 = vmatpush3.bf16.msra.mxu0 %v5003_v34  ;;  %v5009_v54 = vld [vmem:[%s6767_s7 + $0x98] sm:$0xff]   ;;  %v2426_v60 = vshll.u32 %v2425_v4, 16 }
 0x3d0   : > { %v2519_v3 = vsel %vm2518_vm15, %v2514_v43, inf  ;;  %vm4303_vm2 = vmpackc.low %vm2537_vm0, %vm2536_vm1  ;;  %4731 = vmatpush3.bf16.msra.mxu1 %v5001_v31  ;;  %v2342_v43 = vshll.u32 %v2341_v40, 16  ;;  %4622 = vmatprep.subr.bf16.mxu0 %v5006_v51  ;;  %v2439_v40 = vcvt.f32.s32 %v6291_v8  ;;  %v2453_v8 = vcvt.f32.s32 %v6300_v47 }
 0x3d1   : > { %2520 = vmin.xlane.f32.xlu1 %v2519_v3  ;;  %4304 = vmatmul.mubr.msk.bf16.gmra.mrb[148].mxu0 %vm4303_vm2, %v5035_v35  ;;  %v2259_v52 = vadd.s32 %v2258_v53, %v2256_v56  ;;  %v5010_v3 = vld [vmem:[%s6767_s7 + $0x60] sm:$0xff]  }
 0x3d2   : > { %4336 = vmatmul.mubr.msk.bf16.gmra.mrb[148].mxu1 %vm4303_vm2, %v5035_v35  ;;  %v2269_v25 = vpop.xlane.xlu1 %2268  ;;  %v2283_v39 = vpop.xlane.xlu0 %2282  ;;  %2944 = vmatprep.mubr.bf16.mxu0 %v6780_v63  ;;  %v5011_v53 = vld [vmem:[%s6767_s7 + $0xe0] sm:$0xff]   ;;  %v2440_v20 = vshll.u32 %v2439_v40, 16 }
 0x3d3   : > { %v2270_v32 = vcvt.f32.s32 %v2269_v25  ;;  %v2284_v19 = vcvt.f32.s32 %v2283_v39  ;;  %3137 = vmatprep.mubr.bf16.mxu1 %v6780_v63  ;;  %vm2538_vm3 = vcmp.eq.s32.totalorder %v5504_v28, %v2259_v52  ;;  %4732 = vmatprep.subr.bf16.mxu1 %v5004_v16  ;;  %v5013_v25 = vld [vmem:[%s6767_s7 + $0xa0] sm:$0xff]   ;;  %v5014_v39 = vld [vmem:[%s6767_s7 + $0x68] sm:$0xff]  }
 0x3d4   : > { %4733 = vmatpush3.bf16.msra.mxu1 %v5005_v23  ;;  %4623 = vmatpush3.bf16.msra.mxu0 %v5008_v55  ;;  %v5016_v52 = vld [vmem:[%s6767_s7 + $0x28] sm:$0xff]   ;;  %v2454_v55 = vshll.u32 %v2453_v8, 16 }
 0x3d5   : > { %v2273_v45 = vadd.s32 %v2272_v30, %v2270_v32  ;;  %v2287_v18 = vadd.s32 %v2286_v48, %v2284_v19  ;;  %4734 = vmatprep.subr.bf16.mxu1 %v5007_v62  ;;  %4624 = vmatprep.subr.bf16.mxu0 %v5010_v3  ;;  %v5015_v30 = vld [vmem:[%s6767_s7 + $0xe8] sm:$0xff]   ;;  %v5018_v19 = vld [vmem:[%s6767_s7 + $0x70] sm:$0xff]  }
 0x3d6   : > { %v2297_v50 = vpop.xlane.xlu1 %2296  ;;  %v5017_v32 = vld [vmem:[%s6767_s7 + $0xa8] sm:$0xff]   ;;  %v5019_v48 = vld [vmem:[%s6767_s7 + $0xf0] sm:$0xff]  }
 0x3d7   : > { %v2298_v46 = vcvt.f32.s32 %v2297_v50  ;;  %vm2539_vm4 = vcmp.eq.s32.totalorder %v5504_v28, %v2273_v45  ;;  %vm2540_vm6 = vcmp.eq.s32.totalorder %v5504_v28, %v2287_v18  ;;  %v5020_v45 = vld [vmem:[%s6767_s7 + $0x30] sm:$0xff]   ;;  %v5023_v50 = vld [vmem:[%s6767_s7 + $0xf8] sm:$0xff]  }
 0x3d8   : > { %vm4305_vm5 = vmpackc.low %vm2539_vm4, %vm2538_vm3  ;;  %4735 = vmatpush3.bf16.msra.mxu1 %v5009_v54  ;;  %4625 = vmatpush3.bf16.msra.mxu0 %v5012_v29  ;;  %v5024_v18 = vld [vmem:[%s6767_s7 + $0x38] sm:$0xff]  }
 0x3d9   : > { %v2301_v57 = vadd.s32 %v2300_v13, %v2298_v46  ;;  %4306 = vmatmul.mubr.msk.bf16.gmra.mrb[152].mxu0 %vm4305_vm5, %v5035_v35  ;;  %4736 = vmatprep.subr.bf16.mxu1 %v5011_v53  ;;  %v5021_v13 = vld [vmem:[%s6767_s7 + $0xb0] sm:$0xff]   ;;  %v5025_v46 = vld [vmem:[%s6767_s7 + $0xb8] sm:$0xff]  }
 0x3da   : > { %4338 = vmatmul.mubr.msk.bf16.gmra.mrb[152].mxu1 %vm4305_vm5, %v5035_v35  ;;  %v2311_v6 = vpop.xlane.xlu0 %2310  ;;  %2954 = vmatprep.mubr.bf16.mxu0 %v6780_v63 }
 0x3db   : > { %v2312_v11 = vcvt.f32.s32 %v2311_v6  ;;  %3147 = vmatprep.mubr.bf16.mxu1 %v6780_v63  ;;  %vm2541_vm7 = vcmp.eq.s32.totalorder %v5504_v28, %v2301_v57  ;;  %4626 = vmatprep.subr.bf16.mxu0 %v5014_v39  ;;  %v2383_v57 = vcvt.f32.s32 %v6258_v37 }
 0x3dc   : > { %v2325_v15 = vpop.xlane.xlu1 %2324  ;;  %vm4307_vm8 = vmpackc.low %vm2541_vm7, %vm2540_vm6  ;;  %4737 = vmatpush3.bf16.msra.mxu1 %v5013_v25  ;;  %4627 = vmatpush3.bf16.msra.mxu0 %v5016_v52 }
 0x3dd   : > { %v2315_v26 = vadd.s32 %v2314_v5, %v2312_v11  ;;  %v2326_v61 = vcvt.f32.s32 %v2325_v15  ;;  %4738 = vmatprep.subr.bf16.mxu1 %v5015_v30  ;;  %4628 = vmatprep.subr.bf16.mxu0 %v5018_v19  ;;  %v2370_v5 = vshll.u32 %v2369_v0, 16  ;;  %v2384_v15 = vshll.u32 %v2383_v57, 16  ;;  %v6783_v0 = vld [vmem:[#allocation2_spill] sm:$0xff] }
 0x3de   : > { %v6784_v57 = vsub.s32 0, %v6783_v0 }
 0x3df   : > { %v2329_v2 = vadd.s32 %v2328_v7, %v2326_v61  ;;  %vm2542_vm9 = vcmp.eq.s32.totalorder %v5504_v28, %v2315_v26  ;;  %v2397_v61 = vcvt.f32.s32 %v6266_v22  ;;  %v2412_v22 = vshll.u32 %v2411_v12, 16 }
 0x3e0   : > { %4739 = vmatpush3.bf16.msra.mxu1 %v5017_v32  ;;  %4629 = vmatpush3.bf16.msra.mxu0 %v5020_v45 }
 0x3e1   : > { %4308 = vmatmul.mubr.msk.bf16.gmra.mrb[156].mxu0 %vm4307_vm8, %v5035_v35  ;;  %vm2543_vm10 = vcmp.eq.s32.totalorder %v5504_v28, %v2329_v2  ;;  %4740 = vmatprep.subr.bf16.mxu1 %v5019_v48  ;;  %v2398_v49 = vshll.u32 %v2397_v61, 16  ;;  %v2523_v48 = vcvt.f32.s32 %v6356_v44 }
 0x3e2   : > { %4340 = vmatmul.mubr.msk.bf16.gmra.mrb[156].mxu1 %vm4307_vm8, %v5035_v35  ;;  %2964 = vmatprep.mubr.bf16.mxu0 %v6780_v63  ;;  %vm6395_vm11 = vmpackc.low %vm2543_vm10, %vm2542_vm9  ;;  %v2339_v14 = vpop.xlane.xlu0 %2338 }
 0x3e3   : > { %3157 = vmatprep.mubr.bf16.mxu1 %v6780_v63  ;;  %v2340_v9 = vcvt.f32.s32 %v2339_v14  ;;  %4630 = vmatprep.subr.bf16.mxu0 %v5022_v41 }
 0x3e4   : > { %v2353_v27 = vpop.xlane.xlu1 %2352  ;;  %4741 = vmatpush3.bf16.msra.mxu1 %v5021_v13  ;;  %4631 = vmatpush3.bf16.msra.mxu0 %v5024_v18 }
 0x3e5   : > { %v2354_v38 = vcvt.f32.s32 %v2353_v27  ;;  %v2343_v36 = vadd.s32 %v2342_v43, %v2340_v9  ;;  %4742 = vmatprep.subr.bf16.mxu1 %v5023_v50  ;;  %v2467_v9 = vcvt.f32.s32 %v6309_v33  ;;  %v2481_v33 = vcvt.f32.s32 %v6318_v24 }
 0x3e7   : > { %v2357_v56 = vadd.s32 %v2356_v58, %v2354_v38  ;;  %vm2544_vm13 = vcmp.eq.s32.totalorder %v5504_v28, %v2343_v36  ;;  %v2468_v47 = vshll.u32 %v2467_v9, 16  ;;  %v2495_v36 = vcvt.f32.s32 %v6327_v21 }
 0x3e8   : > { %4743 = vmatpush3.bf16.msra.mxu1 %v5025_v46  ;;  %v2482_v25 = vshll.u32 %v2481_v33, 16  ;;  %v2509_v21 = vcvt.f32.s32 %v6339_v10  ;;  %v2524_v10 = vshll.u32 %v2523_v48, 16  ;;  %v2670_v46 = vld [vmem:[%s6766_s6] sm:$0xf] }
 0x3e9   : > { %4310 = vmatmul.mubr.msk.bf16.gmra.mrb[160].mxu0 %vm6395_vm11, %v5035_v35  ;;  %vm2545_vm12 = vcmp.eq.s32.totalorder %v5504_v28, %v2357_v56  ;;  %v2496_v24 = vshll.u32 %v2495_v36, 16 }
 0x3ea   : > { %4342 = vmatmul.mubr.msk.bf16.gmra.mrb[160].mxu1 %vm6395_vm11, %v5035_v35  ;;  %2974 = vmatprep.mubr.bf16.mxu0 %v6780_v63  ;;  %vm4311_vm14 = vmpackc.low %vm2545_vm12, %vm2544_vm13  ;;  %v2510_v13 = vshll.u32 %v2509_v21, 16 }
 0x3eb   : > { %3167 = vmatprep.mubr.bf16.mxu1 %v6780_v63 }
 0x3f1   : > { %4312 = vmatmul.mubr.msk.bf16.gmra.mrb[164].mxu0 %vm4311_vm14, %v5035_v35 }
 0x3f2   : > { %4344 = vmatmul.mubr.msk.bf16.gmra.mrb[164].mxu1 %vm4311_vm14, %v5035_v35  ;;  %2984 = vmatprep.mubr.bf16.mxu0 %v6780_v63 }
 0x3f3   : > { %3177 = vmatprep.mubr.bf16.mxu1 %v6780_v63 }
 0x433   : > { %v2367_v17 = vpop.xlane.xlu0 %2366 }
 0x434   : > { %v2368_v6 = vcvt.f32.s32 %v2367_v17  ;;  %v6785_v17 = vsub.s32 2, %v6783_v0 }
 0x436   : > { %v2381_v11 = vpop.xlane.xlu1 %2380  ;;  %v2371_v7 = vadd.s32 %v2370_v5, %v2368_v6  ;;  %v6543_v6 = vrot.slane %v2670_v46, %v6785_v17  ;;  %v6786_v5 = vsub.s32 1, %v6783_v0 }
 0x437   : > { %v2382_v26 = vcvt.f32.s32 %v2381_v11  ;;  %v6787_v11 = vsub.s32 3, %v6783_v0 }
 0x438   : > { %vm2546_vm15 = vcmp.eq.s32.totalorder %v5504_v28, %v2371_v7 }
 0x439   : > { %v2385_v2 = vadd.s32 %v2384_v15, %v2382_v26  ;;  %v6551_v15 = vrot.slane %v2670_v46, %v6787_v11 }
 0x43a   : > { %v2395_v42 = vpop.xlane.xlu0 %2394 }
 0x43b   : > { %v2396_v31 = vcvt.f32.s32 %v2395_v42  ;;  %vm2547_vm1 = vcmp.eq.s32.totalorder %v5504_v28, %v2385_v2 }
 0x43c   : > { %vm4313_vm0 = vmpackc.low %vm2547_vm1, %vm2546_vm15 }
 0x43d   : > { %4314 = vmatmul.mubr.msk.bf16.gmra.mrb[168].mxu0 %vm4313_vm0, %v5035_v35  ;;  %4346 = vmatmul.mubr.msk.bf16.gmra.mrb[168].mxu1 %vm4313_vm0, %v5035_v35  ;;  %v2399_v1 = vadd.s32 %v2398_v49, %v2396_v31 }
 0x43e   : > { %v2409_v37 = vpop.xlane.xlu1 %2408  ;;  %2994 = vmatprep.mubr.bf16.mxu0 %v6780_v63  ;;  %3187 = vmatprep.mubr.bf16.mxu1 %v6780_v63 }
 0x43f   : > { %v2410_v59 = vcvt.f32.s32 %v2409_v37  ;;  %vm2548_vm2 = vcmp.eq.s32.totalorder %v5504_v28, %v2399_v1 }
 0x441   : > { %v2413_v14 = vadd.s32 %v2412_v22, %v2410_v59 }
 0x442   : > { %v2423_v27 = vpop.xlane.xlu0 %2422 }
 0x443   : > { %v2424_v38 = vcvt.f32.s32 %v2423_v27  ;;  %vm2549_vm3 = vcmp.eq.s32.totalorder %v5504_v28, %v2413_v14 }
 0x444   : > { %vm4315_vm4 = vmpackc.low %vm2549_vm3, %vm2548_vm2 }
 0x445   : > { %4316 = vmatmul.mubr.msk.bf16.gmra.mrb[172].mxu0 %vm4315_vm4, %v5035_v35  ;;  %4348 = vmatmul.mubr.msk.bf16.gmra.mrb[172].mxu1 %vm4315_vm4, %v5035_v35  ;;  %v2427_v16 = vadd.s32 %v2426_v60, %v2424_v38 }
 0x446   : > { %v2437_v34 = vpop.xlane.xlu1 %2436  ;;  %3004 = vmatprep.mubr.bf16.mxu0 %v6780_v63  ;;  %3197 = vmatprep.mubr.bf16.mxu1 %v6780_v63 }
 0x447   : > { %v2438_v23 = vcvt.f32.s32 %v2437_v34  ;;  %vm2550_vm5 = vcmp.eq.s32.totalorder %v5504_v28, %v2427_v16 }
 0x449   : > { %v2441_v51 = vadd.s32 %v2440_v20, %v2438_v23 }
 0x44a   : > { %v2451_v58 = vpop.xlane.xlu0 %2450 }
 0x44b   : > { %v2452_v62 = vcvt.f32.s32 %v2451_v58  ;;  %vm2551_vm6 = vcmp.eq.s32.totalorder %v5504_v28, %v2441_v51 }
 0x44c   : > { %vm4317_vm7 = vmpackc.low %vm2551_vm6, %vm2550_vm5 }
 0x44d   : > { %4318 = vmatmul.mubr.msk.bf16.gmra.mrb[176].mxu0 %vm4317_vm7, %v5035_v35  ;;  %4350 = vmatmul.mubr.msk.bf16.gmra.mrb[176].mxu1 %vm4317_vm7, %v5035_v35  ;;  %v2455_v43 = vadd.s32 %v2454_v55, %v2452_v62 }
 0x44e   : > { %v2465_v54 = vpop.xlane.xlu1 %2464  ;;  %3014 = vmatprep.mubr.bf16.mxu0 %v6780_v63  ;;  %3207 = vmatprep.mubr.bf16.mxu1 %v6780_v63 }
 0x44f   : > { %v2466_v56 = vcvt.f32.s32 %v2465_v54  ;;  %vm2552_vm8 = vcmp.eq.s32.totalorder %v5504_v28, %v2455_v43 }
 0x451   : > { %v2469_v3 = vadd.s32 %v2468_v47, %v2466_v56 }
 0x452   : > { %v2479_v53 = vpop.xlane.xlu0 %2478 }
 0x453   : > { %v2480_v29 = vcvt.f32.s32 %v2479_v53  ;;  %vm2553_vm9 = vcmp.eq.s32.totalorder %v5504_v28, %v2469_v3 }
 0x454   : > { %vm4319_vm10 = vmpackc.low %vm2553_vm9, %vm2552_vm8 }
 0x455   : > { %4320 = vmatmul.mubr.msk.bf16.gmra.mrb[180].mxu0 %vm4319_vm10, %v5035_v35  ;;  %4352 = vmatmul.mubr.msk.bf16.gmra.mrb[180].mxu1 %vm4319_vm10, %v5035_v35  ;;  %v2483_v30 = vadd.s32 %v2482_v25, %v2480_v29 }
 0x456   : > { %v2493_v39 = vpop.xlane.xlu1 %2492  ;;  %3024 = vmatprep.mubr.bf16.mxu0 %v6780_v63  ;;  %3217 = vmatprep.mubr.bf16.mxu1 %v6780_v63 }
 0x457   : > { %v2494_v52 = vcvt.f32.s32 %v2493_v39  ;;  %vm2554_vm11 = vcmp.eq.s32.totalorder %v5504_v28, %v2483_v30 }
 0x459   : > { %v2497_v32 = vadd.s32 %v2496_v24, %v2494_v52 }
 0x45a   : > { %v2507_v19 = vpop.xlane.xlu0 %2506 }
 0x45b   : > { %v2508_v45 = vcvt.f32.s32 %v2507_v19  ;;  %vm2555_vm12 = vcmp.eq.s32.totalorder %v5504_v28, %v2497_v32 }
 0x45c   : > { %vm4321_vm13 = vmpackc.low %vm2555_vm12, %vm2554_vm11 }
 0x45d   : > { %4322 = vmatmul.mubr.msk.bf16.gmra.mrb[184].mxu0 %vm4321_vm13, %v5035_v35  ;;  %4354 = vmatmul.mubr.msk.bf16.gmra.mrb[184].mxu1 %vm4321_vm13, %v5035_v35  ;;  %v2511_v50 = vadd.s32 %v2510_v13, %v2508_v45 }
 0x45e   : > { %v2521_v41 = vpop.xlane.xlu1 %2520  ;;  %3034 = vmatprep.mubr.bf16.mxu0 %v6780_v63  ;;  %3227 = vmatprep.mubr.bf16.mxu1 %v6780_v63  ;;  %v6539_v63 = vrot.slane %v2670_v46, %v6784_v57 }
 0x45f   : > { %v2522_v18 = vcvt.f32.s32 %v2521_v41  ;;  %vm2556_vm14 = vcmp.eq.s32.totalorder %v5504_v28, %v2511_v50 }
 0x461   : > { %v2525_v44 = vadd.s32 %v2524_v10, %v2522_v18 }
 0x463   : > { %vm2557_vm15 = vcmp.eq.s32.totalorder %v5504_v28, %v2525_v44  ;;  %v6547_v28 = vrot.slane %v2670_v46, %v6786_v5 }
 0x464   : > { %vm4323_vm1 = vmpackc.low %vm2557_vm15, %vm2556_vm14 }
 0x465   : > { %4324 = vmatmul.mubr.msk.bf16.gmra.mrb[188].mxu0 %vm4323_vm1, %v5035_v35  ;;  %4356 = vmatmul.mubr.msk.bf16.gmra.mrb[188].mxu1 %vm4323_vm1, %v5035_v35 }
 0x478   : > { %v2886_v35 = vpop.f32.mrb[128].mxu0  ;;  %v3079_v7 = vpop.f32.mrb[128].mxu1 }
 0x479   : > { %v2887_v26 = vadd.f32 %v2886_v35, %v6539_v63  ;;  %v3080_v61 = vadd.f32 %v3079_v7, %v6543_v6  ;;  %v2888_v2 = vpop.f32.mrb[129].mxu0  ;;  %v3081_v42 = vpop.f32.mrb[129].mxu1 }
 0x47a   : > { %v2889_v12 = vadd.f32 %v2888_v2, %v6547_v28  ;;  %v3082_v31 = vadd.f32 %v3081_v42, %v6551_v15  ;;  %v2890_v49 = vpop.f32.mrb[130].mxu0  ;;  %v3083_v37 = vpop.f32.mrb[130].mxu1 }
 0x47b   : > { %v2891_v22 = vadd.f32 %v2890_v49, %v6539_v63  ;;  %v3084_v1 = vadd.f32 %v3083_v37, %v6543_v6  ;;  %v2892_v59 = vpop.f32.mrb[131].mxu0  ;;  %v3085_v4 = vpop.f32.mrb[131].mxu1  ;;  %v3238_v40 = vmax.f32 %v2887_v26, 0.0  ;;  %v3240_v38 = vmax.f32 %v3080_v61, 0.0 }
 0x47c   : > { %v2893_v14 = vadd.f32 %v2892_v59, %v6547_v28  ;;  %v3086_v27 = vadd.f32 %v3085_v4, %v6551_v15  ;;  %v3239_v20 = vmax.f32 %v2889_v12, 0.0  ;;  %v3241_v16 = vmax.f32 %v3082_v31, 0.0 }
 0x47d   : > { %v3242_v60 = vmax.f32 %v2891_v22, 0.0  ;;  %v3244_v34 = vmax.f32 %v3084_v1, 0.0 }
 0x47e   : > { %v3243_v23 = vmax.f32 %v2893_v14, 0.0  ;;  %v3245_v8 = vmax.f32 %v3086_v27, 0.0 }
 0x47f   : > { %v3366_v51 = vpack.c.bf16 %v3242_v60, %v3238_v40  ;;  %v3368_v58 = vpack.c.bf16 %v3244_v34, %v3240_v38 }
 0x480   : > { %v3367_v9 = vpack.c.bf16 %v3243_v23, %v3239_v20  ;;  %v3369_v62 = vpack.c.bf16 %v3245_v8, %v3241_v16 }
 0x482   : > { %3725 = vmatprep.mubr.bf16.mxu0 %v3367_v9  ;;  %3886 = vmatprep.mubr.bf16.mxu1 %v3369_v62 }
 0x483   : > { %3726 = vmatmul.mubr.bf16.vlgmr.msra.gmra.mrb[192].mxu0 %v3366_v51  ;;  %3887 = vmatmul.mubr.bf16.vlgmr.msra.gmra.mrb[192].mxu1 %v3368_v58 }
 0x484   : > { %v2896_v55 = vpop.f32.mrb[132].mxu0 }
 0x485   : > { %v2897_v54 = vadd.f32 %v2896_v55, %v6539_v63  ;;  %v3089_v47 = vpop.f32.mrb[132].mxu1  ;;  %v2898_v43 = vpop.f32.mrb[133].mxu0 }
 0x486   : > { %v3090_v56 = vadd.f32 %v3089_v47, %v6543_v6  ;;  %v2899_v33 = vadd.f32 %v2898_v43, %v6547_v28  ;;  %v3091_v3 = vpop.f32.mrb[133].mxu1  ;;  %v2900_v53 = vpop.f32.mrb[134].mxu0 }
 0x487   : > { %v3092_v36 = vadd.f32 %v3091_v3, %v6551_v15  ;;  %v2901_v29 = vadd.f32 %v2900_v53, %v6539_v63  ;;  %v3093_v25 = vpop.f32.mrb[134].mxu1  ;;  %v2902_v39 = vpop.f32.mrb[135].mxu0  ;;  %v3246_v21 = vmax.f32 %v2897_v54, 0.0 }
 0x488   : > { %v3094_v24 = vadd.f32 %v3093_v25, %v6543_v6  ;;  %v2903_v30 = vadd.f32 %v2902_v39, %v6547_v28  ;;  %v3095_v52 = vpop.f32.mrb[135].mxu1  ;;  %v3248_v48 = vmax.f32 %v3090_v56, 0.0  ;;  %v3247_v45 = vmax.f32 %v2899_v33, 0.0 }
 0x489   : > { %v3250_v32 = vmax.f32 %v2901_v29, 0.0  ;;  %v3096_v19 = vadd.f32 %v3095_v52, %v6551_v15  ;;  %v3249_v10 = vmax.f32 %v3092_v36, 0.0 }
 0x48a   : > { %v3252_v13 = vmax.f32 %v3094_v24, 0.0  ;;  %v3251_v41 = vmax.f32 %v2903_v30, 0.0 }
 0x48b   : > { %v3370_v50 = vpack.c.bf16 %v3250_v32, %v3246_v21  ;;  %v3253_v18 = vmax.f32 %v3096_v19, 0.0 }
 0x48c   : > { %v3372_v44 = vpack.c.bf16 %v3252_v13, %v3248_v48  ;;  %v3371_v46 = vpack.c.bf16 %v3251_v41, %v3247_v45  ;;  %v2906_v0 = vpop.f32.mrb[136].mxu0 }
 0x48d   : > { %v3373_v57 = vpack.c.bf16 %v3253_v18, %v3249_v10  ;;  %v2907_v17 = vadd.f32 %v2906_v0, %v6539_v63  ;;  %v3099_v5 = vpop.f32.mrb[136].mxu1  ;;  %v2908_v11 = vpop.f32.mrb[137].mxu0 }
 0x48e   : > { %v3100_v35 = vadd.f32 %v3099_v5, %v6543_v6  ;;  %v2909_v7 = vadd.f32 %v2908_v11, %v6547_v28  ;;  %v3101_v26 = vpop.f32.mrb[137].mxu1  ;;  %v2910_v61 = vpop.f32.mrb[138].mxu0  ;;  %3733 = vmatprep.mubr.bf16.mxu0 %v3371_v46 }
 0x48f   : > { %v3102_v2 = vadd.f32 %v3101_v26, %v6551_v15  ;;  %v2911_v42 = vadd.f32 %v2910_v61, %v6539_v63  ;;  %v3103_v12 = vpop.f32.mrb[138].mxu1  ;;  %3894 = vmatprep.mubr.bf16.mxu1 %v3373_v57  ;;  %v2912_v31 = vpop.f32.mrb[139].mxu0  ;;  %3734 = vmatmul.mubr.bf16.gmra.mrb[196].mxu0 %v3370_v50  ;;  %v3254_v1 = vmax.f32 %v2907_v17, 0.0 }
 0x490   : > { %v3104_v49 = vadd.f32 %v3103_v12, %v6543_v6  ;;  %v2913_v37 = vadd.f32 %v2912_v31, %v6547_v28  ;;  %v3105_v22 = vpop.f32.mrb[139].mxu1  ;;  %3895 = vmatmul.mubr.bf16.gmra.mrb[196].mxu1 %v3372_v44  ;;  %v3256_v14 = vmax.f32 %v3100_v35, 0.0  ;;  %v3255_v27 = vmax.f32 %v2909_v7, 0.0 }
 0x491   : > { %v3258_v59 = vmax.f32 %v2911_v42, 0.0  ;;  %v3106_v4 = vadd.f32 %v3105_v22, %v6551_v15  ;;  %v3257_v60 = vmax.f32 %v3102_v2, 0.0 }
 0x492   : > { %v3260_v40 = vmax.f32 %v3104_v49, 0.0  ;;  %v3259_v38 = vmax.f32 %v2913_v37, 0.0 }
 0x493   : > { %v3374_v34 = vpack.c.bf16 %v3258_v59, %v3254_v1  ;;  %v3261_v20 = vmax.f32 %v3106_v4, 0.0 }
 0x494   : > { %v3376_v16 = vpack.c.bf16 %v3260_v40, %v3256_v14  ;;  %v3375_v23 = vpack.c.bf16 %v3259_v38, %v3255_v27  ;;  %v2916_v8 = vpop.f32.mrb[140].mxu0 }
 0x495   : > { %v3377_v51 = vpack.c.bf16 %v3261_v20, %v3257_v60  ;;  %v2917_v58 = vadd.f32 %v2916_v8, %v6539_v63  ;;  %v3109_v9 = vpop.f32.mrb[140].mxu1  ;;  %v2918_v62 = vpop.f32.mrb[141].mxu0 }
 0x496   : > { %v3110_v55 = vadd.f32 %v3109_v9, %v6543_v6  ;;  %v2919_v54 = vadd.f32 %v2918_v62, %v6547_v28  ;;  %v3111_v47 = vpop.f32.mrb[141].mxu1  ;;  %v2920_v43 = vpop.f32.mrb[142].mxu0  ;;  %3741 = vmatprep.mubr.bf16.mxu0 %v3375_v23 }
 0x497   : > { %v3112_v56 = vadd.f32 %v3111_v47, %v6551_v15  ;;  %v2921_v33 = vadd.f32 %v2920_v43, %v6539_v63  ;;  %v3113_v3 = vpop.f32.mrb[142].mxu1  ;;  %3902 = vmatprep.mubr.bf16.mxu1 %v3377_v51  ;;  %v2922_v53 = vpop.f32.mrb[143].mxu0  ;;  %3742 = vmatmul.mubr.bf16.gmra.mrb[200].mxu0 %v3374_v34  ;;  %v3262_v39 = vmax.f32 %v2917_v58, 0.0 }
 0x498   : > { %v3114_v36 = vadd.f32 %v3113_v3, %v6543_v6  ;;  %v2923_v29 = vadd.f32 %v2922_v53, %v6547_v28  ;;  %v3115_v25 = vpop.f32.mrb[143].mxu1  ;;  %3903 = vmatmul.mubr.bf16.gmra.mrb[200].mxu1 %v3376_v16  ;;  %v3264_v52 = vmax.f32 %v3110_v55, 0.0  ;;  %v3263_v21 = vmax.f32 %v2919_v54, 0.0 }
 0x499   : > { %v3266_v24 = vmax.f32 %v2921_v33, 0.0  ;;  %v3116_v30 = vadd.f32 %v3115_v25, %v6551_v15  ;;  %v3265_v48 = vmax.f32 %v3112_v56, 0.0 }
 0x49a   : > { %v3268_v32 = vmax.f32 %v3114_v36, 0.0  ;;  %v3267_v19 = vmax.f32 %v2923_v29, 0.0 }
 0x49b   : > { %v3378_v45 = vpack.c.bf16 %v3266_v24, %v3262_v39  ;;  %v3269_v13 = vmax.f32 %v3116_v30, 0.0 }
 0x49c   : > { %v3380_v41 = vpack.c.bf16 %v3268_v32, %v3264_v52  ;;  %v3379_v10 = vpack.c.bf16 %v3267_v19, %v3263_v21  ;;  %v2926_v50 = vpop.f32.mrb[144].mxu0 }
 0x49d   : > { %v3381_v18 = vpack.c.bf16 %v3269_v13, %v3265_v48  ;;  %v2927_v44 = vadd.f32 %v2926_v50, %v6539_v63  ;;  %v3119_v46 = vpop.f32.mrb[144].mxu1  ;;  %v2928_v0 = vpop.f32.mrb[145].mxu0 }
 0x49e   : > { %v3120_v57 = vadd.f32 %v3119_v46, %v6543_v6  ;;  %v2929_v17 = vadd.f32 %v2928_v0, %v6547_v28  ;;  %v3121_v5 = vpop.f32.mrb[145].mxu1  ;;  %v2930_v11 = vpop.f32.mrb[146].mxu0  ;;  %3749 = vmatprep.mubr.bf16.mxu0 %v3379_v10 }
 0x49f   : > { %v3122_v35 = vadd.f32 %v3121_v5, %v6551_v15  ;;  %v2931_v7 = vadd.f32 %v2930_v11, %v6539_v63  ;;  %v3123_v26 = vpop.f32.mrb[146].mxu1  ;;  %3910 = vmatprep.mubr.bf16.mxu1 %v3381_v18  ;;  %v2932_v61 = vpop.f32.mrb[147].mxu0  ;;  %3750 = vmatmul.mubr.bf16.gmra.mrb[204].mxu0 %v3378_v45  ;;  %v3270_v31 = vmax.f32 %v2927_v44, 0.0 }
 0x4a0   : > { %v3124_v2 = vadd.f32 %v3123_v26, %v6543_v6  ;;  %v2933_v42 = vadd.f32 %v2932_v61, %v6547_v28  ;;  %v3125_v12 = vpop.f32.mrb[147].mxu1  ;;  %3911 = vmatmul.mubr.bf16.gmra.mrb[204].mxu1 %v3380_v41  ;;  %v3272_v22 = vmax.f32 %v3120_v57, 0.0  ;;  %v3271_v1 = vmax.f32 %v2929_v17, 0.0 }
 0x4a1   : > { %v3274_v49 = vmax.f32 %v2931_v7, 0.0  ;;  %v3126_v37 = vadd.f32 %v3125_v12, %v6551_v15  ;;  %v3273_v14 = vmax.f32 %v3122_v35, 0.0 }
 0x4a2   : > { %v3276_v59 = vmax.f32 %v3124_v2, 0.0  ;;  %v3275_v4 = vmax.f32 %v2933_v42, 0.0 }
 0x4a3   : > { %v3382_v27 = vpack.c.bf16 %v3274_v49, %v3270_v31  ;;  %v3277_v40 = vmax.f32 %v3126_v37, 0.0 }
 0x4a4   : > { %v3384_v38 = vpack.c.bf16 %v3276_v59, %v3272_v22  ;;  %v3383_v60 = vpack.c.bf16 %v3275_v4, %v3271_v1  ;;  %v2936_v34 = vpop.f32.mrb[148].mxu0 }
 0x4a5   : > { %v3385_v20 = vpack.c.bf16 %v3277_v40, %v3273_v14  ;;  %v2937_v16 = vadd.f32 %v2936_v34, %v6539_v63  ;;  %v3129_v23 = vpop.f32.mrb[148].mxu1  ;;  %v2938_v8 = vpop.f32.mrb[149].mxu0 }
 0x4a6   : > { %v3130_v51 = vadd.f32 %v3129_v23, %v6543_v6  ;;  %v2939_v58 = vadd.f32 %v2938_v8, %v6547_v28  ;;  %v3131_v9 = vpop.f32.mrb[149].mxu1  ;;  %v2940_v62 = vpop.f32.mrb[150].mxu0  ;;  %3757 = vmatprep.mubr.bf16.mxu0 %v3383_v60 }
 0x4a7   : > { %v3132_v55 = vadd.f32 %v3131_v9, %v6551_v15  ;;  %v2941_v54 = vadd.f32 %v2940_v62, %v6539_v63  ;;  %v3133_v47 = vpop.f32.mrb[150].mxu1  ;;  %3918 = vmatprep.mubr.bf16.mxu1 %v3385_v20  ;;  %v2942_v43 = vpop.f32.mrb[151].mxu0  ;;  %3758 = vmatmul.mubr.bf16.gmra.mrb[208].mxu0 %v3382_v27  ;;  %v3278_v53 = vmax.f32 %v2937_v16, 0.0 }
 0x4a8   : > { %v3134_v56 = vadd.f32 %v3133_v47, %v6543_v6  ;;  %v2943_v33 = vadd.f32 %v2942_v43, %v6547_v28  ;;  %v3135_v3 = vpop.f32.mrb[151].mxu1  ;;  %3919 = vmatmul.mubr.bf16.gmra.mrb[208].mxu1 %v3384_v38  ;;  %v3280_v25 = vmax.f32 %v3130_v51, 0.0  ;;  %v3279_v39 = vmax.f32 %v2939_v58, 0.0 }
 0x4a9   : > { %v3282_v36 = vmax.f32 %v2941_v54, 0.0  ;;  %v3136_v29 = vadd.f32 %v3135_v3, %v6551_v15  ;;  %v3281_v52 = vmax.f32 %v3132_v55, 0.0 }
 0x4aa   : > { %v3284_v24 = vmax.f32 %v3134_v56, 0.0  ;;  %v3283_v30 = vmax.f32 %v2943_v33, 0.0 }
 0x4ab   : > { %v3386_v21 = vpack.c.bf16 %v3282_v36, %v3278_v53  ;;  %v3285_v32 = vmax.f32 %v3136_v29, 0.0 }
 0x4ac   : > { %v3388_v19 = vpack.c.bf16 %v3284_v24, %v3280_v25  ;;  %v3387_v48 = vpack.c.bf16 %v3283_v30, %v3279_v39  ;;  %v2946_v45 = vpop.f32.mrb[152].mxu0 }
 0x4ad   : > { %v3389_v13 = vpack.c.bf16 %v3285_v32, %v3281_v52  ;;  %v2947_v41 = vadd.f32 %v2946_v45, %v6539_v63  ;;  %v3139_v10 = vpop.f32.mrb[152].mxu1  ;;  %v2948_v50 = vpop.f32.mrb[153].mxu0 }
 0x4ae   : > { %v3140_v18 = vadd.f32 %v3139_v10, %v6543_v6  ;;  %v2949_v44 = vadd.f32 %v2948_v50, %v6547_v28  ;;  %v3141_v46 = vpop.f32.mrb[153].mxu1  ;;  %v2950_v0 = vpop.f32.mrb[154].mxu0  ;;  %3765 = vmatprep.mubr.bf16.mxu0 %v3387_v48 }
 0x4af   : > { %v3142_v57 = vadd.f32 %v3141_v46, %v6551_v15  ;;  %v2951_v17 = vadd.f32 %v2950_v0, %v6539_v63  ;;  %v3143_v5 = vpop.f32.mrb[154].mxu1  ;;  %3926 = vmatprep.mubr.bf16.mxu1 %v3389_v13  ;;  %v2952_v11 = vpop.f32.mrb[155].mxu0  ;;  %3766 = vmatmul.mubr.bf16.gmra.mrb[212].mxu0 %v3386_v21  ;;  %v3286_v61 = vmax.f32 %v2947_v41, 0.0 }
 0x4b0   : > { %v3144_v35 = vadd.f32 %v3143_v5, %v6543_v6  ;;  %v2953_v7 = vadd.f32 %v2952_v11, %v6547_v28  ;;  %v3145_v26 = vpop.f32.mrb[155].mxu1  ;;  %3927 = vmatmul.mubr.bf16.gmra.mrb[212].mxu1 %v3388_v19  ;;  %v3288_v12 = vmax.f32 %v3140_v18, 0.0  ;;  %v3287_v31 = vmax.f32 %v2949_v44, 0.0 }
 0x4b1   : > { %v3290_v2 = vmax.f32 %v2951_v17, 0.0  ;;  %v3146_v42 = vadd.f32 %v3145_v26, %v6551_v15  ;;  %v3289_v22 = vmax.f32 %v3142_v57, 0.0 }
 0x4b2   : > { %v3292_v49 = vmax.f32 %v3144_v35, 0.0  ;;  %v3291_v37 = vmax.f32 %v2953_v7, 0.0 }
 0x4b3   : > { %v3390_v1 = vpack.c.bf16 %v3290_v2, %v3286_v61  ;;  %v3293_v59 = vmax.f32 %v3146_v42, 0.0 }
 0x4b4   : > { %v3392_v4 = vpack.c.bf16 %v3292_v49, %v3288_v12  ;;  %v3391_v14 = vpack.c.bf16 %v3291_v37, %v3287_v31  ;;  %v2956_v27 = vpop.f32.mrb[156].mxu0 }
 0x4b5   : > { %v3393_v40 = vpack.c.bf16 %v3293_v59, %v3289_v22  ;;  %v2957_v38 = vadd.f32 %v2956_v27, %v6539_v63  ;;  %v3149_v60 = vpop.f32.mrb[156].mxu1  ;;  %v2958_v34 = vpop.f32.mrb[157].mxu0 }
 0x4b6   : > { %v3150_v20 = vadd.f32 %v3149_v60, %v6543_v6  ;;  %v2959_v16 = vadd.f32 %v2958_v34, %v6547_v28  ;;  %v3151_v23 = vpop.f32.mrb[157].mxu1  ;;  %v2960_v8 = vpop.f32.mrb[158].mxu0  ;;  %3773 = vmatprep.mubr.bf16.mxu0 %v3391_v14 }
 0x4b7   : > { %v3152_v51 = vadd.f32 %v3151_v23, %v6551_v15  ;;  %v2961_v58 = vadd.f32 %v2960_v8, %v6539_v63  ;;  %v3153_v9 = vpop.f32.mrb[158].mxu1  ;;  %3934 = vmatprep.mubr.bf16.mxu1 %v3393_v40  ;;  %v2962_v62 = vpop.f32.mrb[159].mxu0  ;;  %3774 = vmatmul.mubr.bf16.gmra.mrb[216].mxu0 %v3390_v1  ;;  %v3294_v43 = vmax.f32 %v2957_v38, 0.0 }
 0x4b8   : > { %v3154_v55 = vadd.f32 %v3153_v9, %v6543_v6  ;;  %v2963_v54 = vadd.f32 %v2962_v62, %v6547_v28  ;;  %v3155_v47 = vpop.f32.mrb[159].mxu1  ;;  %3935 = vmatmul.mubr.bf16.gmra.mrb[216].mxu1 %v3392_v4  ;;  %v3296_v3 = vmax.f32 %v3150_v20, 0.0  ;;  %v3295_v53 = vmax.f32 %v2959_v16, 0.0 }
 0x4b9   : > { %v3298_v56 = vmax.f32 %v2961_v58, 0.0  ;;  %v3156_v33 = vadd.f32 %v3155_v47, %v6551_v15  ;;  %v3297_v25 = vmax.f32 %v3152_v51, 0.0 }
 0x4ba   : > { %v3300_v36 = vmax.f32 %v3154_v55, 0.0  ;;  %v3299_v29 = vmax.f32 %v2963_v54, 0.0 }
 0x4bb   : > { %v3394_v39 = vpack.c.bf16 %v3298_v56, %v3294_v43  ;;  %v3301_v24 = vmax.f32 %v3156_v33, 0.0 }
 0x4bc   : > { %v3396_v30 = vpack.c.bf16 %v3300_v36, %v3296_v3  ;;  %v3395_v52 = vpack.c.bf16 %v3299_v29, %v3295_v53  ;;  %v2966_v21 = vpop.f32.mrb[160].mxu0 }
 0x4bd   : > { %v3397_v32 = vpack.c.bf16 %v3301_v24, %v3297_v25  ;;  %v2967_v19 = vadd.f32 %v2966_v21, %v6539_v63  ;;  %v3159_v48 = vpop.f32.mrb[160].mxu1  ;;  %v2968_v45 = vpop.f32.mrb[161].mxu0 }
 0x4be   : > { %v3160_v13 = vadd.f32 %v3159_v48, %v6543_v6  ;;  %v2969_v41 = vadd.f32 %v2968_v45, %v6547_v28  ;;  %v3161_v10 = vpop.f32.mrb[161].mxu1  ;;  %v2970_v50 = vpop.f32.mrb[162].mxu0  ;;  %3781 = vmatprep.mubr.bf16.mxu0 %v3395_v52 }
 0x4bf   : > { %v3162_v18 = vadd.f32 %v3161_v10, %v6551_v15  ;;  %v2971_v44 = vadd.f32 %v2970_v50, %v6539_v63  ;;  %v3163_v46 = vpop.f32.mrb[162].mxu1  ;;  %3942 = vmatprep.mubr.bf16.mxu1 %v3397_v32  ;;  %v2972_v0 = vpop.f32.mrb[163].mxu0  ;;  %3782 = vmatmul.mubr.bf16.gmra.mrb[220].mxu0 %v3394_v39  ;;  %v3302_v11 = vmax.f32 %v2967_v19, 0.0 }
 0x4c0   : > { %v3164_v57 = vadd.f32 %v3163_v46, %v6543_v6  ;;  %v2973_v17 = vadd.f32 %v2972_v0, %v6547_v28  ;;  %v3165_v5 = vpop.f32.mrb[163].mxu1  ;;  %3943 = vmatmul.mubr.bf16.gmra.mrb[220].mxu1 %v3396_v30  ;;  %v3304_v26 = vmax.f32 %v3160_v13, 0.0  ;;  %v3303_v61 = vmax.f32 %v2969_v41, 0.0 }
 0x4c1   : > { %v3306_v35 = vmax.f32 %v2971_v44, 0.0  ;;  %v3166_v7 = vadd.f32 %v3165_v5, %v6551_v15  ;;  %v3305_v12 = vmax.f32 %v3162_v18, 0.0 }
 0x4c2   : > { %v3308_v2 = vmax.f32 %v3164_v57, 0.0  ;;  %v3307_v42 = vmax.f32 %v2973_v17, 0.0 }
 0x4c3   : > { %v3398_v31 = vpack.c.bf16 %v3306_v35, %v3302_v11  ;;  %v3309_v49 = vmax.f32 %v3166_v7, 0.0 }
 0x4c4   : > { %v3400_v37 = vpack.c.bf16 %v3308_v2, %v3304_v26  ;;  %v3399_v22 = vpack.c.bf16 %v3307_v42, %v3303_v61  ;;  %v2976_v1 = vpop.f32.mrb[164].mxu0 }
 0x4c5   : > { %v3401_v59 = vpack.c.bf16 %v3309_v49, %v3305_v12  ;;  %v2977_v4 = vadd.f32 %v2976_v1, %v6539_v63  ;;  %v3169_v14 = vpop.f32.mrb[164].mxu1  ;;  %v2978_v27 = vpop.f32.mrb[165].mxu0 }
 0x4c6   : > { %v3170_v40 = vadd.f32 %v3169_v14, %v6543_v6  ;;  %v2979_v38 = vadd.f32 %v2978_v27, %v6547_v28  ;;  %v3171_v60 = vpop.f32.mrb[165].mxu1  ;;  %v2980_v34 = vpop.f32.mrb[166].mxu0  ;;  %3789 = vmatprep.mubr.bf16.mxu0 %v3399_v22 }
 0x4c7   : > { %v3172_v20 = vadd.f32 %v3171_v60, %v6551_v15  ;;  %v2981_v16 = vadd.f32 %v2980_v34, %v6539_v63  ;;  %v3173_v23 = vpop.f32.mrb[166].mxu1  ;;  %3950 = vmatprep.mubr.bf16.mxu1 %v3401_v59  ;;  %v2982_v8 = vpop.f32.mrb[167].mxu0  ;;  %3790 = vmatmul.mubr.bf16.gmra.mrb[224].mxu0 %v3398_v31  ;;  %v3310_v62 = vmax.f32 %v2977_v4, 0.0 }
 0x4c8   : > { %v3174_v51 = vadd.f32 %v3173_v23, %v6543_v6  ;;  %v2983_v58 = vadd.f32 %v2982_v8, %v6547_v28  ;;  %v3175_v9 = vpop.f32.mrb[167].mxu1  ;;  %3951 = vmatmul.mubr.bf16.gmra.mrb[224].mxu1 %v3400_v37  ;;  %v3312_v47 = vmax.f32 %v3170_v40, 0.0  ;;  %v3311_v43 = vmax.f32 %v2979_v38, 0.0 }
 0x4c9   : > { %v3314_v55 = vmax.f32 %v2981_v16, 0.0  ;;  %v3176_v54 = vadd.f32 %v3175_v9, %v6551_v15  ;;  %v3313_v3 = vmax.f32 %v3172_v20, 0.0 }
 0x4ca   : > { %v3316_v56 = vmax.f32 %v3174_v51, 0.0  ;;  %v3315_v33 = vmax.f32 %v2983_v58, 0.0 }
 0x4cb   : > { %v3402_v53 = vpack.c.bf16 %v3314_v55, %v3310_v62  ;;  %v3317_v36 = vmax.f32 %v3176_v54, 0.0 }
 0x4cc   : > { %v3404_v29 = vpack.c.bf16 %v3316_v56, %v3312_v47  ;;  %v3403_v25 = vpack.c.bf16 %v3315_v33, %v3311_v43 }
 0x4cd   : > { %v3405_v39 = vpack.c.bf16 %v3317_v36, %v3313_v3 }
 0x4ce   : > { %3797 = vmatprep.mubr.bf16.mxu0 %v3403_v25 }
 0x4cf   : > { %3958 = vmatprep.mubr.bf16.mxu1 %v3405_v39  ;;  %3798 = vmatmul.mubr.bf16.gmra.mrb[228].mxu0 %v3402_v53 }
 0x4d0   : > { %3959 = vmatmul.mubr.bf16.gmra.mrb[228].mxu1 %v3404_v29 }
 0x510   : > { %v2986_v24 = vpop.f32.mrb[168].mxu0  ;;  %v3179_v30 = vpop.f32.mrb[168].mxu1 }
 0x511   : > { %v2987_v52 = vadd.f32 %v2986_v24, %v6539_v63  ;;  %v3180_v21 = vadd.f32 %v3179_v30, %v6543_v6  ;;  %v2988_v32 = vpop.f32.mrb[169].mxu0  ;;  %v3181_v19 = vpop.f32.mrb[169].mxu1 }
 0x512   : > { %v2989_v48 = vadd.f32 %v2988_v32, %v6547_v28  ;;  %v3182_v45 = vadd.f32 %v3181_v19, %v6551_v15  ;;  %v2990_v13 = vpop.f32.mrb[170].mxu0  ;;  %v3183_v41 = vpop.f32.mrb[170].mxu1 }
 0x513   : > { %v2991_v10 = vadd.f32 %v2990_v13, %v6539_v63  ;;  %v3184_v50 = vadd.f32 %v3183_v41, %v6543_v6  ;;  %v2992_v18 = vpop.f32.mrb[171].mxu0  ;;  %v3185_v44 = vpop.f32.mrb[171].mxu1  ;;  %v3318_v57 = vmax.f32 %v2987_v52, 0.0  ;;  %v3320_v17 = vmax.f32 %v3180_v21, 0.0 }
 0x514   : > { %v2993_v46 = vadd.f32 %v2992_v18, %v6547_v28  ;;  %v3186_v0 = vadd.f32 %v3185_v44, %v6551_v15  ;;  %v3319_v35 = vmax.f32 %v2989_v48, 0.0  ;;  %v3321_v7 = vmax.f32 %v3182_v45, 0.0 }
 0x515   : > { %v3322_v5 = vmax.f32 %v2991_v10, 0.0  ;;  %v3324_v11 = vmax.f32 %v3184_v50, 0.0 }
 0x516   : > { %v3323_v26 = vmax.f32 %v2993_v46, 0.0  ;;  %v3325_v61 = vmax.f32 %v3186_v0, 0.0 }
 0x517   : > { %v3406_v2 = vpack.c.bf16 %v3322_v5, %v3318_v57  ;;  %v3408_v42 = vpack.c.bf16 %v3324_v11, %v3320_v17 }
 0x518   : > { %v3407_v12 = vpack.c.bf16 %v3323_v26, %v3319_v35  ;;  %v3409_v31 = vpack.c.bf16 %v3325_v61, %v3321_v7  ;;  %v2996_v49 = vpop.f32.mrb[172].mxu0  ;;  %v3189_v37 = vpop.f32.mrb[172].mxu1 }
 0x519   : > { %v2997_v22 = vadd.f32 %v2996_v49, %v6539_v63  ;;  %v3190_v1 = vadd.f32 %v3189_v37, %v6543_v6  ;;  %v2998_v59 = vpop.f32.mrb[173].mxu0  ;;  %v3191_v4 = vpop.f32.mrb[173].mxu1 }
 0x51a   : > { %v2999_v14 = vadd.f32 %v2998_v59, %v6547_v28  ;;  %v3192_v27 = vadd.f32 %v3191_v4, %v6551_v15  ;;  %v3000_v40 = vpop.f32.mrb[174].mxu0  ;;  %v3193_v38 = vpop.f32.mrb[174].mxu1  ;;  %3805 = vmatprep.mubr.bf16.mxu0 %v3407_v12  ;;  %3966 = vmatprep.mubr.bf16.mxu1 %v3409_v31 }
 0x51b   : > { %v3001_v60 = vadd.f32 %v3000_v40, %v6539_v63  ;;  %v3194_v34 = vadd.f32 %v3193_v38, %v6543_v6  ;;  %v3002_v20 = vpop.f32.mrb[175].mxu0  ;;  %v3195_v16 = vpop.f32.mrb[175].mxu1  ;;  %3806 = vmatmul.mubr.bf16.gmra.mrb[232].mxu0 %v3406_v2  ;;  %3967 = vmatmul.mubr.bf16.gmra.mrb[232].mxu1 %v3408_v42  ;;  %v3326_v51 = vmax.f32 %v2997_v22, 0.0  ;;  %v3328_v58 = vmax.f32 %v3190_v1, 0.0 }
 0x51c   : > { %v3003_v23 = vadd.f32 %v3002_v20, %v6547_v28  ;;  %v3196_v8 = vadd.f32 %v3195_v16, %v6551_v15  ;;  %v3327_v55 = vmax.f32 %v2999_v14, 0.0  ;;  %v3329_v54 = vmax.f32 %v3192_v27, 0.0 }
 0x51d   : > { %v3330_v9 = vmax.f32 %v3001_v60, 0.0  ;;  %v3332_v62 = vmax.f32 %v3194_v34, 0.0 }
 0x51e   : > { %v3331_v47 = vmax.f32 %v3003_v23, 0.0  ;;  %v3333_v43 = vmax.f32 %v3196_v8, 0.0 }
 0x51f   : > { %v3410_v56 = vpack.c.bf16 %v3330_v9, %v3326_v51  ;;  %v3412_v33 = vpack.c.bf16 %v3332_v62, %v3328_v58 }
 0x520   : > { %v3411_v3 = vpack.c.bf16 %v3331_v47, %v3327_v55  ;;  %v3413_v53 = vpack.c.bf16 %v3333_v43, %v3329_v54  ;;  %v3006_v36 = vpop.f32.mrb[176].mxu0  ;;  %v3199_v29 = vpop.f32.mrb[176].mxu1 }
 0x521   : > { %v3007_v25 = vadd.f32 %v3006_v36, %v6539_v63  ;;  %v3200_v39 = vadd.f32 %v3199_v29, %v6543_v6  ;;  %v3008_v24 = vpop.f32.mrb[177].mxu0  ;;  %v3201_v30 = vpop.f32.mrb[177].mxu1 }
 0x522   : > { %v3009_v52 = vadd.f32 %v3008_v24, %v6547_v28  ;;  %v3202_v21 = vadd.f32 %v3201_v30, %v6551_v15  ;;  %v3010_v32 = vpop.f32.mrb[178].mxu0  ;;  %v3203_v19 = vpop.f32.mrb[178].mxu1  ;;  %3813 = vmatprep.mubr.bf16.mxu0 %v3411_v3  ;;  %3974 = vmatprep.mubr.bf16.mxu1 %v3413_v53 }
 0x523   : > { %v3011_v48 = vadd.f32 %v3010_v32, %v6539_v63  ;;  %v3204_v45 = vadd.f32 %v3203_v19, %v6543_v6  ;;  %v3012_v13 = vpop.f32.mrb[179].mxu0  ;;  %v3205_v41 = vpop.f32.mrb[179].mxu1  ;;  %3814 = vmatmul.mubr.bf16.gmra.mrb[236].mxu0 %v3410_v56  ;;  %3975 = vmatmul.mubr.bf16.gmra.mrb[236].mxu1 %v3412_v33  ;;  %v3334_v18 = vmax.f32 %v3007_v25, 0.0  ;;  %v3336_v44 = vmax.f32 %v3200_v39, 0.0 }
 0x524   : > { %v3013_v10 = vadd.f32 %v3012_v13, %v6547_v28  ;;  %v3206_v50 = vadd.f32 %v3205_v41, %v6551_v15  ;;  %v3335_v57 = vmax.f32 %v3009_v52, 0.0  ;;  %v3337_v17 = vmax.f32 %v3202_v21, 0.0 }
 0x525   : > { %v3338_v46 = vmax.f32 %v3011_v48, 0.0  ;;  %v3340_v0 = vmax.f32 %v3204_v45, 0.0 }
 0x526   : > { %v3339_v5 = vmax.f32 %v3013_v10, 0.0  ;;  %v3341_v11 = vmax.f32 %v3206_v50, 0.0 }
 0x527   : > { %v3414_v35 = vpack.c.bf16 %v3338_v46, %v3334_v18  ;;  %v3416_v7 = vpack.c.bf16 %v3340_v0, %v3336_v44 }
 0x528   : > { %v3415_v26 = vpack.c.bf16 %v3339_v5, %v3335_v57  ;;  %v3417_v61 = vpack.c.bf16 %v3341_v11, %v3337_v17  ;;  %v3016_v2 = vpop.f32.mrb[180].mxu0  ;;  %v3209_v42 = vpop.f32.mrb[180].mxu1 }
 0x529   : > { %v3017_v12 = vadd.f32 %v3016_v2, %v6539_v63  ;;  %v3210_v31 = vadd.f32 %v3209_v42, %v6543_v6  ;;  %v3018_v49 = vpop.f32.mrb[181].mxu0  ;;  %v3211_v37 = vpop.f32.mrb[181].mxu1 }
 0x52a   : > { %v3019_v22 = vadd.f32 %v3018_v49, %v6547_v28  ;;  %v3212_v1 = vadd.f32 %v3211_v37, %v6551_v15  ;;  %v3020_v59 = vpop.f32.mrb[182].mxu0  ;;  %v3213_v4 = vpop.f32.mrb[182].mxu1  ;;  %3821 = vmatprep.mubr.bf16.mxu0 %v3415_v26  ;;  %3982 = vmatprep.mubr.bf16.mxu1 %v3417_v61 }
 0x52b   : > { %v3021_v14 = vadd.f32 %v3020_v59, %v6539_v63  ;;  %v3214_v27 = vadd.f32 %v3213_v4, %v6543_v6  ;;  %v3022_v40 = vpop.f32.mrb[183].mxu0  ;;  %v3215_v38 = vpop.f32.mrb[183].mxu1  ;;  %3822 = vmatmul.mubr.bf16.gmra.mrb[240].mxu0 %v3414_v35  ;;  %3983 = vmatmul.mubr.bf16.gmra.mrb[240].mxu1 %v3416_v7  ;;  %v3342_v20 = vmax.f32 %v3017_v12, 0.0  ;;  %v3344_v16 = vmax.f32 %v3210_v31, 0.0 }
 0x52c   : > { %v3023_v60 = vadd.f32 %v3022_v40, %v6547_v28  ;;  %v3216_v34 = vadd.f32 %v3215_v38, %v6551_v15  ;;  %v3343_v51 = vmax.f32 %v3019_v22, 0.0  ;;  %v3345_v58 = vmax.f32 %v3212_v1, 0.0 }
 0x52d   : > { %v3346_v23 = vmax.f32 %v3021_v14, 0.0  ;;  %v3348_v8 = vmax.f32 %v3214_v27, 0.0 }
 0x52e   : > { %v3347_v9 = vmax.f32 %v3023_v60, 0.0  ;;  %v3349_v62 = vmax.f32 %v3216_v34, 0.0 }
 0x52f   : > { %v3418_v55 = vpack.c.bf16 %v3346_v23, %v3342_v20  ;;  %v3420_v54 = vpack.c.bf16 %v3348_v8, %v3344_v16 }
 0x530   : > { %v3419_v47 = vpack.c.bf16 %v3347_v9, %v3343_v51  ;;  %v3421_v43 = vpack.c.bf16 %v3349_v62, %v3345_v58  ;;  %v3026_v56 = vpop.f32.mrb[184].mxu0  ;;  %v3219_v33 = vpop.f32.mrb[184].mxu1 }
 0x531   : > { %v3027_v3 = vadd.f32 %v3026_v56, %v6539_v63  ;;  %v3220_v53 = vadd.f32 %v3219_v33, %v6543_v6  ;;  %v3028_v36 = vpop.f32.mrb[185].mxu0  ;;  %v3221_v29 = vpop.f32.mrb[185].mxu1 }
 0x532   : > { %v3029_v25 = vadd.f32 %v3028_v36, %v6547_v28  ;;  %v3222_v39 = vadd.f32 %v3221_v29, %v6551_v15  ;;  %v3030_v24 = vpop.f32.mrb[186].mxu0  ;;  %v3223_v30 = vpop.f32.mrb[186].mxu1  ;;  %3829 = vmatprep.mubr.bf16.mxu0 %v3419_v47  ;;  %3990 = vmatprep.mubr.bf16.mxu1 %v3421_v43 }
 0x533   : > { %v3031_v52 = vadd.f32 %v3030_v24, %v6539_v63  ;;  %v3224_v21 = vadd.f32 %v3223_v30, %v6543_v6  ;;  %v3032_v32 = vpop.f32.mrb[187].mxu0  ;;  %v3225_v19 = vpop.f32.mrb[187].mxu1  ;;  %3830 = vmatmul.mubr.bf16.gmra.mrb[244].mxu0 %v3418_v55  ;;  %3991 = vmatmul.mubr.bf16.gmra.mrb[244].mxu1 %v3420_v54  ;;  %v3350_v13 = vmax.f32 %v3027_v3, 0.0  ;;  %v3352_v41 = vmax.f32 %v3220_v53, 0.0 }
 0x534   : > { %v3033_v48 = vadd.f32 %v3032_v32, %v6547_v28  ;;  %v3226_v45 = vadd.f32 %v3225_v19, %v6551_v15  ;;  %v3351_v18 = vmax.f32 %v3029_v25, 0.0  ;;  %v3353_v44 = vmax.f32 %v3222_v39, 0.0 }
 0x535   : > { %v3354_v10 = vmax.f32 %v3031_v52, 0.0  ;;  %v3356_v50 = vmax.f32 %v3224_v21, 0.0 }
 0x536   : > { %v3355_v46 = vmax.f32 %v3033_v48, 0.0  ;;  %v3357_v0 = vmax.f32 %v3226_v45, 0.0 }
 0x537   : > { %v3422_v57 = vpack.c.bf16 %v3354_v10, %v3350_v13  ;;  %v3424_v17 = vpack.c.bf16 %v3356_v50, %v3352_v41 }
 0x538   : > { %v3423_v5 = vpack.c.bf16 %v3355_v46, %v3351_v18  ;;  %v3425_v11 = vpack.c.bf16 %v3357_v0, %v3353_v44  ;;  %v3036_v35 = vpop.f32.mrb[188].mxu0  ;;  %v3229_v7 = vpop.f32.mrb[188].mxu1 }
 0x539   : > { %v3037_v26 = vadd.f32 %v3036_v35, %v6539_v63  ;;  %v3230_v61 = vadd.f32 %v3229_v7, %v6543_v6  ;;  %v3038_v2 = vpop.f32.mrb[189].mxu0  ;;  %v3231_v42 = vpop.f32.mrb[189].mxu1 }
 0x53a   : > { %v3039_v12 = vadd.f32 %v3038_v2, %v6547_v28  ;;  %v3232_v31 = vadd.f32 %v3231_v42, %v6551_v15  ;;  %v3040_v49 = vpop.f32.mrb[190].mxu0  ;;  %v3233_v37 = vpop.f32.mrb[190].mxu1  ;;  %3837 = vmatprep.mubr.bf16.mxu0 %v3423_v5  ;;  %3998 = vmatprep.mubr.bf16.mxu1 %v3425_v11 }
 0x53b   : > { %v3041_v22 = vadd.f32 %v3040_v49, %v6539_v63  ;;  %v3234_v1 = vadd.f32 %v3233_v37, %v6543_v6  ;;  %v3042_v59 = vpop.f32.mrb[191].mxu0  ;;  %v3235_v4 = vpop.f32.mrb[191].mxu1  ;;  %3838 = vmatmul.mubr.bf16.gmra.mrb[248].mxu0 %v3422_v57  ;;  %3999 = vmatmul.mubr.bf16.gmra.mrb[248].mxu1 %v3424_v17  ;;  %v3358_v40 = vmax.f32 %v3037_v26, 0.0  ;;  %v3360_v38 = vmax.f32 %v3230_v61, 0.0 }
 0x53c   : > { %v3043_v14 = vadd.f32 %v3042_v59, %v6547_v28  ;;  %v3236_v27 = vadd.f32 %v3235_v4, %v6551_v15  ;;  %v3359_v20 = vmax.f32 %v3039_v12, 0.0  ;;  %v3361_v16 = vmax.f32 %v3232_v31, 0.0  ;;  %v6684_v15 = vld [vmem:[%s6768_s8] ss:$0 sm:$0xff] }
 0x53d   : > { %v3362_v60 = vmax.f32 %v3041_v22, 0.0  ;;  %v3364_v34 = vmax.f32 %v3234_v1, 0.0 }
 0x53e   : > { %v3363_v23 = vmax.f32 %v3043_v14, 0.0  ;;  %v3365_v8 = vmax.f32 %v3236_v27, 0.0 }
 0x53f   : > { %v3426_v51 = vpack.c.bf16 %v3362_v60, %v3358_v40  ;;  %v3428_v63 = vpack.c.bf16 %v3364_v34, %v3360_v38 }
 0x540   : > { %v3427_v58 = vpack.c.bf16 %v3363_v23, %v3359_v20  ;;  %v3429_v6 = vpack.c.bf16 %v3365_v8, %v3361_v16 }
 0x542   : > { %3845 = vmatprep.mubr.bf16.mxu0 %v3427_v58  ;;  %4006 = vmatprep.mubr.bf16.mxu1 %v3429_v6 }
 0x543   : > { %3846 = vmatmul.mubr.bf16.gmra.mrb[252].mxu0 %v3426_v51  ;;  %4007 = vmatmul.mubr.bf16.gmra.mrb[252].mxu1 %v3428_v63 }
 0x556   : > { %v4632_v28 = vpop.f32.mrb[192].mxu0  ;;  %v4744_v9 = vpop.f32.mrb[192].mxu1 }
 0x557   : > { %v4633_v62 = vpop.f32.mrb[193].mxu0  ;;  %v4745_v55 = vpop.f32.mrb[193].mxu1 }
 0x558   : > { %v4634_v54 = vadd.f32 %v4633_v62, %v4632_v28  ;;  %v4746_v47 = vadd.f32 %v4745_v55, %v4744_v9  ;;  %v4635_v43 = vpop.f32.mrb[194].mxu0  ;;  %v4747_v56 = vpop.f32.mrb[194].mxu1 }
 0x559   : > { %v4636_v33 = vpop.f32.mrb[195].mxu0  ;;  %v4748_v3 = vpop.f32.mrb[195].mxu1 }
 0x55a   : > { %v3728_v53 = vadd.f32 %v4634_v54, %v6684_v15  ;;  %v4637_v36 = vadd.f32 %v4636_v33, %v4635_v43  ;;  %v4749_v29 = vadd.f32 %v4748_v3, %v4747_v56 }
 0x55c   : > { %v3889_v25 = vadd.f32 %v4746_v47, %v3728_v53  ;;  %v3731_v39 = vadd.f32 %v4637_v36, %v6684_v15 }
 0x55e   : > { %4015 = vst [vmem:[%s6692_s30] sm:$0xff] %v3889_v25  ;;  %v3892_v24 = vadd.f32 %v4749_v29, %v3731_v39 }
 0x560   : > { %4016 = vst [vmem:[%s6692_s30 + $0x8] sm:$0xff] %v3892_v24 }
 0x562   : > { %v4638_v30 = vpop.f32.mrb[196].mxu0 }
 0x563   : > { %v4750_v52 = vpop.f32.mrb[196].mxu1  ;;  %v4639_v21 = vpop.f32.mrb[197].mxu0 }
 0x564   : > { %v4640_v32 = vadd.f32 %v4639_v21, %v4638_v30  ;;  %v4751_v19 = vpop.f32.mrb[197].mxu1  ;;  %v4641_v48 = vpop.f32.mrb[198].mxu0 }
 0x565   : > { %v4752_v45 = vadd.f32 %v4751_v19, %v4750_v52  ;;  %v4753_v13 = vpop.f32.mrb[198].mxu1  ;;  %v4642_v41 = vpop.f32.mrb[199].mxu0 }
 0x566   : > { %v3736_v10 = vadd.f32 %v4640_v32, %v6684_v15  ;;  %v4643_v50 = vadd.f32 %v4642_v41, %v4641_v48  ;;  %v4754_v18 = vpop.f32.mrb[199].mxu1 }
 0x567   : > { %v4755_v44 = vadd.f32 %v4754_v18, %v4753_v13 }
 0x568   : > { %v3897_v46 = vadd.f32 %v4752_v45, %v3736_v10  ;;  %v3739_v0 = vadd.f32 %v4643_v50, %v6684_v15 }
 0x56a   : > { %4017 = vst [vmem:[%s6692_s30 + $0x10] sm:$0xff] %v3897_v46  ;;  %v3900_v57 = vadd.f32 %v4755_v44, %v3739_v0  ;;  %v4644_v17 = vpop.f32.mrb[200].mxu0 }
 0x56b   : > { %v4756_v5 = vpop.f32.mrb[200].mxu1  ;;  %v4645_v11 = vpop.f32.mrb[201].mxu0 }
 0x56c   : > { %4018 = vst [vmem:[%s6692_s30 + $0x18] sm:$0xff] %v3900_v57  ;;  %v4646_v35 = vadd.f32 %v4645_v11, %v4644_v17  ;;  %v4757_v7 = vpop.f32.mrb[201].mxu1  ;;  %v4647_v26 = vpop.f32.mrb[202].mxu0 }
 0x56d   : > { %v4758_v61 = vadd.f32 %v4757_v7, %v4756_v5  ;;  %v4759_v2 = vpop.f32.mrb[202].mxu1  ;;  %v4648_v42 = vpop.f32.mrb[203].mxu0 }
 0x56e   : > { %v3744_v12 = vadd.f32 %v4646_v35, %v6684_v15  ;;  %v4649_v31 = vadd.f32 %v4648_v42, %v4647_v26  ;;  %v4760_v49 = vpop.f32.mrb[203].mxu1 }
 0x56f   : > { %v4761_v37 = vadd.f32 %v4760_v49, %v4759_v2 }
 0x570   : > { %v3905_v22 = vadd.f32 %v4758_v61, %v3744_v12  ;;  %v3747_v1 = vadd.f32 %v4649_v31, %v6684_v15 }
 0x572   : > { %4019 = vst [vmem:[%s6692_s30 + $0x20] sm:$0xff] %v3905_v22  ;;  %v3908_v59 = vadd.f32 %v4761_v37, %v3747_v1  ;;  %v4650_v4 = vpop.f32.mrb[204].mxu0 }
 0x573   : > { %v4762_v14 = vpop.f32.mrb[204].mxu1  ;;  %v4651_v27 = vpop.f32.mrb[205].mxu0 }
 0x574   : > { %4020 = vst [vmem:[%s6692_s30 + $0x28] sm:$0xff] %v3908_v59  ;;  %v4652_v40 = vadd.f32 %v4651_v27, %v4650_v4  ;;  %v4763_v38 = vpop.f32.mrb[205].mxu1  ;;  %v4653_v60 = vpop.f32.mrb[206].mxu0 }
 0x575   : > { %v4764_v34 = vadd.f32 %v4763_v38, %v4762_v14  ;;  %v4765_v20 = vpop.f32.mrb[206].mxu1  ;;  %v4654_v16 = vpop.f32.mrb[207].mxu0 }
 0x576   : > { %v3752_v23 = vadd.f32 %v4652_v40, %v6684_v15  ;;  %v4655_v8 = vadd.f32 %v4654_v16, %v4653_v60  ;;  %v4766_v51 = vpop.f32.mrb[207].mxu1 }
 0x577   : > { %v4767_v63 = vadd.f32 %v4766_v51, %v4765_v20 }
 0x578   : > { %v3913_v58 = vadd.f32 %v4764_v34, %v3752_v23  ;;  %v3755_v6 = vadd.f32 %v4655_v8, %v6684_v15 }
 0x57a   : > { %4021 = vst [vmem:[%s6692_s30 + $0x30] sm:$0xff] %v3913_v58  ;;  %v3916_v28 = vadd.f32 %v4767_v63, %v3755_v6  ;;  %v4656_v9 = vpop.f32.mrb[208].mxu0 }
 0x57b   : > { %v4768_v62 = vpop.f32.mrb[208].mxu1  ;;  %v4657_v55 = vpop.f32.mrb[209].mxu0 }
 0x57c   : > { %4022 = vst [vmem:[%s6692_s30 + $0x38] sm:$0xff] %v3916_v28  ;;  %v4658_v54 = vadd.f32 %v4657_v55, %v4656_v9  ;;  %v4769_v47 = vpop.f32.mrb[209].mxu1  ;;  %v4659_v43 = vpop.f32.mrb[210].mxu0 }
 0x57d   : > { %v4770_v56 = vadd.f32 %v4769_v47, %v4768_v62  ;;  %v4771_v33 = vpop.f32.mrb[210].mxu1  ;;  %v4660_v3 = vpop.f32.mrb[211].mxu0 }
 0x57e   : > { %v3760_v53 = vadd.f32 %v4658_v54, %v6684_v15  ;;  %v4661_v36 = vadd.f32 %v4660_v3, %v4659_v43  ;;  %v4772_v29 = vpop.f32.mrb[211].mxu1 }
 0x57f   : > { %v4773_v25 = vadd.f32 %v4772_v29, %v4771_v33 }
 0x580   : > { %v3921_v39 = vadd.f32 %v4770_v56, %v3760_v53  ;;  %v3763_v24 = vadd.f32 %v4661_v36, %v6684_v15 }
 0x582   : > { %4023 = vst [vmem:[%s6692_s30 + $0x40] sm:$0xff] %v3921_v39  ;;  %v3924_v30 = vadd.f32 %v4773_v25, %v3763_v24  ;;  %v4662_v52 = vpop.f32.mrb[212].mxu0 }
 0x583   : > { %v4774_v21 = vpop.f32.mrb[212].mxu1  ;;  %v4663_v32 = vpop.f32.mrb[213].mxu0 }
 0x584   : > { %4024 = vst [vmem:[%s6692_s30 + $0x48] sm:$0xff] %v3924_v30  ;;  %v4664_v19 = vadd.f32 %v4663_v32, %v4662_v52  ;;  %v4775_v48 = vpop.f32.mrb[213].mxu1  ;;  %v4665_v45 = vpop.f32.mrb[214].mxu0 }
 0x585   : > { %v4776_v13 = vadd.f32 %v4775_v48, %v4774_v21  ;;  %v4777_v41 = vpop.f32.mrb[214].mxu1  ;;  %v4666_v10 = vpop.f32.mrb[215].mxu0 }
 0x586   : > { %v3768_v50 = vadd.f32 %v4664_v19, %v6684_v15  ;;  %v4667_v18 = vadd.f32 %v4666_v10, %v4665_v45  ;;  %v4778_v44 = vpop.f32.mrb[215].mxu1 }
 0x587   : > { %v4779_v46 = vadd.f32 %v4778_v44, %v4777_v41 }
 0x588   : > { %v3929_v0 = vadd.f32 %v4776_v13, %v3768_v50  ;;  %v3771_v57 = vadd.f32 %v4667_v18, %v6684_v15 }
 0x58a   : > { %4025 = vst [vmem:[%s6692_s30 + $0x50] sm:$0xff] %v3929_v0  ;;  %v3932_v17 = vadd.f32 %v4779_v46, %v3771_v57  ;;  %v4668_v5 = vpop.f32.mrb[216].mxu0 }
 0x58b   : > { %v4780_v11 = vpop.f32.mrb[216].mxu1  ;;  %v4669_v35 = vpop.f32.mrb[217].mxu0 }
 0x58c   : > { %4026 = vst [vmem:[%s6692_s30 + $0x58] sm:$0xff] %v3932_v17  ;;  %v4670_v7 = vadd.f32 %v4669_v35, %v4668_v5  ;;  %v4781_v26 = vpop.f32.mrb[217].mxu1  ;;  %v4671_v61 = vpop.f32.mrb[218].mxu0 }
 0x58d   : > { %v4782_v2 = vadd.f32 %v4781_v26, %v4780_v11  ;;  %v4783_v42 = vpop.f32.mrb[218].mxu1  ;;  %v4672_v12 = vpop.f32.mrb[219].mxu0 }
 0x58e   : > { %v3776_v31 = vadd.f32 %v4670_v7, %v6684_v15  ;;  %v4673_v49 = vadd.f32 %v4672_v12, %v4671_v61  ;;  %v4784_v37 = vpop.f32.mrb[219].mxu1 }
 0x58f   : > { %v4785_v22 = vadd.f32 %v4784_v37, %v4783_v42 }
 0x590   : > { %v3937_v1 = vadd.f32 %v4782_v2, %v3776_v31  ;;  %v3779_v59 = vadd.f32 %v4673_v49, %v6684_v15 }
 0x592   : > { %4027 = vst [vmem:[%s6692_s30 + $0x60] sm:$0xff] %v3937_v1  ;;  %v3940_v4 = vadd.f32 %v4785_v22, %v3779_v59  ;;  %v4674_v14 = vpop.f32.mrb[220].mxu0 }
 0x593   : > { %v4786_v27 = vpop.f32.mrb[220].mxu1  ;;  %v4675_v40 = vpop.f32.mrb[221].mxu0 }
 0x594   : > { %4028 = vst [vmem:[%s6692_s30 + $0x68] sm:$0xff] %v3940_v4  ;;  %v4676_v38 = vadd.f32 %v4675_v40, %v4674_v14  ;;  %v4787_v60 = vpop.f32.mrb[221].mxu1  ;;  %v4677_v34 = vpop.f32.mrb[222].mxu0 }
 0x595   : > { %v4788_v20 = vadd.f32 %v4787_v60, %v4786_v27  ;;  %v4789_v16 = vpop.f32.mrb[222].mxu1  ;;  %v4678_v23 = vpop.f32.mrb[223].mxu0 }
 0x596   : > { %v3784_v8 = vadd.f32 %v4676_v38, %v6684_v15  ;;  %v4679_v51 = vadd.f32 %v4678_v23, %v4677_v34  ;;  %v4790_v63 = vpop.f32.mrb[223].mxu1 }
 0x597   : > { %v4791_v58 = vadd.f32 %v4790_v63, %v4789_v16 }
 0x598   : > { %v3945_v6 = vadd.f32 %v4788_v20, %v3784_v8  ;;  %v3787_v28 = vadd.f32 %v4679_v51, %v6684_v15 }
 0x59a   : > { %4029 = vst [vmem:[%s6692_s30 + $0x70] sm:$0xff] %v3945_v6  ;;  %v3948_v9 = vadd.f32 %v4791_v58, %v3787_v28  ;;  %v4680_v62 = vpop.f32.mrb[224].mxu0 }
 0x59b   : > { %v4792_v55 = vpop.f32.mrb[224].mxu1  ;;  %v4681_v54 = vpop.f32.mrb[225].mxu0 }
 0x59c   : > { %4030 = vst [vmem:[%s6692_s30 + $0x78] sm:$0xff] %v3948_v9  ;;  %v4682_v47 = vadd.f32 %v4681_v54, %v4680_v62  ;;  %v4793_v43 = vpop.f32.mrb[225].mxu1  ;;  %v4683_v56 = vpop.f32.mrb[226].mxu0 }
 0x59d   : > { %v4794_v33 = vadd.f32 %v4793_v43, %v4792_v55  ;;  %v4795_v3 = vpop.f32.mrb[226].mxu1  ;;  %v4684_v53 = vpop.f32.mrb[227].mxu0 }
 0x59e   : > { %v3792_v36 = vadd.f32 %v4682_v47, %v6684_v15  ;;  %v4685_v29 = vadd.f32 %v4684_v53, %v4683_v56  ;;  %v4796_v25 = vpop.f32.mrb[227].mxu1 }
 0x59f   : > { %v4797_v39 = vadd.f32 %v4796_v25, %v4795_v3 }
 0x5a0   : > { %v3953_v24 = vadd.f32 %v4794_v33, %v3792_v36  ;;  %v3795_v30 = vadd.f32 %v4685_v29, %v6684_v15 }
 0x5a2   : > { %4031 = vst [vmem:[%s6692_s30 + $0x80] sm:$0xff] %v3953_v24  ;;  %v3956_v52 = vadd.f32 %v4797_v39, %v3795_v30  ;;  %v4686_v21 = vpop.f32.mrb[228].mxu0 }
 0x5a3   : > { %v4798_v32 = vpop.f32.mrb[228].mxu1  ;;  %v4687_v19 = vpop.f32.mrb[229].mxu0 }
 0x5a4   : > { %4032 = vst [vmem:[%s6692_s30 + $0x88] sm:$0xff] %v3956_v52  ;;  %v4688_v48 = vadd.f32 %v4687_v19, %v4686_v21  ;;  %v4799_v45 = vpop.f32.mrb[229].mxu1  ;;  %v4689_v13 = vpop.f32.mrb[230].mxu0 }
 0x5a5   : > { %v4800_v41 = vadd.f32 %v4799_v45, %v4798_v32  ;;  %v4801_v10 = vpop.f32.mrb[230].mxu1  ;;  %v4690_v50 = vpop.f32.mrb[231].mxu0 }
 0x5a6   : > { %v3800_v18 = vadd.f32 %v4688_v48, %v6684_v15  ;;  %v4691_v44 = vadd.f32 %v4690_v50, %v4689_v13  ;;  %v4802_v46 = vpop.f32.mrb[231].mxu1 }
 0x5a7   : > { %v4803_v0 = vadd.f32 %v4802_v46, %v4801_v10 }
 0x5a8   : > { %v3961_v57 = vadd.f32 %v4800_v41, %v3800_v18  ;;  %v3803_v17 = vadd.f32 %v4691_v44, %v6684_v15 }
 0x5aa   : > { %4033 = vst [vmem:[%s6692_s30 + $0x90] sm:$0xff] %v3961_v57  ;;  %v3964_v5 = vadd.f32 %v4803_v0, %v3803_v17 }
 0x5ac   : > { %4034 = vst [vmem:[%s6692_s30 + $0x98] sm:$0xff] %v3964_v5 }
 0x5ee   : > { %v4692_v11 = vpop.f32.mrb[232].mxu0  ;;  %v4804_v35 = vpop.f32.mrb[232].mxu1 }
 0x5ef   : > { %v4693_v7 = vpop.f32.mrb[233].mxu0  ;;  %v4805_v26 = vpop.f32.mrb[233].mxu1 }
 0x5f0   : > { %v4694_v61 = vadd.f32 %v4693_v7, %v4692_v11  ;;  %v4806_v2 = vadd.f32 %v4805_v26, %v4804_v35  ;;  %v4695_v42 = vpop.f32.mrb[234].mxu0  ;;  %v4807_v12 = vpop.f32.mrb[234].mxu1 }
 0x5f1   : > { %v4696_v31 = vpop.f32.mrb[235].mxu0  ;;  %v4808_v49 = vpop.f32.mrb[235].mxu1 }
 0x5f2   : > { %v3808_v37 = vadd.f32 %v4694_v61, %v6684_v15  ;;  %v4697_v22 = vadd.f32 %v4696_v31, %v4695_v42  ;;  %v4809_v1 = vadd.f32 %v4808_v49, %v4807_v12 }
 0x5f4   : > { %v3969_v59 = vadd.f32 %v4806_v2, %v3808_v37  ;;  %v3811_v4 = vadd.f32 %v4697_v22, %v6684_v15 }
 0x5f6   : > { %4035 = vst [vmem:[%s6692_s30 + $0xa0] sm:$0xff] %v3969_v59  ;;  %v3972_v14 = vadd.f32 %v4809_v1, %v3811_v4  ;;  %v4698_v27 = vpop.f32.mrb[236].mxu0  ;;  %v4810_v40 = vpop.f32.mrb[236].mxu1 }
 0x5f7   : > { %v4699_v38 = vpop.f32.mrb[237].mxu0  ;;  %v4811_v60 = vpop.f32.mrb[237].mxu1 }
 0x5f8   : > { %4036 = vst [vmem:[%s6692_s30 + $0xa8] sm:$0xff] %v3972_v14  ;;  %v4700_v34 = vadd.f32 %v4699_v38, %v4698_v27  ;;  %v4812_v20 = vadd.f32 %v4811_v60, %v4810_v40  ;;  %v4701_v16 = vpop.f32.mrb[238].mxu0  ;;  %v4813_v23 = vpop.f32.mrb[238].mxu1 }
 0x5f9   : > { %v4702_v8 = vpop.f32.mrb[239].mxu0  ;;  %v4814_v51 = vpop.f32.mrb[239].mxu1 }
 0x5fa   : > { %v3816_v63 = vadd.f32 %v4700_v34, %v6684_v15  ;;  %v4703_v58 = vadd.f32 %v4702_v8, %v4701_v16  ;;  %v4815_v6 = vadd.f32 %v4814_v51, %v4813_v23 }
 0x5fc   : > { %v3977_v28 = vadd.f32 %v4812_v20, %v3816_v63  ;;  %v3819_v9 = vadd.f32 %v4703_v58, %v6684_v15 }
 0x5fe   : > { %4037 = vst [vmem:[%s6692_s30 + $0xb0] sm:$0xff] %v3977_v28  ;;  %v3980_v62 = vadd.f32 %v4815_v6, %v3819_v9  ;;  %v4704_v55 = vpop.f32.mrb[240].mxu0  ;;  %v4816_v54 = vpop.f32.mrb[240].mxu1 }
 0x5ff   : > { %v4705_v47 = vpop.f32.mrb[241].mxu0  ;;  %v4817_v43 = vpop.f32.mrb[241].mxu1 }
 0x600   : > { %4038 = vst [vmem:[%s6692_s30 + $0xb8] sm:$0xff] %v3980_v62  ;;  %v4706_v56 = vadd.f32 %v4705_v47, %v4704_v55  ;;  %v4818_v33 = vadd.f32 %v4817_v43, %v4816_v54  ;;  %v4707_v3 = vpop.f32.mrb[242].mxu0  ;;  %v4819_v53 = vpop.f32.mrb[242].mxu1 }
 0x601   : > { %v4708_v36 = vpop.f32.mrb[243].mxu0  ;;  %v4820_v29 = vpop.f32.mrb[243].mxu1 }
 0x602   : > { %v3824_v25 = vadd.f32 %v4706_v56, %v6684_v15  ;;  %v4709_v39 = vadd.f32 %v4708_v36, %v4707_v3  ;;  %v4821_v24 = vadd.f32 %v4820_v29, %v4819_v53 }
 0x604   : > { %v3985_v30 = vadd.f32 %v4818_v33, %v3824_v25  ;;  %v3827_v52 = vadd.f32 %v4709_v39, %v6684_v15 }
 0x606   : > { %4039 = vst [vmem:[%s6692_s30 + $0xc0] sm:$0xff] %v3985_v30  ;;  %v3988_v21 = vadd.f32 %v4821_v24, %v3827_v52  ;;  %v4710_v32 = vpop.f32.mrb[244].mxu0  ;;  %v4822_v19 = vpop.f32.mrb[244].mxu1 }
 0x607   : > { %v4711_v48 = vpop.f32.mrb[245].mxu0  ;;  %v4823_v45 = vpop.f32.mrb[245].mxu1 }
 0x608   : > { %4040 = vst [vmem:[%s6692_s30 + $0xc8] sm:$0xff] %v3988_v21  ;;  %v4712_v13 = vadd.f32 %v4711_v48, %v4710_v32  ;;  %v4824_v41 = vadd.f32 %v4823_v45, %v4822_v19  ;;  %v4713_v10 = vpop.f32.mrb[246].mxu0  ;;  %v4825_v50 = vpop.f32.mrb[246].mxu1 }
 0x609   : > { %v4714_v18 = vpop.f32.mrb[247].mxu0  ;;  %v4826_v44 = vpop.f32.mrb[247].mxu1 }
 0x60a   : > { %v3832_v46 = vadd.f32 %v4712_v13, %v6684_v15  ;;  %v4715_v0 = vadd.f32 %v4714_v18, %v4713_v10  ;;  %v4827_v57 = vadd.f32 %v4826_v44, %v4825_v50 }
 0x60c   : > { %v3993_v17 = vadd.f32 %v4824_v41, %v3832_v46  ;;  %v3835_v5 = vadd.f32 %v4715_v0, %v6684_v15 }
 0x60e   : > { %4041 = vst [vmem:[%s6692_s30 + $0xd0] sm:$0xff] %v3993_v17  ;;  %v3996_v11 = vadd.f32 %v4827_v57, %v3835_v5  ;;  %v4716_v35 = vpop.f32.mrb[248].mxu0  ;;  %v4828_v7 = vpop.f32.mrb[248].mxu1 }
 0x60f   : > { %v4717_v26 = vpop.f32.mrb[249].mxu0  ;;  %v4829_v61 = vpop.f32.mrb[249].mxu1 }
 0x610   : > { %4042 = vst [vmem:[%s6692_s30 + $0xd8] sm:$0xff] %v3996_v11  ;;  %v4718_v2 = vadd.f32 %v4717_v26, %v4716_v35  ;;  %v4830_v42 = vadd.f32 %v4829_v61, %v4828_v7  ;;  %v4719_v12 = vpop.f32.mrb[250].mxu0  ;;  %v4831_v31 = vpop.f32.mrb[250].mxu1 }
 0x611   : > { %v4720_v49 = vpop.f32.mrb[251].mxu0  ;;  %v4832_v37 = vpop.f32.mrb[251].mxu1 }
 0x612   : > { %v3840_v22 = vadd.f32 %v4718_v2, %v6684_v15  ;;  %v4721_v1 = vadd.f32 %v4720_v49, %v4719_v12  ;;  %v4833_v59 = vadd.f32 %v4832_v37, %v4831_v31 }
 0x614   : > { %v4001_v4 = vadd.f32 %v4830_v42, %v3840_v22  ;;  %v3843_v14 = vadd.f32 %v4721_v1, %v6684_v15 }
 0x616   : > { %4043 = vst [vmem:[%s6692_s30 + $0xe0] sm:$0xff] %v4001_v4  ;;  %v4004_v27 = vadd.f32 %v4833_v59, %v3843_v14  ;;  %v4722_v40 = vpop.f32.mrb[252].mxu0  ;;  %v4834_v38 = vpop.f32.mrb[252].mxu1 }
 0x617   : > { %v4723_v60 = vpop.f32.mrb[253].mxu0  ;;  %v4835_v34 = vpop.f32.mrb[253].mxu1 }
 0x618   : > { %4044 = vst [vmem:[%s6692_s30 + $0xe8] sm:$0xff] %v4004_v27  ;;  %v4724_v20 = vadd.f32 %v4723_v60, %v4722_v40  ;;  %v4836_v16 = vadd.f32 %v4835_v34, %v4834_v38  ;;  %v4725_v23 = vpop.f32.mrb[254].mxu0  ;;  %v4837_v8 = vpop.f32.mrb[254].mxu1 }
 0x619   : > { %v4726_v51 = vpop.f32.mrb[255].mxu0  ;;  %v4838_v63 = vpop.f32.mrb[255].mxu1 }
 0x61a   : > { %v3848_v58 = vadd.f32 %v4724_v20, %v6684_v15  ;;  %v4727_v6 = vadd.f32 %v4726_v51, %v4725_v23  ;;  %v4839_v28 = vadd.f32 %v4838_v63, %v4837_v8 }
 0x61c   : > { %v4009_v9 = vadd.f32 %v4836_v16, %v3848_v58  ;;  %v3851_v62 = vadd.f32 %v4727_v6, %v6684_v15 }
 0x61e   : > { %4045 = vst [vmem:[%s6692_s30 + $0xf0] sm:$0xff] %v4009_v9  ;;  %v4012_v55 = vadd.f32 %v4839_v28, %v3851_v62 }
 0x620   : > { %4046 = vst [vmem:[%s6692_s30 + $0xf8] sm:$0xff] %v4012_v55 }
 0x621 PF: > { %s21_s13 = sadd.s32 1, %s5032_s13  }
 0x622   : > { %p18_p4 = scmp.ge.s32.totalorder %s21_s13, 4  }
 0x624   :  { %20 = sbr.rel (!%p18_p4) target bundleno = 1 (0x1), region = 98 }

</bundles_post_ra>
